<compile_context>
chip_gen: v6e
topology: v6e:2x2x1
jax: 0.10.0
libtpu: 0.0.40
codegen_flags: <defaults>
</compile_context>

<pallas_src>
import functools

import jax
import jax.numpy as jnp
from jax.experimental import pallas as pl
from jax.experimental.pallas import tpu as pltpu


def bottleneck_kernel(x_ref, w1_ref, s1_ref, b1_ref,
                      w2_ref, s2_ref, b2_ref,
                      w3_ref, s3_ref, b3_ref, out_ref, *, W):
    # x_ref  : (H*W, Cin)   flattened NHWC input (also the residual)
    # w1_ref : (Cin, P)     1x1 conv1 weight
    # w2_ref : (9*P, P)     3x3 conv2 weight, HWIO reshaped (ky,kx,c) -> row
    # w3_ref : (P, Cout)    1x1 conv3 weight (Cout = 4*P = Cin)
    # s*/b*  : (1, C)       folded BN scale / bias
    # out_ref: (H*W, Cout)
    HW, Cout = out_ref.shape
    P = w1_ref.shape[-1]

    x = x_ref[...].astype(jnp.float32)

    # ---- conv1 (1x1) + bn1 + relu : one MXU matmul ----
    mid = jnp.dot(x, w1_ref[...], preferred_element_type=jnp.float32)
    mid = jnp.maximum(mid * s1_ref[...] + b1_ref[...], 0.0)        # (HW, P)

    # ---- conv2 (3x3, SAME) : flattened shifts + im2col, single matmul ----
    pad = W + 1
    zpad = jnp.zeros((pad, P), jnp.float32)
    midp = jnp.concatenate([zpad, mid, zpad], axis=0)              # (HW+2W+2, P)

    # column index of each flattened pixel, for masking horizontal wraps
    wcol = jax.lax.broadcasted_iota(jnp.int32, (HW, 1), 0) % W
    left_ok = wcol > 0            # valid when reading neighbour at dx = -1
    right_ok = wcol < (W - 1)     # valid when reading neighbour at dx = +1

    tiles = []
    for ky in range(3):
        for kx in range(3):
            start = ky * W + kx
            t = midp[start:start + HW, :]
            if kx == 0:
                t = jnp.where(left_ok, t, 0.0)
            elif kx == 2:
                t = jnp.where(right_ok, t, 0.0)
            tiles.append(t)
    patches = jnp.concatenate(tiles, axis=-1)                      # (HW, 9P)

    mid2 = jnp.dot(patches, w2_ref[...], preferred_element_type=jnp.float32)
    mid2 = jnp.maximum(mid2 * s2_ref[...] + b2_ref[...], 0.0)      # (HW, P)

    # ---- conv3 (1x1) + bn3 + residual + relu ----
    out = jnp.dot(mid2, w3_ref[...], preferred_element_type=jnp.float32)
    out = out * s3_ref[...] + b3_ref[...] + x
    out_ref[...] = jnp.maximum(out, 0.0).astype(out_ref.dtype)


def bottleneck_pallas(x_nhwc, w1, s1, b1, w2r, s2, b2, w3, s3, b3):
    N, H, W, Cin = x_nhwc.shape
    P = w1.shape[-1]
    Cout = w3.shape[-1]
    assert Cout == Cin, "identity residual requires inplanes == 4*planes"

    x_flat = x_nhwc.reshape(N, H * W, Cin)

    sq = pl.Squeezed()
    full = lambda shape: pl.BlockSpec(shape, lambda n, _s=shape: (0,) * len(_s))

    kernel = functools.partial(bottleneck_kernel, W=W)

    out_flat = pl.pallas_call(
        kernel,
        out_shape=jax.ShapeDtypeStruct((N, H * W, Cout), x_nhwc.dtype),
        grid_spec=pltpu.PrefetchScalarGridSpec(
            num_scalar_prefetch=0,
            grid=(N,),
            in_specs=[
                pl.BlockSpec((sq, H * W, Cin), lambda n: (n, 0, 0)),
                full((Cin, P)), full((1, P)), full((1, P)),
                full((9 * P, P)), full((1, P)), full((1, P)),
                full((P, Cout)), full((1, Cout)), full((1, Cout)),
            ],
            out_specs=pl.BlockSpec((sq, H * W, Cout), lambda n: (n, 0, 0)),
        ),
        compiler_params=pltpu.CompilerParams(
            dimension_semantics=("parallel",)),
    )(x_flat, w1, s1, b1, w2r, s2, b2, w3, s3, b3)
    return out_flat.reshape(N, H, W, Cout)


def reference(x_nhwc, w1, s1, b1, w2_hwio, s2, b2, w3, s3, b3):
    dn = ("NHWC", "HWIO", "NHWC")
    out = jnp.einsum("nhwc,cp->nhwp", x_nhwc, w1)
    out = jnp.maximum(out * s1 + b1, 0.0)
    out = jax.lax.conv_general_dilated(out, w2_hwio, (1, 1), "SAME",
                                       dimension_numbers=dn)
    out = jnp.maximum(out * s2 + b2, 0.0)
    out = jnp.einsum("nhwp,pc->nhwc", out, w3)
    out = out * s3 + b3 + x_nhwc
    return jnp.maximum(out, 0.0)


def fold_bn(gamma, beta, running_mean, running_var, eps=1e-5):
    scale = gamma / jnp.sqrt(running_var + eps)
    bias = beta - running_mean * scale
    return scale.reshape(1, -1), bias.reshape(1, -1)


if __name__ == "__main__":
    # Bottleneck(inplanes=16, planes=4, stride=1, dilation_=1, downsample=None)
    N, inplanes, planes = 2, 16, 4
    Hs = Ws = 16
    expansion = 4
    outplanes = planes * expansion          # = 16 == inplanes -> identity residual

    key = jax.random.PRNGKey(0)
    ks = jax.random.split(key, 16)

    x_nchw = jax.random.normal(ks[0], (N, inplanes, Hs, Ws), jnp.float32)

    # conv weights in PyTorch layout (Cout, Cin, kH, kW), deterministic init
    w1_t = jax.random.normal(ks[1], (planes, inplanes, 1, 1), jnp.float32) * 0.1
    w2_t = jax.random.normal(ks[2], (planes, planes, 3, 3), jnp.float32) * 0.1
    w3_t = jax.random.normal(ks[3], (outplanes, planes, 1, 1), jnp.float32) * 0.1

    def bn_params(kg, kb, km, c):
        g = 1.0 + 0.1 * jax.random.normal(kg, (c,), jnp.float32)
        b = 0.1 * jax.random.normal(kb, (c,), jnp.float32)
        rm = 0.05 * jax.random.normal(km, (c,), jnp.float32)
        rv = jnp.ones((c,), jnp.float32)
        return g, b, rm, rv

    g1, be1, rm1, rv1 = bn_params(ks[4], ks[5], ks[6], planes)
    g2, be2, rm2, rv2 = bn_params(ks[7], ks[8], ks[9], planes)
    g3, be3, rm3, rv3 = bn_params(ks[10], ks[11], ks[12], outplanes)

    s1, b1 = fold_bn(g1, be1, rm1, rv1)
    s2, b2 = fold_bn(g2, be2, rm2, rv2)
    s3, b3 = fold_bn(g3, be3, rm3, rv3)

    # NCHW -> NHWC; conv weights to matmul-ready layouts
    x_nhwc = jnp.transpose(x_nchw, (0, 2, 3, 1))
    w1 = jnp.transpose(w1_t, (2, 3, 1, 0)).reshape(inplanes, planes)   # (Cin, P)
    w2_hwio = jnp.transpose(w2_t, (2, 3, 1, 0))                        # (3,3,P,P)
    w2r = w2_hwio.reshape(9 * planes, planes)                          # (9P, P)
    w3 = jnp.transpose(w3_t, (2, 3, 1, 0)).reshape(planes, outplanes)  # (P, Cout)

    out = bottleneck_pallas(x_nhwc, w1, s1, b1, w2r, s2, b2, w3, s3, b3)
    out = jax.block_until_ready(out)

    ref = reference(x_nhwc, w1, s1, b1, w2_hwio, s2, b2, w3, s3, b3)
    assert out.shape == (N, Hs, Ws, outplanes), out.shape
    assert jnp.allclose(out, ref, atol=1e-3, rtol=1e-3), (
        "mismatch vs reference, max abs err = %e"
        % float(jnp.max(jnp.abs(out - ref))))

    print("KERNEL_OK")
</pallas_src>

<mosaic_0001>
module attributes {stable_mosaic.version = 11 : i64} {
  func.func @bottleneck_kernel(%arg0: i32, %arg1: memref<1x256x16xf32, #tpu.memory_space<vmem>>, %arg2: memref<16x4xf32, #tpu.memory_space<vmem>>, %arg3: memref<1x4xf32, #tpu.memory_space<vmem>>, %arg4: memref<1x4xf32, #tpu.memory_space<vmem>>, %arg5: memref<36x4xf32, #tpu.memory_space<vmem>>, %arg6: memref<1x4xf32, #tpu.memory_space<vmem>>, %arg7: memref<1x4xf32, #tpu.memory_space<vmem>>, %arg8: memref<4x16xf32, #tpu.memory_space<vmem>>, %arg9: memref<1x16xf32, #tpu.memory_space<vmem>>, %arg10: memref<1x16xf32, #tpu.memory_space<vmem>>, %arg11: memref<1x256x16xf32, #tpu.memory_space<vmem>>) attributes {dimension_semantics = [#tpu.dimension_semantics<parallel>], iteration_bounds = array<i64: 2>, scalar_prefetch = 0 : i64, scratch_operands = 0 : i64, tpu.core_type = #tpu.core_type<tc>, window_params = [{transform_indices = @transform_0, window_bounds = array<i64: 1, 256, 16>}, {pipeline_mode = #tpu.pipeline_mode<synchronous>, transform_indices = @transform_1, window_bounds = array<i64: 16, 4>}, {pipeline_mode = #tpu.pipeline_mode<synchronous>, transform_indices = @transform_2, window_bounds = array<i64: 1, 4>}, {pipeline_mode = #tpu.pipeline_mode<synchronous>, transform_indices = @transform_3, window_bounds = array<i64: 1, 4>}, {pipeline_mode = #tpu.pipeline_mode<synchronous>, transform_indices = @transform_4, window_bounds = array<i64: 36, 4>}, {pipeline_mode = #tpu.pipeline_mode<synchronous>, transform_indices = @transform_5, window_bounds = array<i64: 1, 4>}, {pipeline_mode = #tpu.pipeline_mode<synchronous>, transform_indices = @transform_6, window_bounds = array<i64: 1, 4>}, {pipeline_mode = #tpu.pipeline_mode<synchronous>, transform_indices = @transform_7, window_bounds = array<i64: 4, 16>}, {pipeline_mode = #tpu.pipeline_mode<synchronous>, transform_indices = @transform_8, window_bounds = array<i64: 1, 16>}, {pipeline_mode = #tpu.pipeline_mode<synchronous>, transform_indices = @transform_9, window_bounds = array<i64: 1, 16>}, {transform_indices = @transform_10, window_bounds = array<i64: 1, 256, 16>}]} {
    %c0 = arith.constant 0 : index
    %c0_0 = arith.constant 0 : index
    %c0_1 = arith.constant 0 : index
    %0 = vector.load %arg1[%c0, %c0_0, %c0_1] : memref<1x256x16xf32, #tpu.memory_space<vmem>>, vector<1x256x16xf32>
    %1 = vector.shape_cast %0 : vector<1x256x16xf32> to vector<256x16xf32>
    %c0_2 = arith.constant 0 : index
    %c0_3 = arith.constant 0 : index
    %2 = vector.load %arg2[%c0_2, %c0_3] : memref<16x4xf32, #tpu.memory_space<vmem>>, vector<16x4xf32>
    %cst = arith.constant dense<0.000000e+00> : vector<256x4xf32>
    %3 = tpu.matmul %1, %2, %cst {dimension_numbers = #tpu.dot_dimension_numbers<[1], [0], [0], [1], [0, 0, 1, 1], [], []>} : vector<256x16xf32>, vector<16x4xf32>, vector<256x4xf32> -> vector<256x4xf32>
    %c0_4 = arith.constant 0 : index
    %c0_5 = arith.constant 0 : index
    %4 = vector.load %arg3[%c0_4, %c0_5] : memref<1x4xf32, #tpu.memory_space<vmem>>, vector<1x4xf32>
    %5 = vector.broadcast %4 : vector<1x4xf32> to vector<256x4xf32>
    %6 = arith.mulf %3, %5 : vector<256x4xf32>
    %c0_6 = arith.constant 0 : index
    %c0_7 = arith.constant 0 : index
    %7 = vector.load %arg4[%c0_6, %c0_7] : memref<1x4xf32, #tpu.memory_space<vmem>>, vector<1x4xf32>
    %8 = vector.broadcast %7 : vector<1x4xf32> to vector<256x4xf32>
    %9 = arith.addf %6, %8 : vector<256x4xf32>
    %cst_8 = arith.constant 0.000000e+00 : f32
    %10 = vector.broadcast %cst_8 : f32 to vector<256x4xf32>
    %11 = arith.maximumf %9, %10 : vector<256x4xf32>
    %cst_9 = arith.constant 0.000000e+00 : f32
    %12 = vector.broadcast %cst_9 : f32 to vector<17x4xf32>
    %13 = tpu.concatenate %12, %11, %12 in 0 : vector<17x4xf32>, vector<256x4xf32>, vector<17x4xf32> -> vector<290x4xf32>
    %14 = tpu.iota {dimensions = array<i32: 0>} : vector<256x1xi32>
    %c16_i32 = arith.constant 16 : i32
    %c0_i32 = arith.constant 0 : i32
    %15 = arith.cmpi eq, %c16_i32, %c0_i32 : i32
    %c1_i32 = arith.constant 1 : i32
    %16 = arith.select %15, %c1_i32, %c16_i32 : i32
    %17 = vector.broadcast %16 : i32 to vector<256x1xi32>
    %18 = arith.remsi %14, %17 : vector<256x1xi32>
    %c0_i32_10 = arith.constant 0 : i32
    %19 = vector.broadcast %c0_i32_10 : i32 to vector<256x1xi32>
    %20 = arith.cmpi ne, %18, %19 : vector<256x1xi32>
    %c0_i32_11 = arith.constant 0 : i32
    %21 = vector.broadcast %c0_i32_11 : i32 to vector<256x1xi32>
    %22 = arith.cmpi slt, %18, %21 : vector<256x1xi32>
    %c0_i32_12 = arith.constant 0 : i32
    %23 = arith.cmpi slt, %16, %c0_i32_12 : i32
    %24 = vector.broadcast %23 : i1 to vector<256x1xi1>
    %25 = vector.broadcast %24 : vector<256x1xi1> to vector<256x1xi1>
    %26 = arith.xori %22, %25 : vector<256x1xi1>
    %27 = arith.andi %26, %20 : vector<256x1xi1>
    %28 = vector.broadcast %16 : i32 to vector<256x1xi32>
    %29 = arith.addi %18, %28 : vector<256x1xi32>
    %30 = arith.select %27, %29, %18 : vector<256x1xi1>, vector<256x1xi32>
    %c0_i32_13 = arith.constant 0 : i32
    %31 = vector.broadcast %c0_i32_13 : i32 to vector<256x1xi32>
    %32 = arith.cmpi sgt, %30, %31 : vector<256x1xi32>
    %c15_i32 = arith.constant 15 : i32
    %33 = vector.broadcast %c15_i32 : i32 to vector<256x1xi32>
    %34 = arith.cmpi slt, %30, %33 : vector<256x1xi32>
    %35 = vector.extract_strided_slice %13 {offsets = [0, 0], sizes = [256, 4], strides = [1, 1]} : vector<290x4xf32> to vector<256x4xf32>
    %cst_14 = arith.constant 0.000000e+00 : f32
    %36 = vector.shape_cast %32 : vector<256x1xi1> to vector<256x1xi1>
    %37 = vector.broadcast %36 : vector<256x1xi1> to vector<256x4xi1>
    %38 = vector.broadcast %cst_14 : f32 to vector<256x4xf32>
    %39 = arith.select %37, %35, %38 : vector<256x4xi1>, vector<256x4xf32>
    %40 = vector.extract_strided_slice %13 {offsets = [1, 0], sizes = [256, 4], strides = [1, 1]} : vector<290x4xf32> to vector<256x4xf32>
    %41 = vector.extract_strided_slice %13 {offsets = [2, 0], sizes = [256, 4], strides = [1, 1]} : vector<290x4xf32> to vector<256x4xf32>
    %cst_15 = arith.constant 0.000000e+00 : f32
    %42 = vector.shape_cast %34 : vector<256x1xi1> to vector<256x1xi1>
    %43 = vector.broadcast %42 : vector<256x1xi1> to vector<256x4xi1>
    %44 = vector.broadcast %cst_15 : f32 to vector<256x4xf32>
    %45 = arith.select %43, %41, %44 : vector<256x4xi1>, vector<256x4xf32>
    %46 = vector.extract_strided_slice %13 {offsets = [16, 0], sizes = [256, 4], strides = [1, 1]} : vector<290x4xf32> to vector<256x4xf32>
    %cst_16 = arith.constant 0.000000e+00 : f32
    %47 = vector.shape_cast %32 : vector<256x1xi1> to vector<256x1xi1>
    %48 = vector.broadcast %47 : vector<256x1xi1> to vector<256x4xi1>
    %49 = vector.broadcast %cst_16 : f32 to vector<256x4xf32>
    %50 = arith.select %48, %46, %49 : vector<256x4xi1>, vector<256x4xf32>
    %51 = vector.extract_strided_slice %13 {offsets = [17, 0], sizes = [256, 4], strides = [1, 1]} : vector<290x4xf32> to vector<256x4xf32>
    %52 = vector.extract_strided_slice %13 {offsets = [18, 0], sizes = [256, 4], strides = [1, 1]} : vector<290x4xf32> to vector<256x4xf32>
    %cst_17 = arith.constant 0.000000e+00 : f32
    %53 = vector.shape_cast %34 : vector<256x1xi1> to vector<256x1xi1>
    %54 = vector.broadcast %53 : vector<256x1xi1> to vector<256x4xi1>
    %55 = vector.broadcast %cst_17 : f32 to vector<256x4xf32>
    %56 = arith.select %54, %52, %55 : vector<256x4xi1>, vector<256x4xf32>
    %57 = vector.extract_strided_slice %13 {offsets = [32, 0], sizes = [256, 4], strides = [1, 1]} : vector<290x4xf32> to vector<256x4xf32>
    %cst_18 = arith.constant 0.000000e+00 : f32
    %58 = vector.shape_cast %32 : vector<256x1xi1> to vector<256x1xi1>
    %59 = vector.broadcast %58 : vector<256x1xi1> to vector<256x4xi1>
    %60 = vector.broadcast %cst_18 : f32 to vector<256x4xf32>
    %61 = arith.select %59, %57, %60 : vector<256x4xi1>, vector<256x4xf32>
    %62 = vector.extract_strided_slice %13 {offsets = [33, 0], sizes = [256, 4], strides = [1, 1]} : vector<290x4xf32> to vector<256x4xf32>
    %63 = vector.extract_strided_slice %13 {offsets = [34, 0], sizes = [256, 4], strides = [1, 1]} : vector<290x4xf32> to vector<256x4xf32>
    %cst_19 = arith.constant 0.000000e+00 : f32
    %64 = vector.shape_cast %34 : vector<256x1xi1> to vector<256x1xi1>
    %65 = vector.broadcast %64 : vector<256x1xi1> to vector<256x4xi1>
    %66 = vector.broadcast %cst_19 : f32 to vector<256x4xf32>
    %67 = arith.select %65, %63, %66 : vector<256x4xi1>, vector<256x4xf32>
    %68 = tpu.concatenate %39, %40, %45, %50, %51, %56, %61, %62, %67 in 1 : vector<256x4xf32>, vector<256x4xf32>, vector<256x4xf32>, vector<256x4xf32>, vector<256x4xf32>, vector<256x4xf32>, vector<256x4xf32>, vector<256x4xf32>, vector<256x4xf32> -> vector<256x36xf32>
    %c0_20 = arith.constant 0 : index
    %c0_21 = arith.constant 0 : index
    %69 = vector.load %arg5[%c0_20, %c0_21] : memref<36x4xf32, #tpu.memory_space<vmem>>, vector<36x4xf32>
    %cst_22 = arith.constant dense<0.000000e+00> : vector<256x4xf32>
    %70 = tpu.matmul %68, %69, %cst_22 {dimension_numbers = #tpu.dot_dimension_numbers<[1], [0], [0], [1], [0, 0, 1, 1], [], []>} : vector<256x36xf32>, vector<36x4xf32>, vector<256x4xf32> -> vector<256x4xf32>
    %c0_23 = arith.constant 0 : index
    %c0_24 = arith.constant 0 : index
    %71 = vector.load %arg6[%c0_23, %c0_24] : memref<1x4xf32, #tpu.memory_space<vmem>>, vector<1x4xf32>
    %72 = vector.broadcast %71 : vector<1x4xf32> to vector<256x4xf32>
    %73 = arith.mulf %70, %72 : vector<256x4xf32>
    %c0_25 = arith.constant 0 : index
    %c0_26 = arith.constant 0 : index
    %74 = vector.load %arg7[%c0_25, %c0_26] : memref<1x4xf32, #tpu.memory_space<vmem>>, vector<1x4xf32>
    %75 = vector.broadcast %74 : vector<1x4xf32> to vector<256x4xf32>
    %76 = arith.addf %73, %75 : vector<256x4xf32>
    %cst_27 = arith.constant 0.000000e+00 : f32
    %77 = vector.broadcast %cst_27 : f32 to vector<256x4xf32>
    %78 = arith.maximumf %76, %77 : vector<256x4xf32>
    %c0_28 = arith.constant 0 : index
    %c0_29 = arith.constant 0 : index
    %79 = vector.load %arg8[%c0_28, %c0_29] : memref<4x16xf32, #tpu.memory_space<vmem>>, vector<4x16xf32>
    %cst_30 = arith.constant dense<0.000000e+00> : vector<256x16xf32>
    %80 = tpu.matmul %78, %79, %cst_30 {dimension_numbers = #tpu.dot_dimension_numbers<[1], [0], [0], [1], [0, 0, 1, 1], [], []>} : vector<256x4xf32>, vector<4x16xf32>, vector<256x16xf32> -> vector<256x16xf32>
    %c0_31 = arith.constant 0 : index
    %c0_32 = arith.constant 0 : index
    %81 = vector.load %arg9[%c0_31, %c0_32] : memref<1x16xf32, #tpu.memory_space<vmem>>, vector<1x16xf32>
    %82 = vector.broadcast %81 : vector<1x16xf32> to vector<256x16xf32>
    %83 = arith.mulf %80, %82 : vector<256x16xf32>
    %c0_33 = arith.constant 0 : index
    %c0_34 = arith.constant 0 : index
    %84 = vector.load %arg10[%c0_33, %c0_34] : memref<1x16xf32, #tpu.memory_space<vmem>>, vector<1x16xf32>
    %85 = vector.broadcast %84 : vector<1x16xf32> to vector<256x16xf32>
    %86 = arith.addf %83, %85 : vector<256x16xf32>
    %87 = arith.addf %86, %1 : vector<256x16xf32>
    %cst_35 = arith.constant 0.000000e+00 : f32
    %88 = vector.broadcast %cst_35 : f32 to vector<256x16xf32>
    %89 = arith.maximumf %87, %88 : vector<256x16xf32>
    %c0_36 = arith.constant 0 : index
    %c0_37 = arith.constant 0 : index
    %c0_38 = arith.constant 0 : index
    %90 = vector.load %arg11[%c0_36, %c0_37, %c0_38] : memref<1x256x16xf32, #tpu.memory_space<vmem>>, vector<1x256x16xf32>
    %91 = vector.shape_cast %90 : vector<1x256x16xf32> to vector<256x16xf32>
    %92 = vector.shape_cast %89 : vector<256x16xf32> to vector<1x256x16xf32>
    tpu.vector_store %arg11[%c0_36, %c0_37, %c0_38], %92 {strides = array<i32>} : memref<1x256x16xf32, #tpu.memory_space<vmem>>, vector<1x256x16xf32>,
    return
  }
  func.func @transform_0(%arg0: i32) -> (i32, i32, i32) {
    %c0_i32 = arith.constant 0 : i32
    %c0_i32_0 = arith.constant 0 : i32
    %c0_i32_1 = arith.constant 0 : i32
    return %arg0, %c0_i32, %c0_i32_0 : i32, i32, i32
  }
  func.func @transform_1(%arg0: i32) -> (i32, i32) {
    %c0_i32 = arith.constant 0 : i32
    %c0_i32_0 = arith.constant 0 : i32
    %c0_i32_1 = arith.constant 0 : i32
    return %c0_i32, %c0_i32_0 : i32, i32
  }
  func.func @transform_2(%arg0: i32) -> (i32, i32) {
    %c0_i32 = arith.constant 0 : i32
    %c0_i32_0 = arith.constant 0 : i32
    %c0_i32_1 = arith.constant 0 : i32
    return %c0_i32, %c0_i32_0 : i32, i32
  }
  func.func @transform_3(%arg0: i32) -> (i32, i32) {
    %c0_i32 = arith.constant 0 : i32
    %c0_i32_0 = arith.constant 0 : i32
    %c0_i32_1 = arith.constant 0 : i32
    return %c0_i32, %c0_i32_0 : i32, i32
  }
  func.func @transform_4(%arg0: i32) -> (i32, i32) {
    %c0_i32 = arith.constant 0 : i32
    %c0_i32_0 = arith.constant 0 : i32
    %c0_i32_1 = arith.constant 0 : i32
    return %c0_i32, %c0_i32_0 : i32, i32
  }
  func.func @transform_5(%arg0: i32) -> (i32, i32) {
    %c0_i32 = arith.constant 0 : i32
    %c0_i32_0 = arith.constant 0 : i32
    %c0_i32_1 = arith.constant 0 : i32
    return %c0_i32, %c0_i32_0 : i32, i32
  }
  func.func @transform_6(%arg0: i32) -> (i32, i32) {
    %c0_i32 = arith.constant 0 : i32
    %c0_i32_0 = arith.constant 0 : i32
    %c0_i32_1 = arith.constant 0 : i32
    return %c0_i32, %c0_i32_0 : i32, i32
  }
  func.func @transform_7(%arg0: i32) -> (i32, i32) {
    %c0_i32 = arith.constant 0 : i32
    %c0_i32_0 = arith.constant 0 : i32
    %c0_i32_1 = arith.constant 0 : i32
    return %c0_i32, %c0_i32_0 : i32, i32
  }
  func.func @transform_8(%arg0: i32) -> (i32, i32) {
    %c0_i32 = arith.constant 0 : i32
    %c0_i32_0 = arith.constant 0 : i32
    %c0_i32_1 = arith.constant 0 : i32
    return %c0_i32, %c0_i32_0 : i32, i32
  }
  func.func @transform_9(%arg0: i32) -> (i32, i32) {
    %c0_i32 = arith.constant 0 : i32
    %c0_i32_0 = arith.constant 0 : i32
    %c0_i32_1 = arith.constant 0 : i32
    return %c0_i32, %c0_i32_0 : i32, i32
  }
  func.func @transform_10(%arg0: i32) -> (i32, i32, i32) {
    %c0_i32 = arith.constant 0 : i32
    %c0_i32_0 = arith.constant 0 : i32
    %c0_i32_1 = arith.constant 0 : i32
    return %arg0, %c0_i32, %c0_i32_0 : i32, i32, i32
  }
}

</mosaic_0001>

<bundles_post_ra>
// kernel: tpu_custom_call.1
= control target key start
LH: loop header
LB: loop body
LE: loop exit
PB: predicated region body
PF: predicated region fallthrough
CT: control target
= control target key end

     0   :  { %s4630_s13 = smov 0   ;;  %s7069_s0 = inlined_call_operand.vmem [shape: f32[2,256,16], index: 0, kind: input, shape index: {}]   ;;  %s7070_s1 = inlined_call_operand.vmem [shape: f32[16,4], index: 1, kind: input, shape index: {}]   ;;  %s7071_s2 = inlined_call_operand.vmem [shape: f32[1,4], index: 2, kind: input, shape index: {}]   ;;  %s7072_s3 = inlined_call_operand.vmem [shape: f32[1,4], index: 3, kind: input, shape index: {}]   ;;  %s7073_s4 = inlined_call_operand.vmem [shape: f32[36,4], index: 4, kind: input, shape index: {}]   ;;  %s7074_s5 = inlined_call_operand.vmem [shape: f32[1,4], index: 5, kind: input, shape index: {}]   ;;  %s7075_s6 = inlined_call_operand.vmem [shape: f32[1,4], index: 6, kind: input, shape index: {}]   ;;  %s7076_s7 = inlined_call_operand.vmem [shape: f32[4,16], index: 7, kind: input, shape index: {}]   ;;  %s7077_s8 = inlined_call_operand.vmem [shape: f32[1,16], index: 8, kind: input, shape index: {}]   ;;  %s7078_s9 = inlined_call_operand.vmem [shape: f32[1,16], index: 9, kind: input, shape index: {}]   ;;  %s7079_s10 = inlined_call_operand.vmem [shape: f32[2,256,16], index: 10, kind: output, shape index: {}]  }
   0x1 LB: > { %s4118_s14 = sadd.s32 4294967295, %s4564_s13   ;;  %p4122_p0 = scmp.ge.s32.totalorder %s4564_s13, 1  ;;  %s4564_s13 = sphi %s4630_s13, %s20_s13  }
   0x2   : > { %p312_p1 = scmp.lt.s32.totalorder %s4564_s13, 3 }
   0x4   : > { %p313_p2 = pnand %p4122_p0, %p312_p1 }
   0x6   : > { %316 = sbr.rel (%p313_p2) target bundleno = 1250 (0x4e2), region = 60 }
   0xb   : > { %v393_v0 = vld [vmem:[%s7070_s1 + $0x8] sm:$0xff]  ;;  %v392_v1 = vld [vmem:[%s7070_s1] sm:$0xff]  ;;  %p350_p3 = scmp.lt.s32.totalorder %s4118_s14, 1  ;;  %vm7095_vm0 = vcmask 130048   ;;  %v7081_v18 = vmov 0.0   ;;  %s4567_s23 = smov 8   ;;  %v957_v30 = vlaneseq }
   0xc   : > { %4339 = vmatprep.subr.mxu0 %v393_v0  ;;  %4499 = vmatprep.subr.mxu1 %v393_v0  ;;  %v4687_v19 = vrot.slane %v7081_v18, 2  ;;  %v4690_v20 = vrot.slane %v7081_v18, 1  ;;  %s4568_s24 = smov 4   ;;  %v4715_v29 = vld [vmem:[%s7071_s2] ss:$0 sm:$0xff]  ;;  %vm7089_vm1 = vcmask 1040384  }
   0xd   : > { %4340 = vmatpush3.msra.mxu0 %v393_v0  ;;  %s7678_s14 = smov (!%p350_p3, %s4118_s14), 1  ;;  %4501 = vmatpush3.msra.mxu1 %v393_v0  ;;  %v4721_v33 = vld [vmem:[%s7072_s3] ss:$0 sm:$0xff]  ;;  %v4729_v39 = vshrl.u32 %v957_v30, 7  ;;  %vm7084_vm3 = vcmask 1046528   ;;  %s4569_s29 = smov 12  }
   0xe   : > { %4341 = vmatprep.subr.mxu0 %v392_v1  ;;  %4500 = vmatprep.subr.mxu1 %v392_v1  ;;  %s4233_s19 = sshll.u32 %s7678_s14, 8  ;;  %7148 = vst [vmem:[#allocation2_spill] sm:$0xff] %v4687_v19  ;;  %7149 = vst [vmem:[#allocation3_spill] sm:$0xff] %v4690_v20  ;;  %vm7083_vm4 = vcmask 1045504   ;;  %s4570_s30 = smov 20   ;;  %vm7080_vm14 = vcmask 1043456  }
   0xf   : > { %4342 = vmatpush3.msra.mxu0 %v392_v1  ;;  %4502 = vmatpush3.msra.mxu1 %v392_v1  ;;  %s4652_s22 = scalar_lea.vmem %s7069_s0, %s4233_s19  ;;  %v994_v42 = vand.u32 15, %v4729_v39  ;;  %s4571_s11 = smov 16  }
  0x10   : > { %v360_v2 = vld [vmem:[%s4652_s22] sm:$0xff]  ;;  %v361_v3 = vld [vmem:[%s4652_s22 + $0x8] sm:$0xff]  ;;  %v362_v4 = vld [vmem:[%s4652_s22 + $0x10] sm:$0xff]  ;;  %2056 = vrot.lane.b32.xlu1 %v4687_v19, %s4567_s23  ;;  %s4572_s12 = smov 24   ;;  %s4573_s15 = smov 28  }
  0x11   : > { %4343 = vmatprep.mubr.msk.f32.mxu0 %vm7095_vm0, %v360_v2  ;;  %v363_v5 = vld [vmem:[%s4652_s22 + $0x18] sm:$0xff]  ;;  %v364_v6 = vld [vmem:[%s4652_s22 + $0x20] sm:$0xff]  ;;  %v365_v7 = vld [vmem:[%s4652_s22 + $0x28] sm:$0xff]  ;;  %1928 = vrot.lane.b32.xlu0 %v4690_v20, %s4568_s24  ;;  %vm4735_vm2 = vcmp.gt.s32.totalorder %v994_v42, 0  ;;  %s4574_s16 = smov 32  }
  0x12   : > { %4344 = vmatmul.mubr.msk.f32.vlgmr.msra.gmra.mxu0 %vm7095_vm0, %v361_v3  ;;  %v366_v8 = vld [vmem:[%s4652_s22 + $0x30] sm:$0xff]  ;;  %v367_v9 = vld [vmem:[%s4652_s22 + $0x38] sm:$0xff]  ;;  %v368_v10 = vld [vmem:[%s4652_s22 + $0x40] sm:$0xff] }
  0x13   : > { %4346 = vmatprep.mubr.msk.f32.mxu0 %vm7095_vm0, %v362_v4  ;;  %v369_v11 = vld [vmem:[%s4652_s22 + $0x48] sm:$0xff]  ;;  %v370_v12 = vld [vmem:[%s4652_s22 + $0x50] sm:$0xff]  ;;  %v371_v13 = vld [vmem:[%s4652_s22 + $0x58] sm:$0xff]  ;;  %v959_v4 = vadd.s32 8, %v4729_v39 }
  0x14   : > { %v372_v14 = vld [vmem:[%s4652_s22 + $0x60] sm:$0xff]  ;;  %v373_v15 = vld [vmem:[%s4652_s22 + $0x68] sm:$0xff]  ;;  %v374_v16 = vld [vmem:[%s4652_s22 + $0x70] sm:$0xff] }
  0x15   : > { %v375_v17 = vld [vmem:[%s4652_s22 + $0x78] sm:$0xff]  ;;  %v376_v21 = vld [vmem:[%s4652_s22 + $0x80] sm:$0xff]  ;;  %v377_v22 = vld [vmem:[%s4652_s22 + $0x88] sm:$0xff] }
  0x16   : > { %4347 = vmatmul.mubr.msk.f32.gmra.mxu0 %vm7095_vm0, %v363_v5  ;;  %4367 = vmatprep.mubr.msk.f32.mxu1 %vm7095_vm0, %v376_v21  ;;  %v378_v23 = vld [vmem:[%s4652_s22 + $0x90] sm:$0xff]  ;;  %v379_v24 = vld [vmem:[%s4652_s22 + $0x98] sm:$0xff]  ;;  %v380_v25 = vld [vmem:[%s4652_s22 + $0xa0] sm:$0xff] }
  0x17   : > { %4349 = vmatprep.mubr.msk.f32.mxu0 %vm7095_vm0, %v364_v6  ;;  %4368 = vmatmul.mubr.msk.f32.vlgmr.msra.gmra.mxu1 %vm7095_vm0, %v377_v22  ;;  %v381_v26 = vld [vmem:[%s4652_s22 + $0xa8] sm:$0xff]  ;;  %v382_v27 = vld [vmem:[%s4652_s22 + $0xb0] sm:$0xff]  ;;  %v383_v28 = vld [vmem:[%s4652_s22 + $0xb8] sm:$0xff]  ;;  %v960_v6 = vadd.s32 16, %v4729_v39 }
  0x18   : > { %4370 = vmatprep.mubr.msk.f32.mxu1 %vm7095_vm0, %v378_v23  ;;  %v384_v31 = vld [vmem:[%s4652_s22 + $0xc0] sm:$0xff]  ;;  %v385_v34 = vld [vmem:[%s4652_s22 + $0xc8] sm:$0xff]  ;;  %v386_v23 = vld [vmem:[%s4652_s22 + $0xd0] sm:$0xff] }
  0x1a   : > { %4350 = vmatmul.mubr.msk.f32.gmra.mxu0 %vm7095_vm0, %v365_v7 }
  0x1b   : > { %4352 = vmatprep.mubr.msk.f32.mxu0 %vm7095_vm0, %v366_v8  ;;  %4371 = vmatmul.mubr.msk.f32.gmra.mxu1 %vm7095_vm0, %v379_v24 }
  0x1c   : > { %4373 = vmatprep.mubr.msk.f32.mxu1 %vm7095_vm0, %v380_v25 }
  0x1e   : > { %4353 = vmatmul.mubr.msk.f32.gmra.mxu0 %vm7095_vm0, %v367_v9 }
  0x1f   : > { %4355 = vmatprep.mubr.msk.f32.mxu0 %vm7095_vm0, %v368_v10  ;;  %4374 = vmatmul.mubr.msk.f32.gmra.mxu1 %vm7095_vm0, %v381_v26  ;;  %v1001_v10 = vand.u32 15, %v959_v4 }
  0x20   : > { %4376 = vmatprep.mubr.msk.f32.mxu1 %vm7095_vm0, %v382_v27 }
  0x21   : > { %vm4783_vm5 = vcmp.lt.s32.totalorder %v1001_v10, 15 }
  0x22   : > { %4356 = vmatmul.mubr.msk.f32.gmra.mxu0 %vm7095_vm0, %v369_v11 }
  0x23   : > { %4358 = vmatprep.mubr.msk.f32.mxu0 %vm7095_vm0, %v370_v12  ;;  %4377 = vmatmul.mubr.msk.f32.gmra.mxu1 %vm7095_vm0, %v383_v28  ;;  %v1008_v12 = vand.u32 15, %v960_v6 }
  0x24   : > { %4379 = vmatprep.mubr.msk.f32.mxu1 %vm7095_vm0, %v384_v31  ;;  %v387_v31 = vld [vmem:[%s4652_s22 + $0xd8] sm:$0xff] }
  0x25   : > { %vm4796_vm6 = vcmp.gt.s32.totalorder %v1008_v12, 0 }
  0x26   : > { %4359 = vmatmul.mubr.msk.f32.gmra.mxu0 %vm7095_vm0, %v371_v13 }
  0x27   : > { %4361 = vmatprep.mubr.msk.f32.mxu0 %vm7095_vm0, %v372_v14  ;;  %4380 = vmatmul.mubr.msk.f32.gmra.mxu1 %vm7095_vm0, %v385_v34  ;;  %v962_v34 = vadd.s32 32, %v4729_v39 }
  0x28   : > { %4382 = vmatprep.mubr.msk.f32.mxu1 %vm7095_vm0, %v386_v23 }
  0x2a   : > { %4362 = vmatmul.mubr.msk.f32.gmra.mxu0 %vm7095_vm0, %v373_v15 }
  0x2b   : > { %4364 = vmatprep.mubr.msk.f32.mxu0 %vm7095_vm0, %v374_v16  ;;  %4383 = vmatmul.mubr.msk.f32.gmra.mxu1 %vm7095_vm0, %v387_v31  ;;  %v970_v31 = vadd.s32 96, %v4729_v39 }
  0x2e   : > { %4365 = vmatmul.mubr.msk.f32.gmra.mxu0 %vm7095_vm0, %v375_v17 }
  0xd2   : > { %v4345_v32 = vpop.f32.mrf.mxu0 }
  0xd3   : > { %v724_v35 = vmul.f32 %v4345_v32, %v4715_v29 }
  0xd4   : > { %v557_v36 = vpop.f32.mrf.mxu0 }
  0xd5   : > { %v763_v37 = vadd.f32 %v4721_v33, %v724_v35  ;;  %v723_v38 = vmul.f32 %v4715_v29, %v557_v36  ;;  %v388_v36 = vld [vmem:[%s4652_s22 + $0xe0] sm:$0xff] }
  0xd6   : > { %v4348_v40 = vpop.f32.mrf.mxu0  ;;  %4385 = vmatprep.mubr.msk.f32.mxu1 %vm7095_vm0, %v388_v36 }
  0xd7   : > { %v762_v41 = vadd.f32 %v4721_v33, %v723_v38  ;;  %v795_v43 = vmax.f32 %v763_v37, 0.0  ;;  %v726_v46 = vmul.f32 %v4348_v40, %v4715_v29  ;;  %v964_v38 = vadd.s32 48, %v4729_v39 }
  0xd8   : > { %v567_v44 = vpop.f32.mrf.mxu0 }
  0xd9   : > { %v794_v45 = vmax.f32 %v762_v41, 0.0  ;;  %v725_v47 = vmul.f32 %v4715_v29, %v567_v44  ;;  %v860_v51 = vrot.slane %v795_v43, 7  ;;  %v765_v54 = vadd.f32 %v4721_v33, %v726_v46  ;;  %v389_v44 = vld [vmem:[%s4652_s22 + $0xe8] sm:$0xff] }
  0xda   : > { %v4351_v48 = vpop.f32.mrf.mxu0  ;;  %v1022_v46 = vand.u32 15, %v962_v34  ;;  %4386 = vmatmul.mubr.msk.f32.gmra.mxu1 %vm7095_vm0, %v389_v44 }
  0xdb   : > { %v859_v49 = vrot.slane %v794_v45, 7  ;;  %v764_v55 = vadd.f32 %v4721_v33, %v725_v47  ;;  %v797_v61 = vmax.f32 %v765_v54, 0.0  ;;  %v728_v24 = vmul.f32 %v4351_v48, %v4715_v29 }
  0xdc   : > { %v577_v52 = vpop.f32.mrf.mxu0  ;;  %v966_v47 = vadd.s32 64, %v4729_v39  ;;  %v1036_v54 = vand.u32 15, %v964_v38  ;;  %vm4850_vm7 = vcmp.gt.s32.totalorder %v1022_v46, 0 }
  0xdd   : > { %v4740_v53 = vsel %vm7089_vm1, 0.0, %v859_v49  ;;  %v4745_v56 = vsel %vm7089_vm1, %v859_v49, %v860_v51  ;;  %v796_v0 = vmax.f32 %v764_v55, 0.0  ;;  %v4768_v7 = vrot.slane %v797_v61, 7  ;;  %v390_v49 = vld [vmem:[%s4652_s22 + $0xf0] sm:$0xff] }
  0xde   : > { %v1727_v57 = vsel %vm4735_vm2, %v4740_v53, 0.0  ;;  %v1866_v58 = vrot.slane %v4740_v53, 1  ;;  %v4751_v59 = vpop.f32.mrf.mxu0  ;;  %2186 = vrot.lane.b32.xlu1 %v4745_v56, %s4569_s29  ;;  %v1868_v60 = vrot.slane %v4745_v56, 1  ;;  %v1601_v2 = vrot.slane %v4740_v53, 2  ;;  %4388 = vmatprep.mubr.msk.f32.mxu1 %vm7095_vm0, %v390_v49 }
  0xdf   : > { %2184 = vrot.lane.b32.xlu0 %v1727_v57, %s4569_s29  ;;  %v1603_v3 = vrot.slane %v4745_v56, 2  ;;  %v862_v8 = vrot.slane %v796_v0, 7  ;;  %v727_v14 = vmul.f32 %v4715_v29, %v577_v52  ;;  %v767_v37 = vadd.f32 %v4721_v33, %v728_v24  ;;  %v391_v0 = vld [vmem:[%s4652_s22 + $0xf8] sm:$0xff] }
  0xe0   : > { %v1869_v62 = vsel %vm7084_vm3, %v1866_v58, %v1868_v60  ;;  %v587_v63 = vpop.f32.mrf.mxu0  ;;  %v1867_v1 = vsel %vm7084_vm3, %v4690_v20, %v1866_v58  ;;  %v1602_v17 = vsel %vm7083_vm4, %v4687_v19, %v1601_v2  ;;  %v730_v57 = vmul.f32 %v4751_v59, %v4715_v29  ;;  %4389 = vmatmul.mubr.msk.f32.gmra.mxu1 %vm7095_vm0, %v391_v0 }
  0xe1   : > { %v1604_v9 = vsel %vm7083_vm4, %v1601_v2, %v1603_v3  ;;  %v4778_v15 = vsel %vm7089_vm1, %v862_v8, %v4768_v7  ;;  %v4790_v21 = vsel %vm7089_vm1, %v860_v51, %v862_v8  ;;  %v729_v22 = vmul.f32 %v4715_v29, %v587_v63 }
  0xe2   : > { %1932 = vrot.lane.b32.xlu1 %v1869_v62, %s4568_s24  ;;  %v4765_v5 = vpop.f32.mrf.mxu0  ;;  %v766_v27 = vadd.f32 %v4721_v33, %v727_v14  ;;  %v1696_v28 = vsel %vm4783_vm5, %v1602_v17, 0.0  ;;  %v1870_v30 = vrot.slane %v4790_v21, 1  ;;  %v1798_v42 = vsel %vm4735_vm2, %v4790_v21, 0.0 }
  0xe3   : > { %1930 = vrot.lane.b32.xlu0 %v1867_v1, %s4568_s24  ;;  %v768_v32 = vadd.f32 %v4721_v33, %v729_v22  ;;  %v799_v51 = vmax.f32 %v767_v37, 0.0  ;;  %v1872_v55 = vrot.slane %v4778_v15, 1  ;;  %v961_v58 = vadd.s32 24, %v4729_v39 }
  0xe4   : > { %v597_v11 = vpop.f32.mrf.mxu0  ;;  %v798_v41 = vmax.f32 %v766_v27, 0.0  ;;  %v1871_v43 = vsel %vm7084_vm3, %v1868_v60, %v1870_v30  ;;  %v1729_v61 = vsel %vm4796_vm6, %v4790_v21, 0.0  ;;  %v1050_v4 = vand.u32 15, %v966_v47 }
  0xe5   : > { %v800_v45 = vmax.f32 %v768_v32, 0.0  ;;  %v731_v52 = vmul.f32 %v4715_v29, %v597_v11  ;;  %v4855_v6 = vrot.slane %v799_v51, 7  ;;  %vm4858_vm8 = vcmp.gt.s32.totalorder %v1036_v54, 0 }
  0xe6   : > { %2412 = vrot.lane.b32.xlu1 %v1604_v9, %s4570_s30  ;;  %v4360_v13 = vpop.f32.mrf.mxu0  ;;  %v4837_v60 = vrot.slane %v798_v41, 7  ;;  %v1873_v10 = vsel %vm7084_vm3, %v1870_v30, %v1872_v55  ;;  %v769_v11 = vadd.f32 %v4721_v33, %v730_v57  ;;  %v1605_v12 = vrot.slane %v4790_v21, 2 }
  0xe7   : > { %2284 = vrot.lane.b32.xlu0 %v1869_v62, %s4571_s11  ;;  %v732_v62 = vmul.f32 %v4765_v5, %v4715_v29  ;;  %v4848_v59 = vrot.slane %v800_v45, 7  ;;  %v734_v2 = vmul.f32 %v4360_v13, %v4715_v29  ;;  %v770_v5 = vadd.f32 %v4721_v33, %v731_v52 }
  0xe8   : > { %v607_v26 = vpop.f32.mrf.mxu0  ;;  %v1607_v13 = vrot.slane %v4778_v15, 2  ;;  %v4873_v14 = vsel %vm7089_vm1, %v4768_v7, %v4837_v60  ;;  %vm4888_vm9 = vcmp.gt.s32.totalorder %v1050_v4, 0  ;;  %v968_v27 = vadd.s32 80, %v4729_v39 }
  0xe9   : > { %v733_v50 = vmul.f32 %v4715_v29, %v607_v26  ;;  %v771_v17 = vadd.f32 %v4721_v33, %v732_v62  ;;  %v4885_v24 = vsel %vm7089_vm1, %v4855_v6, %v4848_v59  ;;  %v773_v7 = vadd.f32 %v4721_v33, %v734_v2 }
  0xea   : > { %2060 = vrot.lane.b32.xlu1 %v1604_v9, %s4567_s23  ;;  %v4810_v35 = vpop.f32.mrf.mxu0  ;;  %7160 = vst [vmem:[#allocation4_spill] sm:$0xff] %v4885_v24  ;;  %v7161_v26 = vmov 0  ;;  %v801_v32 = vmax.f32 %v769_v11, 0.0  ;;  %v1608_v36 = vsel %vm7083_vm4, %v1605_v12, %v1607_v13  ;;  %v1064_v45 = vand.u32 15, %v968_v27 }
  0xeb   : > { %2541 = vrot.lane.b32.xlu0 %v4778_v15, %s4572_s12  ;;  %v772_v9 = vadd.f32 %v4721_v33, %v733_v50  ;;  %v7162_v26 = vsel %vm4888_vm9, 4294967295, %v7161_v26  ;;  %v803_v37 = vmax.f32 %v771_v17, 0.0  ;;  %v805_v44 = vmax.f32 %v773_v7, 0.0 }
  0xec   : > { %v617_v48 = vpop.f32.mrf.mxu0  ;;  %7163 = vst [vmem:[#allocation5_spill] sm:$0xff] %v7162_v26  ;;  %v4912_v49 = vrot.slane %v801_v32, 7  ;;  %vm4928_vm11 = vcmp.gt.s32.totalorder %v1064_v45, 0  ;;  %v7166_v57 = vmov 0  ;;  %v1800_v17 = vsel %vm4796_vm6, %v4873_v14, 0.0 }
  0xed   : > { %v735_v63 = vmul.f32 %v4715_v29, %v617_v48  ;;  %v804_v30 = vmax.f32 %v772_v9, 0.0  ;;  %v1078_v48 = vand.u32 15, %v970_v31  ;;  %v4916_v52 = vrot.slane %v803_v37, 7 }
  0xee   : > { %2058 = vrot.lane.b32.xlu1 %v1696_v28, %s4567_s23  ;;  %v802_v28 = vmax.f32 %v770_v5, 0.0  ;;  %v4926_v50 = vrot.slane %v805_v44, 7  ;;  %v7167_v57 = vsel %vm4928_vm11, 4294967295, %v7166_v57  ;;  %v4966_v11 = vpop.f32.mrf.mxu0  ;;  %v1731_v27 = vsel %vm4850_vm7, %v4873_v14, 0.0  ;;  %v3123_v44 = vld [vmem:[%s7073_s4] sm:$0xff] }
  0xef   : > { %2190 = vrot.lane.b32.xlu0 %v4778_v15, %s4569_s29  ;;  %v774_v22 = vadd.f32 %v4721_v33, %v735_v63  ;;  %v4910_v47 = vrot.slane %v804_v30, 7  ;;  %7168 = vst [vmem:[#allocation6_spill] sm:$0xff] %v7167_v57  ;;  %vm4942_vm12 = vcmp.gt.s32.totalorder %v1078_v48, 0  ;;  %v972_v63 = vadd.s32 112, %v4729_v39 }
  0xf0   : > { %v4908_v46 = vrot.slane %v802_v28, 7  ;;  %v627_v7 = vpop.f32.mrf.mxu0  ;;  %v1874_v28 = vrot.slane %v4873_v14, 1  ;;  %v736_v32 = vmul.f32 %v4810_v35, %v4715_v29  ;;  %v1609_v45 = vrot.slane %v4873_v14, 2 }
  0xf1   : > { %v806_v38 = vmax.f32 %v774_v22, 0.0  ;;  %v1092_v4 = vand.u32 15, %v972_v63  ;;  %v4977_v22 = vsel %vm7089_vm1, %v4837_v60, %v4855_v6  ;;  %v737_v60 = vmul.f32 %v4715_v29, %v627_v7  ;;  %v3127_v6 = vld [vmem:[%s7073_s4 + $0x20] sm:$0xf] }
  0xf2   : > { %2539 = vrot.lane.b32.xlu1 %v1798_v42, %s4572_s12  ;;  %v1606_v42 = vsel %vm7083_vm4, %v1603_v3, %v1605_v12  ;;  %7176 = vst [vmem:[#allocation10_spill] sm:$0xff] %v4977_v22  ;;  %4391 = vmatprep.subr.msk.mxu1 %vm7080_vm14, %v3127_v6  ;;  %v1875_v30 = vsel %vm7084_vm3, %v1872_v55, %v1874_v28  ;;  %v1876_v31 = vrot.slane %v4977_v22, 1  ;;  %v3125_v55 = vld [vmem:[%s7073_s4 + $0x10] sm:$0xff]  ;;  %v1611_v48 = vrot.slane %v4977_v22, 2  ;;  %v5149_v3 = vpop.permute.xlu1 %2056 }
  0xf3   : > { %2286 = vrot.lane.b32.xlu0 %v1871_v43, %s4571_s11  ;;  %v1767_v51 = vsel %vm4783_vm5, %v1606_v42, 0.0  ;;  %v4918_v54 = vrot.slane %v806_v38, 7  ;;  %vm4962_vm13 = vcmp.gt.s32.totalorder %v1092_v4, 0  ;;  %4392 = vmatpush3.msk.msra.mxu1 %vm7080_vm14, %v3127_v6  ;;  %v776_v37 = vadd.f32 %v4721_v33, %v737_v60 }
  0xf4   : > { %v1877_v35 = vsel %vm7084_vm3, %v1874_v28, %v1876_v31  ;;  %v775_v38 = vadd.f32 %v4721_v33, %v736_v32  ;;  %v963_v63 = vadd.s32 40, %v4729_v39  ;;  %v974_v4 = vadd.s32 128, %v4729_v39 }
  0xf5   : > { %v4952_v2 = vsel %vm7089_vm1, %v4926_v50, %v4918_v54  ;;  %v1610_v28 = vsel %vm7083_vm4, %v1607_v13, %v1609_v45 }
  0xf6   : > { %2188 = vrot.lane.b32.xlu1 %v1729_v61, %s4569_s29  ;;  %v4940_v61 = vsel %vm7089_vm1, %v4916_v52, %v4910_v47  ;;  %7173 = vst [vmem:[#allocation9_spill] sm:$0xff] %v4952_v2  ;;  %v1029_v60 = vand.u32 15, %v963_v63  ;;  %v1890_v57 = vrot.slane %v4952_v2, 1 }
  0xf7   : > { %1934 = vrot.lane.b32.xlu0 %v1871_v43, %s4568_s24  ;;  %v1015_v43 = vand.u32 15, %v961_v58  ;;  %v4935_v58 = vsel %vm7089_vm1, %v4912_v49, %v4908_v46  ;;  %7170 = vst [vmem:[#allocation8_spill] sm:$0xff] %v4940_v61 }
  0xf8   : > { %7169 = vst [vmem:[#allocation7_spill] sm:$0xff] %v4935_v58  ;;  %vm5051_vm2 = vcmp.lt.s32.totalorder %v1029_v60, 15  ;;  %v965_v60 = vadd.s32 56, %v4729_v39 }
  0xf9   : > { %vm4922_vm10 = vcmp.lt.s32.totalorder %v1015_v43, 15  ;;  %v808_v43 = vmax.f32 %v776_v37, 0.0  ;;  %v1832_v37 = vsel %vm4783_vm5, %v1610_v28, 0.0 }
  0xfa   : > { %2636 = vrot.lane.b32.xlu1 %v1873_v10, %s4573_s15  ;;  %v1698_v0 = vsel %vm4922_vm10, %v1606_v42, 0.0  ;;  %v3124_v42 = vld [vmem:[%s7073_s4 + $0x8] sm:$0xff]  ;;  %v1769_v32 = vsel %vm4922_vm10, %v1610_v28, 0.0 }
  0xfb   : > { %1936 = vrot.lane.b32.xlu0 %v1873_v10, %s4568_s24 }
  0xfe   : > { %2288 = vrot.lane.b32.xlu1 %v1873_v10, %s4571_s11 }
  0xff   : > { %2416 = vrot.lane.b32.xlu0 %v1608_v36, %s4570_s30 }
 0x102   : > { %2764 = vrot.lane.b32.xlu1 %v1608_v36, %s4574_s16 }
 0x103   : > { %2414 = vrot.lane.b32.xlu0 %v1767_v51, %s4570_s30  ;;  %v807_v51 = vmax.f32 %v775_v38, 0.0  ;;  %v1802_v38 = vsel %vm4850_vm7, %v4885_v24, 0.0 }
 0x105   : > { %v5031_v7 = vrot.slane %v807_v51, 7 }
 0x106   : > { %2064 = vrot.lane.b32.xlu1 %v1608_v36, %s4567_s23  ;;  %v3126_v36 = vld [vmem:[%s7073_s4 + $0x18] sm:$0xff] }
 0x107   : > { %2062 = vrot.lane.b32.xlu0 %v1698_v0, %s4567_s23  ;;  %4393 = vmatprep.subr.mxu1 %v3126_v36  ;;  %v5025_v0 = vrot.slane %v808_v43, 7  ;;  %v1733_v43 = vsel %vm4858_vm8, %v4885_v24, 0.0 }
 0x108   : > { %4394 = vmatpush3.msra.mxu1 %v3126_v36  ;;  %v1806_v36 = vsel %vm4888_vm9, %v4940_v61, 0.0 }
 0x109   : > { %4395 = vmatprep.subr.mxu1 %v3125_v55  ;;  %v5041_v6 = vsel %vm7089_vm1, %v5031_v7, %v5025_v0 }
 0x10a   : > { %2543 = vrot.lane.b32.xlu1 %v1800_v17, %s4572_s12  ;;  %4396 = vmatpush3.msra.mxu1 %v3125_v55  ;;  %v1612_v17 = vsel %vm7083_vm4, %v1609_v45, %v1611_v48  ;;  %v1700_v55 = vsel %vm5051_vm2, %v1610_v28, 0.0  ;;  %v1810_v23 = vsel %vm4942_vm12, %v5041_v6, 0.0 }
 0x10b   : > { %2545 = vrot.lane.b32.xlu0 %v4977_v22, %s4572_s12  ;;  %4397 = vmatprep.subr.mxu1 %v3124_v42 }
 0x10c   : > { %4398 = vmatpush3.msra.mxu1 %v3124_v42  ;;  %v5072_v42 = vsel %vm7089_vm1, %v4848_v59, %v4912_v49  ;;  %v738_v49 = vmul.f32 %v4966_v11, %v4715_v29 }
 0x10d   : > { %4399 = vmatprep.subr.mxu1 %v3123_v44  ;;  %7181 = vst [vmem:[#allocation11_spill] sm:$0xff] %v5072_v42  ;;  %v1880_v51 = vrot.slane %v5072_v42, 1  ;;  %v1615_v28 = vrot.slane %v5072_v42, 2 }
 0x10e   : > { %2192 = vrot.lane.b32.xlu1 %v1731_v27, %s4569_s29  ;;  %4400 = vmatpush3.msra.mxu1 %v3123_v44  ;;  %v1106_v27 = vand.u32 15, %v974_v4  ;;  %v1878_v44 = vrot.slane %v4885_v24, 1  ;;  %v777_v4 = vadd.f32 %v4721_v33, %v738_v49  ;;  %v7182_v49 = vmov 0 }
 0x10f   : > { %2194 = vrot.lane.b32.xlu0 %v4977_v22, %s4569_s29 }
 0x110   : > { %vm5043_vm15 = vcmp.gt.s32.totalorder %v1106_v27, 0  ;;  %v1879_v45 = vsel %vm7084_vm3, %v1876_v31, %v1878_v44  ;;  %v809_v11 = vmax.f32 %v777_v4, 0.0  ;;  %v1613_v31 = vrot.slane %v4885_v24, 2 }
 0x112   : > { %2290 = vrot.lane.b32.xlu1 %v1875_v30, %s4571_s11 }
 0x113   : > { %2638 = vrot.lane.b32.xlu0 %v1875_v30, %s4573_s15 }
 0x116   : > { %2640 = vrot.lane.b32.xlu1 %v1877_v35, %s4573_s15 }
 0x117   : > { %1938 = vrot.lane.b32.xlu0 %v1875_v30, %s4568_s24 }
 0x11a   : > { %2292 = vrot.lane.b32.xlu1 %v1877_v35, %s4571_s11 }
 0x11b   : > { %1940 = vrot.lane.b32.xlu0 %v1877_v35, %s4568_s24  ;;  %v5064_v35 = vpop.f32.mrf.mxu1 }
 0x11d   : > { %v637_v16 = vpop.f32.mrf.mxu1 }
 0x11e   : > { %2768 = vrot.lane.b32.xlu1 %v1612_v17, %s4574_s16  ;;  %v739_v59 = vmul.f32 %v4715_v29, %v637_v16 }
 0x11f   : > { %2420 = vrot.lane.b32.xlu0 %v1612_v17, %s4570_s30  ;;  %v4372_v18 = vpop.f32.mrf.mxu1 }
 0x120   : > { %v778_v63 = vadd.f32 %v4721_v33, %v739_v59 }
 0x121   : > { %v5190_v9 = vpop.f32.mrf.mxu1 }
 0x122   : > { %2068 = vrot.lane.b32.xlu1 %v1612_v17, %s4567_s23  ;;  %v1881_v17 = vsel %vm7084_vm3, %v1878_v44, %v1880_v51  ;;  %v810_v27 = vmax.f32 %v778_v63, 0.0  ;;  %v1043_v44 = vand.u32 15, %v965_v60  ;;  %v1735_v60 = vsel %vm4888_vm9, %v4935_v58, 0.0 }
 0x123   : > { %2418 = vrot.lane.b32.xlu0 %v1769_v32, %s4570_s30  ;;  %v5198_v34 = vpop.f32.mrf.mxu1 }
 0x124   : > { %v5101_v32 = vrot.slane %v810_v27, 7  ;;  %vm5128_vm14 = vcmp.lt.s32.totalorder %v1043_v44, 15  ;;  %v1804_v27 = vsel %vm4858_vm8, %v4935_v58, 0.0 }
 0x126   : > { %2766 = vrot.lane.b32.xlu1 %v1832_v37, %s4574_s16  ;;  %v976_v37 = vadd.s32 144, %v4729_v39 }
 0x127   : > { %2066 = vrot.lane.b32.xlu0 %v1700_v55, %s4567_s23  ;;  %v5104_v55 = vrot.slane %v809_v11, 7  ;;  %v5144_v11 = vsel %vm7089_vm1, %v4908_v46, %v4916_v52 }
 0x128   : > { %v1120_v16 = vand.u32 15, %v976_v37  ;;  %7187 = vst [vmem:[#allocation13_spill] sm:$0xff] %v5144_v11  ;;  %v1882_v37 = vrot.slane %v4935_v58, 1 }
 0x129   : > { %v5115_v59 = vsel %vm7089_vm1, %v5104_v55, %v5101_v32 }
 0x12a   : > { %2547 = vrot.lane.b32.xlu1 %v1802_v38, %s4572_s12  ;;  %v1616_v38 = vsel %vm7083_vm4, %v1613_v31, %v1615_v28  ;;  %vm5117_vm5 = vcmp.gt.s32.totalorder %v1120_v16, 0  ;;  %v7085_v16 = vrot.slane %v5144_v11, 1 }
 0x12b   : > { %2549 = vrot.lane.b32.xlu0 %v5072_v42, %s4572_s12  ;;  %v7183_v49 = vsel %vm5117_vm5, 4294967295, %v7182_v49  ;;  %vm7115_vm5 = vcmask 293888  }
 0x12c   : > { %7184 = vst [vmem:[#allocation12_spill] sm:$0xff] %v7183_v49 }
 0x12e   : > { %2196 = vrot.lane.b32.xlu1 %v1733_v43, %s4569_s29  ;;  %v1614_v43 = vsel %vm7083_vm4, %v1611_v48, %v1613_v31  ;;  %v1929_v31 = vpop.permute.xlu0 %1928 }
 0x12f   : > { %2198 = vrot.lane.b32.xlu0 %v5072_v42, %s4569_s29  ;;  %v1834_v4 = vsel %vm4922_vm10, %v1614_v43, 0.0 }
 0x132   : > { %2294 = vrot.lane.b32.xlu1 %v1879_v45, %s4571_s11 }
 0x133   : > { %2642 = vrot.lane.b32.xlu0 %v1879_v45, %s4573_s15 }
 0x136   : > { %2644 = vrot.lane.b32.xlu1 %v1881_v17, %s4573_s15 }
 0x137   : > { %1942 = vrot.lane.b32.xlu0 %v1879_v45, %s4568_s24  ;;  %v1771_v45 = vsel %vm5051_vm2, %v1614_v43, 0.0 }
 0x13a   : > { %2296 = vrot.lane.b32.xlu1 %v1881_v17, %s4571_s11 }
 0x13b   : > { %1944 = vrot.lane.b32.xlu0 %v1881_v17, %s4568_s24  ;;  %v1702_v17 = vsel %vm5128_vm14, %v1614_v43, 0.0 }
 0x13e   : > { %2772 = vrot.lane.b32.xlu1 %v1616_v38, %s4574_s16 }
 0x13f   : > { %2424 = vrot.lane.b32.xlu0 %v1616_v38, %s4570_s30 }
 0x142   : > { %2072 = vrot.lane.b32.xlu1 %v1616_v38, %s4567_s23  ;;  %v1883_v38 = vsel %vm7084_vm3, %v1880_v51, %v1882_v37 }
 0x143   : > { %2422 = vrot.lane.b32.xlu0 %v1771_v45, %s4570_s30  ;;  %v1885_v45 = vsel %vm7084_vm3, %v1882_v37, %v7085_v16  ;;  %vm7094_vm3 = vcmask 97280  }
 0x146   : > { %2770 = vrot.lane.b32.xlu1 %v1834_v4, %s4574_s16 }
 0x147   : > { %2070 = vrot.lane.b32.xlu0 %v1702_v17, %s4567_s23  ;;  %v1617_v17 = vrot.slane %v4935_v58, 2  ;;  %v980_v58 = vadd.s32 176, %v4729_v39 }
 0x149   : > { %v1618_v13 = vsel %vm7083_vm4, %v1615_v28, %v1617_v17 }
 0x14a   : > { %2551 = vrot.lane.b32.xlu1 %v1804_v27, %s4572_s12  ;;  %v7082_v27 = vrot.slane %v5144_v11, 2  ;;  %v1773_v41 = vsel %vm5128_vm14, %v1618_v13, 0.0 }
 0x14b   : > { %2553 = vrot.lane.b32.xlu0 %v5144_v11, %s4572_s12 }
 0x14e   : > { %2200 = vrot.lane.b32.xlu1 %v1735_v60, %s4569_s29  ;;  %v967_v60 = vadd.s32 72, %v4729_v39 }
 0x14f   : > { %2202 = vrot.lane.b32.xlu0 %v5144_v11, %s4569_s29 }
 0x150   : > { %v5158_v46 = vpop.permute.xlu1 %2186  ;;  %v1057_v12 = vand.u32 15, %v967_v60  ;;  %v1836_v60 = vsel %vm5051_vm2, %v1618_v13, 0.0  ;;  %vm7093_vm2 = vcmask 64512  }
 0x151   : > { %v2185_v52 = vpop.permute.xlu0 %2184 }
 0x152   : > { %2298 = vrot.lane.b32.xlu1 %v1883_v38, %s4571_s11  ;;  %vm5202_vm10 = vcmp.lt.s32.totalorder %v1057_v12, 15 }
 0x153   : > { %2646 = vrot.lane.b32.xlu0 %v1883_v38, %s4573_s15  ;;  %v1704_v40 = vsel %vm5202_vm10, %v1618_v13, 0.0  ;;  %v5225_v13 = vsel %vm7089_vm1, %v4910_v47, %v4926_v50  ;;  %v1737_v50 = vsel %vm4928_vm11, %v4940_v61, 0.0  ;;  %vm7116_vm1 = vcmask 195584  }
 0x154   : > { %v5164_v43 = vpop.permute.xlu1 %1932 }
 0x155   : > { %v5166_v44 = vpop.permute.xlu0 %1930 }
 0x156   : > { %2648 = vrot.lane.b32.xlu1 %v1885_v45, %s4573_s15 }
 0x157   : > { %1946 = vrot.lane.b32.xlu0 %v1883_v38, %s4568_s24  ;;  %v1620_v38 = vsel %vm7083_vm4, %v1617_v17, %v7082_v27  ;;  %v657_v27 = vpop.f32.mrf.mxu1  ;;  %vm7088_vm4 = vcmask 31744  }
 0x158   : > { %v5173_v4 = vpop.permute.xlu1 %2412 }
 0x159   : > { %v2285_v51 = vpop.permute.xlu0 %2284 }
 0x15a   : > { %2300 = vrot.lane.b32.xlu1 %v1885_v45, %s4571_s11 }
 0x15b   : > { %1948 = vrot.lane.b32.xlu0 %v1885_v45, %s4568_s24 }
 0x15c   : > { %v5180_v63 = vpop.permute.xlu1 %2060 }
 0x15d   : > { %v5182_v37 = vpop.permute.xlu0 %2541 }
 0x15e   : > { %2776 = vrot.lane.b32.xlu1 %v1620_v38, %s4574_s16 }
 0x15f   : > { %2428 = vrot.lane.b32.xlu0 %v1620_v38, %s4570_s30 }
 0x160   : > { %v5192_v45 = vpop.permute.xlu1 %2058 }
 0x161   : > { %v5194_v5 = vpop.permute.xlu0 %2190 }
 0x162   : > { %2076 = vrot.lane.b32.xlu1 %v1620_v38, %s4567_s23  ;;  %v743_v38 = vmul.f32 %v4715_v29, %v657_v27 }
 0x163   : > { %2426 = vrot.lane.b32.xlu0 %v1773_v41, %s4570_s30 }
 0x164   : > { %v2540_v28 = vpop.permute.xlu1 %2539  ;;  %v782_v19 = vadd.f32 %v4721_v33, %v743_v38 }
 0x165   : > { %v5206_v17 = vpop.permute.xlu0 %2286 }
 0x166   : > { %2774 = vrot.lane.b32.xlu1 %v1836_v60, %s4574_s16  ;;  %v2861_v60 = vsel %vm7088_vm4, 0.0, %v1929_v31  ;;  %v1886_v31 = vrot.slane %v4940_v61, 1  ;;  %vm7118_vm4 = vcmask 162816   ;;  %v814_v20 = vmax.f32 %v782_v19, 0.0 }
 0x167   : > { %2074 = vrot.lane.b32.xlu0 %v1704_v40, %s4567_s23  ;;  %v742_v40 = vmul.f32 %v4372_v18, %v4715_v29  ;;  %v2894_v47 = vsel %vm7093_vm2, %v2861_v60, %v5149_v3  ;;  %vm7102_vm2 = vcmask 228352  }
 0x168   : > { %v5214_v41 = vpop.permute.xlu1 %2188 }
 0x169   : > { %v5216_v12 = vpop.permute.xlu0 %1934  ;;  %v781_v18 = vadd.f32 %v4721_v33, %v742_v40 }
 0x16a   : > { %2555 = vrot.lane.b32.xlu1 %v1806_v36, %s4572_s12  ;;  %v2927_v36 = vsel %vm7094_vm3, %v2894_v47, %v2185_v52  ;;  %v7190_v52 = vrot.slane %v5144_v11, 1  ;;  %vm7191_vm3 = vcmask 1046528  }
 0x16b   : > { %2557 = vrot.lane.b32.xlu0 %v5225_v13, %s4572_s12  ;;  %v2959_v38 = vsel %vm7095_vm0, %v2927_v36, %v2285_v51  ;;  %vm7103_vm0 = vcmask 261120   ;;  %v813_v51 = vmax.f32 %v781_v18, 0.0 }
 0x16c   : > { %v2637_v27 = vpop.permute.xlu1 %2636  ;;  %v1887_v47 = vsel %vm7191_vm3, %v7190_v52, %v1886_v31  ;;  %v2992_v40 = vsel %vm7118_vm4, %v2959_v38, %v5173_v4  ;;  %v5264_v52 = vrot.slane %v814_v20, 7  ;;  %v7193_v4 = vrot.slane %v5225_v13, 1 }
 0x16d   : > { %v5232_v16 = vpop.permute.xlu0 %1936  ;;  %v3025_v19 = vsel %vm7116_vm1, %v2992_v40, %v2540_v28  ;;  %v5272_v28 = vrot.slane %v813_v51, 7  ;;  %vm7211_vm1 = vcmask 97280   ;;  %vm7212_vm4 = vcmask 130048  }
 0x16e   : > { %2204 = vrot.lane.b32.xlu1 %v1737_v50, %s4569_s29  ;;  %v3058_v36 = vsel %vm7102_vm2, %v3025_v19, %v2637_v27  ;;  %7192 = vst [vmem:[#allocation14_spill] sm:$0xff] %v5264_v52  ;;  %v1148_v50 = vand.u32 15, %v980_v58  ;;  %v1889_v38 = vsel %vm7191_vm3, %v1886_v31, %v7193_v4  ;;  %vm7195_vm2 = vcmask 1040384  }
 0x16f   : > { %2206 = vrot.lane.b32.xlu0 %v5225_v13, %s4569_s29  ;;  %7194 = vst [vmem:[#allocation15_spill] sm:$0xff] %v5272_v28  ;;  %v5282_v20 = vsel %vm7195_vm2, %v5272_v28, %v5264_v52  ;;  %v7197_v58 = vmov 0  ;;  %v969_v31 = vadd.s32 88, %v4729_v39  ;;  %vm7200_vm2 = vcmask 1045504  }
 0x170   : > { %v5247_v3 = vpop.permute.xlu1 %2288  ;;  %7196 = vst [vmem:[#allocation16_spill] sm:$0xff] %v5282_v20  ;;  %v7201_v19 = vrot.slane %v5144_v11, 2  ;;  %vm7202_vm3 = vmmov %vm7200_vm2  ;;  %v1808_v20 = vsel %vm4928_vm11, %v4952_v2, 0.0  ;;  %v982_v28 = vadd.s32 192, %v4729_v39 }
 0x171   : > { %v5249_v60 = vpop.permute.xlu0 %2416  ;;  %v1071_v4 = vand.u32 15, %v969_v31 }
 0x172   : > { %2302 = vrot.lane.b32.xlu1 %v1887_v47, %s4571_s11 }
 0x173   : > { %2650 = vrot.lane.b32.xlu0 %v1887_v47, %s4573_s15 }
 0x174   : > { %v2765_v42 = vpop.permute.xlu1 %2764 }
 0x175   : > { %v5262_v49 = vpop.permute.xlu0 %2414  ;;  %v3091_v24 = vsel %vm7103_vm0, %v3058_v36, %v2765_v42  ;;  %vm5284_vm0 = vcmp.gt.s32.totalorder %v1148_v50, 0  ;;  %v7105_v42 = vrot.slane %v5225_v13, 2 }
 0x176   : > { %4401 = vmatprep.mubr.msk.f32.mxu1 %vm7115_vm5, %v3091_v24  ;;  %2652 = vrot.lane.b32.xlu1 %v1889_v38, %s4573_s15  ;;  %v7198_v58 = vsel %vm5284_vm0, 4294967295, %v7197_v58  ;;  %v1621_v24 = vrot.slane %v4940_v61, 2  ;;  %v5312_v61 = vpop.f32.mrf.mxu1  ;;  %vm7210_vm5 = vcmask 1046528  }
 0x177   : > { %1950 = vrot.lane.b32.xlu0 %v1887_v47, %s4568_s24  ;;  %7199 = vst [vmem:[#allocation17_spill] sm:$0xff] %v7198_v58  ;;  %v975_v58 = vadd.s32 136, %v4729_v39 }
 0x178   : > { %v5275_v27 = vpop.permute.xlu1 %2064  ;;  %v1624_v51 = vsel %vm7200_vm2, %v1621_v24, %v7105_v42  ;;  %v1622_v36 = vsel %vm7202_vm3, %v7201_v19, %v1621_v24  ;;  %vm5318_vm2 = vcmp.lt.s32.totalorder %v1071_v4, 15  ;;  %v667_v19 = vpop.f32.mrf.mxu1  ;;  %vm7206_vm3 = vcmask 31744  }
 0x179   : > { %v5277_v18 = vpop.permute.xlu0 %2062  ;;  %v1775_v42 = vsel %vm5202_vm10, %v1622_v36, 0.0  ;;  %v1838_v31 = vsel %vm5128_vm14, %v1622_v36, 0.0  ;;  %v745_v4 = vmul.f32 %v4715_v29, %v667_v19  ;;  %vm7205_vm14 = vcmask 1040384  }
 0x17a   : > { %2304 = vrot.lane.b32.xlu1 %v1889_v38, %s4571_s11  ;;  %v5340_v48 = vsel %vm7205_vm14, %v4918_v54, %v5031_v7  ;;  %v2862_v54 = vsel %vm7206_vm3, 0.0, %v5166_v44  ;;  %vm7207_vm14 = vcmask 64512   ;;  %v7208_v44 = vsel %vm4796_vm6, %v4740_v53, 0.0  ;;  %vm7213_vm6 = vmmov %vm7211_vm1 }
 0x17b   : > { %1952 = vrot.lane.b32.xlu0 %v1889_v38, %s4568_s24 }
 0x17c   : > { %v5296_v40 = vpop.permute.xlu1 %2543 }
 0x17d   : > { %v5298_v50 = vpop.permute.xlu0 %2545 }
 0x17e   : > { %2780 = vrot.lane.b32.xlu1 %v1624_v51, %s4574_s16 }
 0x17f   : > { %2432 = vrot.lane.b32.xlu0 %v1624_v51, %s4570_s30 }
 0x180   : > { %v5308_v38 = vpop.permute.xlu1 %2192 }
 0x181   : > { %v5310_v47 = vpop.permute.xlu0 %2194 }
 0x182   : > { %2080 = vrot.lane.b32.xlu1 %v1624_v51, %s4567_s23  ;;  %v1706_v51 = vsel %vm5318_vm2, %v1622_v36, 0.0  ;;  %v744_v36 = vmul.f32 %v5198_v34, %v4715_v29  ;;  %v2895_v34 = vsel %vm7207_vm14, %v2862_v54, %v5192_v45 }
 0x183   : > { %2430 = vrot.lane.b32.xlu0 %v1775_v42, %s4570_s30 }
 0x184   : > { %v5322_v11 = vpop.permute.xlu1 %2290  ;;  %v783_v29 = vadd.f32 %v4721_v33, %v744_v36  ;;  %v7120_v36 = vrot.slane %v5340_v48, 1 }
 0x185   : > { %v2639_v24 = vpop.permute.xlu0 %2638 }
 0x186   : > { %2778 = vrot.lane.b32.xlu1 %v1838_v31, %s4574_s16  ;;  %v815_v22 = vmax.f32 %v783_v29, 0.0  ;;  %v1162_v29 = vand.u32 15, %v982_v28 }
 0x187   : > { %2078 = vrot.lane.b32.xlu0 %v1706_v51, %s4567_s23  ;;  %v784_v51 = vadd.f32 %v4721_v33, %v745_v4  ;;  %v7209_v33 = vrot.slane %v5225_v13, 1 }
 0x188   : > { %v2641_v52 = vpop.permute.xlu1 %2640 }
 0x189   : > { %v5330_v42 = vpop.permute.xlu0 %1938  ;;  %v816_v26 = vmax.f32 %v784_v51, 0.0  ;;  %v1891_v45 = vsel %vm7210_vm5, %v7209_v33, %v1890_v57  ;;  %v2928_v51 = vsel %vm7211_vm1, %v2895_v34, %v5158_v46  ;;  %vm7214_vm5 = vmmov %vm7212_vm4  ;;  %vm7216_vm1 = vcmask 1046528  }
 0x18a   : > { %2559 = vrot.lane.b32.xlu1 %v1808_v20, %s4572_s12  ;;  %v1739_v20 = vsel %vm4942_vm12, %v4952_v2, 0.0  ;;  %v2960_v53 = vsel %vm7212_vm4, %v2928_v51, %v5206_v17  ;;  %v1893_v17 = vsel %vm7216_vm1, %v1890_v57, %v7120_v36  ;;  %vm5417_vm1 = vcmp.gt.s32.totalorder %v1162_v29, 0 }
 0x18b   : > { %2561 = vrot.lane.b32.xlu0 %v5340_v48, %s4572_s12  ;;  %v5394_v34 = vrot.slane %v816_v26, 7 }
 0x18c   : > { %v5346_v31 = vpop.permute.xlu1 %2292 }
 0x18d   : > { %v5348_v19 = vpop.permute.xlu0 %1940 }
 0x18e   : > { %2208 = vrot.lane.b32.xlu1 %v1739_v20, %s4569_s29  ;;  %v2863_v20 = vsel %vm7206_vm3, %v7208_v44, %v5164_v43  ;;  %vm7215_vm3 = vcmask 162816  }
 0x18f   : > { %2210 = vrot.lane.b32.xlu0 %v5340_v48, %s4569_s29  ;;  %v2896_v54 = vsel %vm7207_vm14, %v2863_v20, %v5180_v63  ;;  %v2993_v63 = vsel %vm7215_vm3, %v2960_v53, %v5262_v49  ;;  %vm7217_vm4 = vmmov %vm7215_vm3  ;;  %vm7218_vm14 = vcmask 195584   ;;  %vm7221_vm3 = vcmask 1040384  }
 0x190   : > { %v2769_v7 = vpop.permute.xlu1 %2768  ;;  %v2929_v25 = vsel %vm7213_vm6, %v2896_v54, %v5214_v41  ;;  %v5400_v41 = vrot.slane %v815_v22, 7  ;;  %v3026_v49 = vsel %vm7218_vm14, %v2993_v63, %v5182_v37  ;;  %vm7219_vm6 = vmmov %vm7218_vm14  ;;  %v7222_v22 = vmov 0 }
 0x191   : > { %v5363_v4 = vpop.permute.xlu0 %2420  ;;  %v2961_v43 = vsel %vm7214_vm5, %v2929_v25, %v5247_v3  ;;  %vm7220_vm5 = vcmask 228352   ;;  %v7223_v22 = vsel %vm5417_vm1, 4294967295, %v7222_v22  ;;  %vm7226_vm14 = vcmask 261120  }
 0x192   : > { %2306 = vrot.lane.b32.xlu1 %v1891_v45, %s4571_s11  ;;  %v2994_v3 = vsel %vm7217_vm4, %v2961_v43, %v5249_v60  ;;  %v3059_v28 = vsel %vm7220_vm5, %v3026_v49, %v2639_v24  ;;  %v5415_v57 = vsel %vm7221_vm3, %v5400_v41, %v5394_v34  ;;  %7224 = vst [vmem:[#allocation18_spill] sm:$0xff] %v7223_v22  ;;  %vm7225_vm4 = vmmov %vm7220_vm5  ;;  %v7119_v24 = vrot.slane %v5340_v48, 2 }
 0x193   : > { %2654 = vrot.lane.b32.xlu0 %v1891_v45, %s4573_s15  ;;  %v3027_v26 = vsel %vm7219_vm6, %v2994_v3, %v5296_v40  ;;  %v1625_v40 = vrot.slane %v4952_v2, 2  ;;  %vm7227_vm6 = vmmov %vm7226_vm14  ;;  %vm7228_vm5 = vcmask 293888   ;;  %v971_v54 = vadd.s32 104, %v4729_v39  ;;  %v5450_v3 = vpop.f32.mrf.mxu1 }
 0x194   : > { %v5390_v44 = vpop.permute.xlu1 %2068  ;;  %v3060_v37 = vsel %vm7225_vm4, %v3027_v26, %v2641_v52  ;;  %vm7229_vm3 = vmmov %vm7228_vm5  ;;  %vm7230_vm4 = vcmask 1045504   ;;  %v7231_v25 = vrot.slane %v5225_v13, 2  ;;  %v984_v22 = vadd.s32 208, %v4729_v39 }
 0x195   : > { %v5392_v46 = vpop.permute.xlu0 %2418  ;;  %v1085_v63 = vand.u32 15, %v971_v54  ;;  %v7239_v2 = vrot.slane %v5340_v48, 1  ;;  %v1113_v26 = vand.u32 15, %v975_v58  ;;  %v986_v58 = vadd.s32 224, %v4729_v39 }
 0x196   : > { %2656 = vrot.lane.b32.xlu1 %v1893_v17, %s4573_s15 }
 0x197   : > { %1954 = vrot.lane.b32.xlu0 %v1891_v45, %s4568_s24  ;;  %v3093_v45 = vsel %vm7227_vm6, %v3060_v37, %v2769_v7  ;;  %v1628_v7 = vsel %vm7230_vm4, %v1625_v40, %v7119_v24  ;;  %vm5456_vm6 = vcmp.lt.s32.totalorder %v1085_v63, 15 }
 0x198   : > { %v2767_v20 = vpop.permute.xlu1 %2766 }
 0x199   : > { %v5410_v33 = vpop.permute.xlu0 %2066  ;;  %v3092_v60 = vsel %vm7226_vm14, %v3059_v28, %v2767_v20  ;;  %vm7232_vm14 = vmmov %vm7230_vm4  ;;  %vm7240_vm4 = vcmask 1046528  }
 0x19a   : > { %4402 = vmatmul.mubr.msk.f32.vlgmr.msra.gmra.mxu1 %vm7228_vm5, %v3092_v60  ;;  %2308 = vrot.lane.b32.xlu1 %v1893_v17, %s4571_s11  ;;  %v1626_v43 = vsel %vm7232_vm14, %v7231_v25, %v1625_v40  ;;  %v677_v60 = vpop.f32.mrf.mxu1  ;;  %vm7237_vm5 = vcmask 31744   ;;  %vm7241_vm14 = vcmask 97280  }
 0x19b   : > { %4404 = vmatprep.mubr.msk.f32.mxu1 %vm7229_vm3, %v3093_v45  ;;  %1956 = vrot.lane.b32.xlu0 %v1893_v17, %s4568_s24  ;;  %v1777_v49 = vsel %vm5318_vm2, %v1626_v43, 0.0  ;;  %v1840_v37 = vsel %vm5202_vm10, %v1626_v43, 0.0  ;;  %v1708_v40 = vsel %vm5456_vm6, %v1626_v43, 0.0  ;;  %vm7235_vm10 = vcmask 1040384  }
 0x19c   : > { %v5434_v51 = vpop.permute.xlu1 %2547  ;;  %v5483_v43 = vsel %vm7235_vm10, %v5025_v0, %v5104_v55  ;;  %v1741_v0 = vsel %vm4962_vm13, %v5041_v6, 0.0  ;;  %v2864_v55 = vsel %vm7237_vm5, %v4745_v56, %v5216_v12  ;;  %vm7238_vm3 = vcmask 64512   ;;  %vm7243_vm10 = vmmov %vm7237_vm5 }
 0x19d   : > { %v5436_v53 = vpop.permute.xlu0 %2549  ;;  %7236 = vst [vmem:[#allocation19_spill] sm:$0xff] %v5483_v43  ;;  %v2897_v52 = vsel %vm7238_vm3, %v2864_v55, %v5277_v18  ;;  %v1896_v12 = vrot.slane %v5483_v43, 1  ;;  %vm7244_vm5 = vcmask 130048  }
 0x19e   : > { %2784 = vrot.lane.b32.xlu1 %v1628_v7, %s4574_s16 }
 0x19f   : > { %2436 = vrot.lane.b32.xlu0 %v1628_v7, %s4570_s30 }
 0x1a0   : > { %v5446_v29 = vpop.permute.xlu1 %2196 }
 0x1a1   : > { %v5448_v17 = vpop.permute.xlu0 %2198 }
 0x1a2   : > { %2084 = vrot.lane.b32.xlu1 %v1628_v7, %s4567_s23  ;;  %v5473_v7 = vld [vmem:[%s7071_s2] ss:$0 sm:$0xff] }
 0x1a3   : > { %2434 = vrot.lane.b32.xlu0 %v1777_v49, %s4570_s30  ;;  %v747_v25 = vmul.f32 %v5473_v7, %v677_v60  ;;  %v746_v63 = vmul.f32 %v5473_v7, %v5312_v61  ;;  %v5496_v60 = vld [vmem:[%s7072_s3] ss:$0 sm:$0xff]  ;;  %v1894_v61 = vrot.slane %v5041_v6, 1 }
 0x1a4   : > { %v5460_v28 = vpop.permute.xlu1 %2294 }
 0x1a5   : > { %v2643_v20 = vpop.permute.xlu0 %2642  ;;  %v1895_v56 = vsel %vm7240_vm4, %v7239_v2, %v1894_v61  ;;  %vm7245_vm4 = vcmask 162816  }
 0x1a6   : > { %2782 = vrot.lane.b32.xlu1 %v1840_v37, %s4574_s16 }
 0x1a7   : > { %2082 = vrot.lane.b32.xlu0 %v1708_v40, %s4567_s23  ;;  %v786_v40 = vadd.f32 %v5496_v60, %v747_v25 }
 0x1a8   : > { %v2645_v45 = vpop.permute.xlu1 %2644 }
 0x1a9   : > { %v5468_v54 = vpop.permute.xlu0 %1942  ;;  %v818_v36 = vmax.f32 %v786_v40, 0.0 }
 0x1aa   : > { %2563 = vrot.lane.b32.xlu1 %v1810_v23, %s4572_s12  ;;  %v785_v23 = vadd.f32 %v5496_v60, %v746_v63  ;;  %v2930_v63 = vsel %vm7241_vm14, %v2897_v52, %v5194_v5 }
 0x1ab   : > { %2565 = vrot.lane.b32.xlu0 %v5483_v43, %s4572_s12  ;;  %v2962_v55 = vsel %vm7244_vm5, %v2930_v63, %v5322_v11  ;;  %v5539_v1 = vrot.slane %v818_v36, 7 }
 0x1ac   : > { %v5489_v49 = vpop.permute.xlu1 %2296  ;;  %v817_v18 = vmax.f32 %v785_v23, 0.0  ;;  %v2995_v5 = vsel %vm7245_vm4, %v2962_v55, %v5392_v46 }
 0x1ad   : > { %v5491_v37 = vpop.permute.xlu0 %1944 }
 0x1ae   : > { %2212 = vrot.lane.b32.xlu1 %v1741_v0, %s4569_s29  ;;  %v7242_v0 = vsel %vm4850_vm7, %v4790_v21, 0.0  ;;  %v1176_v21 = vand.u32 15, %v984_v22  ;;  %vm7246_vm7 = vmmov %vm7241_vm14  ;;  %vm7247_vm14 = vcmask 1046528   ;;  %v5548_v46 = vrot.slane %v817_v18, 7 }
 0x1af   : > { %2214 = vrot.lane.b32.xlu0 %v5483_v43, %s4569_s29  ;;  %v2865_v40 = vsel %vm7243_vm10, %v7242_v0, %v5232_v16  ;;  %v1897_v11 = vsel %vm7247_vm14, %v1894_v61, %v1896_v12  ;;  %vm7248_vm10 = vmmov %vm7244_vm5  ;;  %vm7253_vm14 = vcmask 1040384  }
 0x1b0   : > { %v2773_v25 = vpop.permute.xlu1 %2772  ;;  %v2898_v2 = vsel %vm7238_vm3, %v2865_v40, %v5275_v27  ;;  %v7126_v27 = vrot.slane %v5115_v59, 1  ;;  %vm7249_vm5 = vmmov %vm7245_vm4  ;;  %vm7250_vm3 = vcmask 195584   ;;  %v5563_v18 = vsel %vm7253_vm14, %v5548_v46, %v5539_v1 }
 0x1b1   : > { %v5512_v24 = vpop.permute.xlu0 %2424  ;;  %v2931_v16 = vsel %vm7246_vm7, %v2898_v2, %v5308_v38  ;;  %v3028_v36 = vsel %vm7250_vm3, %v2995_v5, %v5298_v50  ;;  %vm7251_vm4 = vmmov %vm7250_vm3  ;;  %vm7252_vm7 = vcmask 228352   ;;  %vm7258_vm3 = vcmask 261120  }
 0x1b2   : > { %2310 = vrot.lane.b32.xlu1 %v1895_v56, %s4571_s11  ;;  %v2963_v63 = vsel %vm7248_vm10, %v2931_v16, %v5346_v31  ;;  %v3061_v22 = vsel %vm7252_vm7, %v3028_v36, %v2643_v20  ;;  %vm5565_vm10 = vcmp.gt.s32.totalorder %v1176_v21, 0  ;;  %v1631_v20 = vrot.slane %v5483_v43, 2 }
 0x1b3   : > { %2658 = vrot.lane.b32.xlu0 %v1895_v56, %s4573_s15  ;;  %v2996_v0 = vsel %vm7249_vm5, %v2963_v63, %v5363_v4  ;;  %v7254_v4 = vmov 0  ;;  %vm7257_vm5 = vmmov %vm7252_vm7  ;;  %vm7260_vm7 = vcmask 293888   ;;  %vm7261_vm14 = vcmask 1046528  }
 0x1b4   : > { %v5535_v52 = vpop.permute.xlu1 %2072  ;;  %v3029_v38 = vsel %vm7251_vm4, %v2996_v0, %v5434_v51  ;;  %v7255_v4 = vsel %vm5565_vm10, 4294967295, %v7254_v4  ;;  %v1629_v51 = vrot.slane %v5041_v6, 2  ;;  %vm7259_vm4 = vmmov %vm7258_vm3  ;;  %v1899_v55 = vsel %vm7261_vm14, %v1896_v12, %v7126_v27  ;;  %v5600_v0 = vpop.f32.mrf.mxu1 }
 0x1b5   : > { %v5537_v23 = vpop.permute.xlu0 %2422  ;;  %7256 = vst [vmem:[#allocation20_spill] sm:$0xff] %v7255_v4  ;;  %v3062_v50 = vsel %vm7257_vm5, %v3029_v38, %v2645_v45  ;;  %vm7262_vm1 = vmmov %vm7260_vm7  ;;  %vm7263_vm5 = vcmask 1045504   ;;  %v740_v16 = vmul.f32 %v5473_v7, %v5064_v35  ;;  %v973_v63 = vadd.s32 120, %v4729_v39 }
 0x1b6   : > { %2660 = vrot.lane.b32.xlu1 %v1897_v11, %s4573_s15  ;;  %v3095_v40 = vsel %vm7259_vm4, %v3062_v50, %v2773_v25  ;;  %v1632_v25 = vsel %vm7263_vm5, %v1629_v51, %v1631_v20  ;;  %vm7273_vm14 = vcmask 97280  }
 0x1b7   : > { %1958 = vrot.lane.b32.xlu0 %v1895_v56, %s4568_s24  ;;  %v1099_v50 = vand.u32 15, %v973_v63  ;;  %v741_v63 = vmul.f32 %v5473_v7, %v5190_v9 }
 0x1b8   : > { %v2771_v31 = vpop.permute.xlu1 %2770 }
 0x1b9   : > { %v5558_v61 = vpop.permute.xlu0 %2070  ;;  %v3094_v56 = vsel %vm7258_vm3, %v3061_v22, %v2771_v31  ;;  %v7264_v22 = vrot.slane %v5340_v48, 2  ;;  %v7127_v31 = vrot.slane %v5115_v59, 2  ;;  %vm5629_vm4 = vcmp.lt.s32.totalorder %v1099_v50, 15 }
 0x1ba   : > { %4405 = vmatmul.mubr.msk.f32.gmra.mxu1 %vm7260_vm7, %v3094_v56  ;;  %2312 = vrot.lane.b32.xlu1 %v1897_v11, %s4571_s11  ;;  %v687_v56 = vpop.f32.mrf.mxu1  ;;  %vm7270_vm7 = vcmask 64512  }
 0x1bb   : > { %4407 = vmatprep.mubr.msk.f32.mxu1 %vm7262_vm1, %v3095_v40  ;;  %2662 = vrot.lane.b32.xlu0 %v1899_v55, %s4573_s15  ;;  %vm7265_vm1 = vmmov %vm7263_vm5 }
 0x1bc   : > { %v5584_v2 = vpop.permute.xlu1 %2551  ;;  %v1630_v35 = vsel %vm7265_vm1, %v7264_v22, %v1629_v51  ;;  %vm7266_vm3 = vmmov %vm7265_vm1  ;;  %vm7276_vm1 = vcmask 130048  }
 0x1bd   : > { %v5586_v5 = vpop.permute.xlu0 %2553  ;;  %v1634_v51 = vsel %vm7266_vm3, %v1631_v20, %v7127_v31  ;;  %v748_v20 = vmul.f32 %v5473_v7, %v5450_v3  ;;  %v1710_v50 = vsel %vm5629_vm4, %v1630_v35, 0.0  ;;  %v780_v3 = vadd.f32 %v5496_v60, %v741_v63 }
 0x1be   : > { %2788 = vrot.lane.b32.xlu1 %v1632_v25, %s4574_s16  ;;  %vm5678_vm3 = vcmp.lt.s32.totalorder %v1113_v26, 15 }
 0x1bf   : > { %1960 = vrot.lane.b32.xlu0 %v1897_v11, %s4568_s24  ;;  %v779_v11 = vadd.f32 %v5496_v60, %v740_v16  ;;  %v1842_v16 = vsel %vm5318_vm2, %v1630_v35, 0.0  ;;  %vm7269_vm2 = vcmask 31744  }
 0x1c0   : > { %v5591_v21 = vpop.permute.xlu1 %2200  ;;  %v2866_v9 = vsel %vm7269_vm2, %v4778_v15, %v5330_v42  ;;  %v787_v15 = vadd.f32 %v5496_v60, %v748_v20  ;;  %vm7275_vm5 = vmmov %vm7269_vm2 }
 0x1c1   : > { %v5593_v12 = vpop.permute.xlu0 %2202  ;;  %v811_v27 = vmax.f32 %v779_v11, 0.0  ;;  %v2899_v43 = vsel %vm7270_vm7, %v2866_v9, %v5410_v33  ;;  %v812_v9 = vmax.f32 %v780_v3, 0.0  ;;  %vm7279_vm2 = vmmov %vm7270_vm7  ;;  %vm7280_vm7 = vcmask 162816  }
 0x1c2   : > { %2314 = vrot.lane.b32.xlu1 %v1899_v55, %s4571_s11  ;;  %v2932_v33 = vsel %vm7273_vm14, %v2899_v43, %v5310_v47 }
 0x1c3   : > { %2440 = vrot.lane.b32.xlu0 %v1632_v25, %s4570_s30  ;;  %v892_v31 = vrot.slane %v811_v27, 7 }
 0x1c4   : > { %v5602_v36 = vpop.permute.xlu1 %2298 }
 0x1c5   : > { %v5604_v38 = vpop.permute.xlu0 %2646 }
 0x1c6   : > { %2088 = vrot.lane.b32.xlu1 %v1632_v25, %s4567_s23  ;;  %v1779_v25 = vsel %vm5456_vm6, %v1630_v35, 0.0  ;;  %v1812_v35 = vsel %vm4962_vm13, %v5115_v59, 0.0 }
 0x1c7   : > { %1962 = vrot.lane.b32.xlu0 %v1899_v55, %s4568_s24  ;;  %v749_v55 = vmul.f32 %v5473_v7, %v687_v56  ;;  %v1844_v56 = vsel %vm5456_vm6, %v1634_v51, 0.0  ;;  %vm7271_vm6 = vcmask 1040384  }
 0x1c8   : > { %v5613_v40 = vpop.permute.xlu1 %2648  ;;  %v5658_v42 = vsel %vm7271_vm6, %v5101_v32, %v892_v31  ;;  %v7274_v32 = vsel %vm4858_vm8, %v4873_v14, 0.0  ;;  %vm7281_vm8 = vmmov %vm7273_vm14 }
 0x1c9   : > { %v5615_v45 = vpop.permute.xlu0 %1946  ;;  %7272 = vst [vmem:[#allocation21_spill] sm:$0xff] %v5658_v42  ;;  %v2867_v20 = vsel %vm7275_vm5, %v7274_v32, %v5348_v19  ;;  %v819_v19 = vmax.f32 %v787_v15, 0.0  ;;  %v1900_v3 = vrot.slane %v5658_v42, 1  ;;  %vm7282_vm6 = vmmov %vm7276_vm1  ;;  %v1190_v15 = vand.u32 15, %v986_v58 }
 0x1ca   : > { %2786 = vrot.lane.b32.xlu1 %v1842_v16, %s4574_s16  ;;  %v2900_v43 = vsel %vm7279_vm2, %v2867_v20, %v5390_v44  ;;  %vm7283_vm14 = vmmov %vm7280_vm7  ;;  %vm7284_vm5 = vcmask 195584   ;;  %vm7286_vm2 = vcmask 228352  }
 0x1cb   : > { %2438 = vrot.lane.b32.xlu0 %v1779_v25, %s4570_s30  ;;  %v788_v25 = vadd.f32 %v5496_v60, %v749_v55  ;;  %v1781_v55 = vsel %vm5629_vm4, %v1634_v51, 0.0  ;;  %v5716_v58 = vrot.slane %v819_v19, 7  ;;  %v5755_v19 = vpop.f32.mrf.mxu1 }
 0x1cc   : > { %v5634_v22 = vpop.permute.xlu1 %2300 }
 0x1cd   : > { %v5636_v16 = vpop.permute.xlu0 %1948  ;;  %v820_v63 = vmax.f32 %v788_v25, 0.0  ;;  %v1743_v25 = vsel %vm5043_vm15, %v5115_v59, 0.0 }
 0x1ce   : > { %2790 = vrot.lane.b32.xlu1 %v1844_v56, %s4574_s16  ;;  %v2964_v56 = vsel %vm7276_vm1, %v2932_v33, %v5460_v28  ;;  %v2933_v28 = vsel %vm7281_vm8, %v2900_v43, %v5446_v29  ;;  %vm7285_vm1 = vmmov %vm7284_vm5  ;;  %vm7288_vm8 = vcmask 261120   ;;  %v1635_v43 = vrot.slane %v5658_v42, 2 }
 0x1cf   : > { %2086 = vrot.lane.b32.xlu0 %v1710_v50, %s4567_s23  ;;  %v2997_v8 = vsel %vm7280_vm7, %v2964_v56, %v5537_v23  ;;  %v2965_v44 = vsel %vm7282_vm6, %v2933_v28, %v5489_v49  ;;  %v1712_v23 = vsel %vm5678_vm3, %v1634_v51, 0.0  ;;  %v5701_v26 = vrot.slane %v820_v63, 7  ;;  %vm7287_vm7 = vmmov %vm7286_vm2 }
 0x1d0   : > { %v2777_v27 = vpop.permute.xlu1 %2776  ;;  %v2998_v29 = vsel %vm7283_vm14, %v2965_v44, %v5512_v24  ;;  %v3030_v33 = vsel %vm7284_vm5, %v2997_v8, %v5436_v53  ;;  %v7289_v53 = vrot.slane %v5115_v59, 1  ;;  %vm7290_vm6 = vcmask 1046528   ;;  %vm7291_vm14 = vmmov %vm7288_vm8 }
 0x1d1   : > { %v5653_v4 = vpop.permute.xlu0 %2428  ;;  %v3031_v49 = vsel %vm7285_vm1, %v2998_v29, %v5584_v2  ;;  %vm7292_vm5 = vcmask 293888   ;;  %vm7293_vm1 = vcmask 1040384   ;;  %v7300_v44 = vrot.slane %v5115_v59, 2 }
 0x1d2   : > { %2567 = vrot.lane.b32.xlu1 %v1812_v35, %s4572_s12  ;;  %v5703_v35 = vrot.slane %v812_v9, 7  ;;  %v3064_v32 = vsel %vm7287_vm7, %v3031_v49, %v5613_v40  ;;  %v1901_v20 = vsel %vm7290_vm6, %v7289_v53, %v1900_v3  ;;  %v5730_v2 = vsel %vm7293_vm1, %v5716_v58, %v5701_v26  ;;  %vm7297_vm7 = vmmov %vm7293_vm1  ;;  %v697_v49 = vpop.f32.mrf.mxu1 }
 0x1d3   : > { %2442 = vrot.lane.b32.xlu0 %v1781_v55, %s4570_s30  ;;  %v3063_v55 = vsel %vm7286_vm2, %v3030_v33, %v5604_v38  ;;  %v3097_v56 = vsel %vm7291_vm14, %v3064_v32, %v2777_v27  ;;  %vm5732_vm2 = vcmp.gt.s32.totalorder %v1190_v15, 0  ;;  %v7294_v38 = vmov 0  ;;  %v3564_v33 = vld [vmem:[%s7076_s7] sm:$0xf] }
 0x1d4   : > { %v5686_v50 = vpop.permute.xlu1 %2076  ;;  %v7295_v38 = vsel %vm5732_vm2, 4294967295, %v7294_v38  ;;  %v5738_v40 = vsel %vm7297_vm7, %v892_v31, %v5703_v35  ;;  %vm7301_vm6 = vcmask 1045504   ;;  %vm7302_vm14 = vcmask 1046528  }
 0x1d5   : > { %v5688_v14 = vpop.permute.xlu0 %2426  ;;  %7296 = vst [vmem:[#allocation22_spill] sm:$0xff] %v7295_v38  ;;  %7298 = vst [vmem:[#allocation23_spill] sm:$0xff] %v5738_v40  ;;  %v7132_v31 = vrot.slane %v5738_v40, 1  ;;  %v7131_v29 = vrot.slane %v5738_v40, 2  ;;  %v751_v32 = vmul.f32 %v5473_v7, %v697_v49  ;;  %v750_v53 = vmul.f32 %v5473_v7, %v5600_v0  ;;  %v7306_v7 = vld [vmem:[#allocation10_spill] sm:$0xff] }
 0x1d6   : > { %2216 = vrot.lane.b32.xlu1 %v1743_v25, %s4569_s29  ;;  %vm7305_vm7 = vmmov %vm7301_vm6  ;;  %vm7336_vm2 = vcmask 261120  }
 0x1d7   : > { %2090 = vrot.lane.b32.xlu0 %v1712_v23, %s4567_s23  ;;  %v1636_v23 = vsel %vm7301_vm6, %v7300_v44, %v1635_v43  ;;  %v1903_v15 = vsel %vm7302_vm14, %v1900_v3, %v7132_v31  ;;  %v1638_v3 = vsel %vm7305_vm7, %v1635_v43, %v7131_v29  ;;  %v977_v43 = vadd.s32 152, %v4729_v39 }
 0x1d8   : > { %v2775_v51 = vpop.permute.xlu1 %2774  ;;  %v1846_v44 = vsel %vm5629_vm4, %v1638_v3, 0.0  ;;  %vm7308_vm4 = vcmask 64512   ;;  %vm7310_vm6 = vcmask 1040384   ;;  %vm7312_vm14 = vcmask 97280  }
 0x1d9   : > { %v5714_v63 = vpop.permute.xlu0 %2074  ;;  %v3096_v24 = vsel %vm7288_vm8, %v3063_v55, %v2775_v51  ;;  %vm7299_vm8 = vmmov %vm7292_vm5 }
 0x1da   : > { %4408 = vmatmul.mubr.msk.f32.gmra.mxu1 %vm7292_vm5, %v3096_v24  ;;  %2664 = vrot.lane.b32.xlu1 %v1901_v20, %s4573_s15  ;;  %vm7303_vm5 = vcmask 1043456  }
 0x1db   : > { %4410 = vmatprep.mubr.msk.f32.mxu1 %vm7299_vm8, %v3097_v56  ;;  %2569 = vrot.lane.b32.xlu0 %v5658_v42, %s4572_s12  ;;  %vm7304_vm1 = vmmov %vm7303_vm5  ;;  %vm7307_vm8 = vcmask 31744  }
 0x1dc   : > { %v5743_v27 = vpop.permute.xlu1 %2555  ;;  %4449 = vmatprep.subr.msk.mxu0 %vm7303_vm5, %v3564_v33  ;;  %v2868_v0 = vsel %vm7307_vm8, %v7306_v7, %v5468_v54  ;;  %v1814_v54 = vsel %vm5043_vm15, %v5738_v40, 0.0  ;;  %vm7317_vm5 = vmmov %vm7307_vm8 }
 0x1dd   : > { %v5745_v9 = vpop.permute.xlu0 %2557  ;;  %4450 = vmatpush3.msk.msra.mxu0 %vm7304_vm1, %v3564_v33  ;;  %v790_v33 = vadd.f32 %v5496_v60, %v751_v32  ;;  %v2901_v32 = vsel %vm7308_vm4, %v2868_v0, %v5558_v61  ;;  %vm7318_vm1 = vcmask 130048   ;;  %vm7321_vm8 = vmmov %vm7308_vm4  ;;  %vm7322_vm4 = vcmask 162816  }
 0x1de   : > { %2316 = vrot.lane.b32.xlu1 %v1901_v20, %s4571_s11  ;;  %v2934_v61 = vsel %vm7312_vm14, %v2901_v32, %v5448_v17 }
 0x1df   : > { %2218 = vrot.lane.b32.xlu0 %v5658_v42, %s4569_s29  ;;  %v822_v11 = vmax.f32 %v790_v33, 0.0  ;;  %v988_v42 = vadd.s32 240, %v4729_v39  ;;  %v2966_v0 = vsel %vm7318_vm1, %v2934_v61, %v5602_v36 }
 0x1e0   : > { %v5757_v28 = vpop.permute.xlu1 %2204 }
 0x1e1   : > { %v5759_v25 = vpop.permute.xlu0 %2206  ;;  %v1204_v33 = vand.u32 15, %v988_v42  ;;  %v2999_v42 = vsel %vm7322_vm4, %v2966_v0, %v5688_v14  ;;  %v7337_v0 = vrot.slane %v5738_v40, 1 }
 0x1e2   : > { %2792 = vrot.lane.b32.xlu1 %v1636_v23, %s4574_s16 }
 0x1e3   : > { %2666 = vrot.lane.b32.xlu0 %v1903_v15, %s4573_s15 }
 0x1e4   : > { %v5774_v55 = vpop.permute.xlu1 %2302 }
 0x1e5   : > { %v2651_v51 = vpop.permute.xlu0 %2650 }
 0x1e6   : > { %2318 = vrot.lane.b32.xlu1 %v1903_v15, %s4571_s11 }
 0x1e7   : > { %1964 = vrot.lane.b32.xlu0 %v1901_v20, %s4568_s24  ;;  %v789_v20 = vadd.f32 %v5496_v60, %v750_v53  ;;  %v7309_v60 = vld [vmem:[#allocation15_spill] sm:$0xff] }
 0x1e8   : > { %v2653_v24 = vpop.permute.xlu1 %2652  ;;  %v5809_v53 = vsel %vm7310_vm6, %v5703_v35, %v7309_v60 }
 0x1e9   : > { %v5785_v56 = vpop.permute.xlu0 %1950  ;;  %v821_v31 = vmax.f32 %v789_v20, 0.0  ;;  %7311 = vst [vmem:[#allocation10_spill] sm:$0xff] %v5809_v53  ;;  %v1904_v61 = vrot.slane %v5809_v53, 1 }
 0x1ea   : > { %2794 = vrot.lane.b32.xlu1 %v1846_v44, %s4574_s16  ;;  %v1127_v44 = vand.u32 15, %v977_v43  ;;  %v7315_v43 = vld [vmem:[#allocation4_spill] sm:$0xff] }
 0x1eb   : > { %2444 = vrot.lane.b32.xlu0 %v1636_v23, %s4570_s30  ;;  %v7316_v20 = vsel %vm4888_vm9, %v7315_v43, 0.0  ;;  %v5842_v60 = vrot.slane %v821_v31, 7  ;;  %vm7323_vm9 = vmmov %vm7312_vm14  ;;  %v7328_v31 = vmov 0 }
 0x1ec   : > { %v5793_v49 = vpop.permute.xlu1 %2304  ;;  %v2869_v7 = vsel %vm7317_vm5, %v7316_v20, %v5491_v37  ;;  %vm5832_vm7 = vcmp.lt.s32.totalorder %v1127_v44, 15  ;;  %v7324_v44 = vld [vmem:[#allocation12_spill] sm:$0xff]  ;;  %vm7326_vm14 = vmmov %vm7318_vm1  ;;  %vm7327_vm5 = vcmask 1040384   ;;  %vm5862_vm1 = vcmp.gt.s32.totalorder %v1204_v33, 0 }
 0x1ed   : > { %v5796_v8 = vpop.permute.xlu0 %1952  ;;  %vm7325_vm6 = vnez %v7324_v44  ;;  %v1714_v14 = vsel %vm5832_vm7, %v1638_v3, 0.0  ;;  %v7329_v31 = vsel %vm5862_vm1, 4294967295, %v7328_v31  ;;  %vm7372_vm1 = vcmask 1046528  }
 0x1ee   : > { %2092 = vrot.lane.b32.xlu1 %v1636_v23, %s4567_s23  ;;  %v1783_v23 = vsel %vm5678_vm3, %v1638_v3, 0.0  ;;  %7330 = vst [vmem:[#allocation5_spill] sm:$0xff] %v7329_v31 }
 0x1ef   : > { %1966 = vrot.lane.b32.xlu0 %v1903_v15, %s4568_s24  ;;  %v5821_v15 = vrot.slane %v822_v11, 7  ;;  %v2902_v11 = vsel %vm7321_vm8, %v2869_v7, %v5535_v52  ;;  %vm7331_vm8 = vmmov %vm7322_vm4  ;;  %vm7332_vm4 = vcmask 195584  }
 0x1f0   : > { %v2781_v29 = vpop.permute.xlu1 %2780  ;;  %v2935_v37 = vsel %vm7323_vm9, %v2902_v11, %v5591_v21  ;;  %vm7333_vm9 = vmmov %vm7332_vm4 }
 0x1f1   : > { %v5811_v38 = vpop.permute.xlu0 %2432  ;;  %7313 = vst [vmem:[#allocation15_spill] sm:$0xff] %v5821_v15  ;;  %v2967_v52 = vsel %vm7326_vm14, %v2935_v37, %v5634_v22  ;;  %v5860_v21 = vsel %vm7327_vm5, %v5842_v60, %v5821_v15  ;;  %v3032_v22 = vsel %vm7332_vm4, %v2999_v42, %v5586_v5  ;;  %vm7334_vm14 = vcmask 228352   ;;  %vm7339_vm4 = vmmov %vm7336_vm2  ;;  %v7342_v42 = vld [vmem:[#allocation16_spill] sm:$0xff]  ;;  %v7350_v15 = vld [vmem:[#allocation14_spill] sm:$0xff] }
 0x1f2   : > { %2571 = vrot.lane.b32.xlu1 %v1814_v54, %s4572_s12  ;;  %v1745_v54 = vsel %vm7325_vm6, %v5738_v40, 0.0  ;;  %v3065_v35 = vsel %vm7334_vm14, %v3032_v22, %v2651_v51  ;;  %vm7335_vm5 = vmmov %vm7334_vm14  ;;  %v1906_v37 = vrot.slane %v7342_v42, 1  ;;  %v7138_v22 = vrot.slane %v7342_v42, 2 }
 0x1f3   : > { %2446 = vrot.lane.b32.xlu0 %v1783_v23, %s4570_s30  ;;  %v3000_v23 = vsel %vm7331_vm8, %v2967_v52, %v5653_v4  ;;  %vm7338_vm8 = vcmask 1046528   ;;  %v7343_v52 = vrot.slane %v5738_v40, 2  ;;  %v1816_v40 = vsel %vm7325_vm6, %v7342_v42, 0.0 }
 0x1f4   : > { %v5840_v32 = vpop.permute.xlu1 %2080  ;;  %v3033_v3 = vsel %vm7333_vm9, %v3000_v23, %v5743_v27  ;;  %v1905_v4 = vsel %vm7338_vm8, %v7337_v0, %v1904_v61  ;;  %vm7340_vm9 = vcmask 293888   ;;  %v979_v0 = vadd.s32 168, %v4729_v39 }
 0x1f5   : > { %v5846_v36 = vpop.permute.xlu0 %2430  ;;  %v3066_v20 = vsel %vm7335_vm5, %v3033_v3, %v2653_v24  ;;  %vm7341_vm14 = vmmov %vm7340_vm9  ;;  %v1639_v24 = vrot.slane %v5809_v53, 2 }
 0x1f6   : > { %2220 = vrot.lane.b32.xlu1 %v1745_v54, %s4569_s29  ;;  %v3099_v11 = vsel %vm7339_vm4, %v3066_v20, %v2781_v29  ;;  %vm7345_vm5 = vmmov %vm7338_vm8  ;;  %vm7348_vm4 = vcmask 31744  }
 0x1f7   : > { %2094 = vrot.lane.b32.xlu0 %v1714_v14, %s4567_s23  ;;  %v1907_v23 = vsel %vm7345_vm5, %v1904_v61, %v1906_v37  ;;  %vm7357_vm5 = vcmask 130048  }
 0x1f8   : > { %v2779_v43 = vpop.permute.xlu1 %2778 }
 0x1f9   : > { %v3098_v33 = vsel %vm7336_vm2, %v3065_v35, %v2779_v43  ;;  %v5876_v7 = vpop.permute.xlu0 %2078  ;;  %vm7344_vm2 = vcmask 1045504  }
 0x1fa   : > { %4411 = vmatmul.mubr.msk.f32.gmra.mxu1 %vm7340_vm9, %v3098_v33  ;;  %2668 = vrot.lane.b32.xlu1 %v1905_v4, %s4573_s15  ;;  %v1640_v14 = vsel %vm7344_vm2, %v7343_v52, %v1639_v24  ;;  %vm7346_vm8 = vmmov %vm7344_vm2  ;;  %v978_v52 = vadd.s32 160, %v4729_v39  ;;  %vm7351_vm9 = vcmask 1040384  }
 0x1fb   : > { %4413 = vmatprep.mubr.msk.f32.mxu1 %vm7341_vm14, %v3099_v11  ;;  %2573 = vrot.lane.b32.xlu0 %v5809_v53, %s4572_s12  ;;  %v1642_v43 = vsel %vm7346_vm8, %v1639_v24, %v7138_v22  ;;  %vm7352_vm14 = vcmask 97280   ;;  %vm7356_vm2 = vmmov %vm7348_vm4 }
 0x1fc   : > { %v2560_v27 = vpop.permute.xlu1 %2559  ;;  %v1848_v61 = vsel %vm5678_vm3, %v1642_v43, 0.0  ;;  %vm7349_vm3 = vcmask 64512  }
 0x1fd   : > { %v5890_v51 = vpop.permute.xlu0 %2561 }
 0x1fe   : > { %2320 = vrot.lane.b32.xlu1 %v1905_v4, %s4571_s11 }
 0x1ff   : > { %2222 = vrot.lane.b32.xlu0 %v5809_v53, %s4569_s29  ;;  %v1134_v53 = vand.u32 15, %v978_v52 }
 0x200   : > { %v5897_v29 = vpop.permute.xlu1 %2208 }
 0x201   : > { %v5899_v54 = vpop.permute.xlu0 %2210 }
 0x202   : > { %2796 = vrot.lane.b32.xlu1 %v1640_v14, %s4574_s16 }
 0x203   : > { %2670 = vrot.lane.b32.xlu0 %v1907_v23, %s4573_s15 }
 0x204   : > { %v5908_v3 = vpop.permute.xlu1 %2306 }
 0x205   : > { %v2655_v35 = vpop.permute.xlu0 %2654 }
 0x206   : > { %2322 = vrot.lane.b32.xlu1 %v1907_v23, %s4571_s11 }
 0x207   : > { %1968 = vrot.lane.b32.xlu0 %v1905_v4, %s4568_s24  ;;  %v7347_v4 = vld [vmem:[#allocation11_spill] sm:$0xff] }
 0x208   : > { %v2657_v20 = vpop.permute.xlu1 %2656  ;;  %v2870_v24 = vsel %vm7348_vm4, %v7347_v4, %v5615_v45  ;;  %v5942_v45 = vsel %vm7351_vm9, %v7350_v15, %v5400_v41  ;;  %vm7360_vm4 = vmmov %vm7349_vm3 }
 0x209   : > { %v5915_v33 = vpop.permute.xlu0 %1954  ;;  %v2903_v47 = vsel %vm7349_vm3, %v2870_v24, %v5714_v63  ;;  %v1785_v63 = vsel %vm5832_vm7, %v1642_v43, 0.0  ;;  %vm7361_vm3 = vcmask 162816   ;;  %vm7364_vm9 = vmmov %vm7352_vm14 }
 0x20a   : > { %2798 = vrot.lane.b32.xlu1 %v1848_v61, %s4574_s16  ;;  %v1141_v61 = vand.u32 15, %v979_v0  ;;  %v7354_v0 = vld [vmem:[#allocation7_spill] sm:$0xff] }
 0x20b   : > { %2448 = vrot.lane.b32.xlu0 %v1640_v14, %s4570_s30  ;;  %v7355_v52 = vsel %vm4928_vm11, %v7354_v0, 0.0  ;;  %vm5968_vm11 = vcmp.gt.s32.totalorder %v1134_v53, 0 }
 0x20c   : > { %v5922_v11 = vpop.permute.xlu1 %2308  ;;  %v2871_v4 = vsel %vm7356_vm2, %v7355_v52, %v5636_v16  ;;  %vm5958_vm8 = vcmp.lt.s32.totalorder %v1141_v61, 15  ;;  %v1747_v61 = vsel %vm5968_vm11, %v7342_v42, 0.0  ;;  %vm7366_vm2 = vmmov %vm7361_vm3  ;;  %v1818_v17 = vsel %vm5968_vm11, %v5415_v57, 0.0 }
 0x20d   : > { %v5925_v5 = vpop.permute.xlu0 %1956  ;;  %v1716_v53 = vsel %vm5958_vm8, %v1642_v43, 0.0 }
 0x20e   : > { %2096 = vrot.lane.b32.xlu1 %v1640_v14, %s4567_s23  ;;  %v2936_v14 = vsel %vm7352_vm14, %v2903_v47, %v5593_v12  ;;  %v2904_v12 = vsel %vm7360_vm4, %v2871_v4, %v5686_v50  ;;  %v1908_v50 = vrot.slane %v5942_v45, 1  ;;  %vm7365_vm14 = vmmov %vm7357_vm5 }
 0x20f   : > { %1970 = vrot.lane.b32.xlu0 %v1907_v23, %s4568_s24  ;;  %v2968_v24 = vsel %vm7357_vm5, %v2936_v14, %v5774_v55  ;;  %v2937_v16 = vsel %vm7364_vm9, %v2904_v12, %v5757_v28  ;;  %vm7367_vm5 = vcmask 195584  }
 0x210   : > { %v2785_v22 = vpop.permute.xlu1 %2784  ;;  %vm7368_vm4 = vmmov %vm7367_vm5  ;;  %v1909_v43 = vsel %vm7372_vm1, %v1906_v37, %v1908_v50  ;;  %v1910_v37 = vrot.slane %v5415_v57, 1 }
 0x211   : > { %v5934_v31 = vpop.permute.xlu0 %2436 }
 0x212   : > { %2575 = vrot.lane.b32.xlu1 %v1816_v40, %s4572_s12  ;;  %v3001_v40 = vsel %vm7361_vm3, %v2968_v24, %v5846_v36  ;;  %v2969_v36 = vsel %vm7365_vm14, %v2937_v16, %v5793_v49  ;;  %vm7369_vm3 = vcmask 228352   ;;  %vm7371_vm14 = vcmask 261120  }
 0x213   : > { %2450 = vrot.lane.b32.xlu0 %v1785_v63, %s4570_s30  ;;  %v3002_v14 = vsel %vm7366_vm2, %v2969_v36, %v5811_v38  ;;  %v3034_v28 = vsel %vm7367_vm5, %v3001_v40, %v5745_v9  ;;  %vm7370_vm9 = vmmov %vm7369_vm3  ;;  %vm7374_vm2 = vcmask 293888   ;;  %v1911_v40 = vsel %vm7372_vm1, %v1908_v50, %v1910_v37 }
 0x214   : > { %v5966_v15 = vpop.permute.xlu1 %2084  ;;  %v3035_v63 = vsel %vm7368_vm4, %v3002_v14, %v2560_v27  ;;  %v3067_v23 = vsel %vm7369_vm3, %v3034_v28, %v2655_v35  ;;  %vm7373_vm6 = vmmov %vm7371_vm14  ;;  %v1643_v27 = vrot.slane %v5942_v45, 2  ;;  %v7147_v16 = vrot.slane %v5415_v57, 2 }
 0x215   : > { %v5974_v55 = vpop.permute.xlu0 %2434  ;;  %v3068_v49 = vsel %vm7370_vm9, %v3035_v63, %v2657_v20  ;;  %vm7375_vm5 = vmmov %vm7374_vm2  ;;  %v7376_v20 = vrot.slane %v7342_v42, 2  ;;  %v981_v63 = vadd.s32 184, %v4729_v39  ;;  %vm7381_vm3 = vcmask 1040384  }
 0x216   : > { %2224 = vrot.lane.b32.xlu1 %v1747_v61, %s4569_s29  ;;  %v3101_v24 = vsel %vm7373_vm6, %v3068_v49, %v2785_v22  ;;  %vm7377_vm6 = vcmask 1045504   ;;  %vm7382_vm9 = vcmask 64512  }
 0x217   : > { %2098 = vrot.lane.b32.xlu0 %v1716_v53, %s4567_s23  ;;  %v1644_v12 = vsel %vm7377_vm6, %v7376_v20, %v1643_v27  ;;  %vm7378_vm4 = vmmov %vm7377_vm6  ;;  %v1155_v49 = vand.u32 15, %v981_v63  ;;  %v6048_v20 = vsel %vm7381_vm3, %v5394_v34, %v5548_v46  ;;  %v1749_v46 = vsel %vm5284_vm0, %v5415_v57, 0.0 }
 0x218   : > { %v2783_v0 = vpop.permute.xlu1 %2782  ;;  %v1646_v53 = vsel %vm7378_vm4, %v1643_v27, %v7147_v16  ;;  %vm7390_vm6 = vcmask 130048   ;;  %vm7391_vm1 = vmmov %vm7382_vm9 }
 0x219   : > { %v3100_v52 = vsel %vm7371_vm14, %v3067_v23, %v2783_v0  ;;  %v2083_v4 = vpop.permute.xlu0 %2082  ;;  %v1850_v50 = vsel %vm5832_vm7, %v1646_v53, 0.0  ;;  %vm7380_vm7 = vcmask 31744   ;;  %vm6056_vm14 = vcmp.lt.s32.totalorder %v1155_v49, 15  ;;  %v7387_v49 = vld [vmem:[#allocation8_spill] sm:$0xff]  ;;  %vm7395_vm3 = vmmov %vm7391_vm1 }
 0x21a   : > { %4414 = vmatmul.mubr.msk.f32.gmra.mxu1 %vm7374_vm2, %v3100_v52  ;;  %2672 = vrot.lane.b32.xlu1 %v1909_v43, %s4573_s15  ;;  %vm7386_vm2 = vcmask 97280  }
 0x21b   : > { %4416 = vmatprep.mubr.msk.f32.mxu1 %vm7375_vm5, %v3101_v24  ;;  %2577 = vrot.lane.b32.xlu0 %v5942_v45, %s4572_s12  ;;  %v7379_v24 = vld [vmem:[#allocation13_spill] sm:$0xff]  ;;  %vm7389_vm5 = vmmov %vm7380_vm7 }
 0x21c   : > { %v6001_v38 = vpop.permute.xlu1 %2563  ;;  %v2872_v27 = vsel %vm7380_vm7, %v7379_v24, %v5785_v56  ;;  %vm7392_vm4 = vmmov %vm7389_vm5  ;;  %vm7393_vm7 = vcmask 162816  }
 0x21d   : > { %v6003_v9 = vpop.permute.xlu0 %2565 }
 0x21e   : > { %2324 = vrot.lane.b32.xlu1 %v1909_v43, %s4571_s11 }
 0x21f   : > { %2226 = vrot.lane.b32.xlu0 %v5942_v45, %s4569_s29 }
 0x220   : > { %v6010_v22 = vpop.permute.xlu1 %2212 }
 0x221   : > { %v6012_v35 = vpop.permute.xlu0 %2214 }
 0x222   : > { %2800 = vrot.lane.b32.xlu1 %v1644_v12, %s4574_s16 }
 0x223   : > { %2674 = vrot.lane.b32.xlu0 %v1911_v40, %s4573_s15 }
 0x224   : > { %v2311_v61 = vpop.permute.xlu1 %2310 }
 0x225   : > { %v2659_v36 = vpop.permute.xlu0 %2658 }
 0x226   : > { %2326 = vrot.lane.b32.xlu1 %v1911_v40, %s4571_s11 }
 0x227   : > { %1972 = vrot.lane.b32.xlu0 %v1909_v43, %s4568_s24 }
 0x228   : > { %v2661_v14 = vpop.permute.xlu1 %2660 }
 0x229   : > { %v6026_v28 = vpop.permute.xlu0 %1958 }
 0x22a   : > { %2802 = vrot.lane.b32.xlu1 %v1850_v50, %s4574_s16 }
 0x22b   : > { %2452 = vrot.lane.b32.xlu0 %v1644_v12, %s4570_s30 }
 0x22c   : > { %v6033_v23 = vpop.permute.xlu1 %2312 }
 0x22d   : > { %v2663_v0 = vpop.permute.xlu0 %2662 }
 0x22e   : > { %2100 = vrot.lane.b32.xlu1 %v1644_v12, %s4567_s23  ;;  %v1787_v12 = vsel %vm5958_vm8, %v1646_v53, 0.0 }
 0x22f   : > { %1974 = vrot.lane.b32.xlu0 %v1911_v40, %s4568_s24  ;;  %v2905_v40 = vsel %vm7382_vm9, %v2872_v27, %v5876_v7  ;;  %v1718_v7 = vsel %vm6056_vm14, %v1646_v53, 0.0  ;;  %v7388_v27 = vsel %vm4942_vm12, %v7387_v49, 0.0  ;;  %vm7394_vm12 = vmmov %vm7386_vm2  ;;  %vm7396_vm9 = vcmask 1046528  }
 0x230   : > { %v2789_v52 = vpop.permute.xlu1 %2788  ;;  %v2938_v24 = vsel %vm7386_vm2, %v2905_v40, %v5759_v25  ;;  %v2874_v40 = vsel %vm7392_vm4, %v5225_v13, %v5915_v33  ;;  %vm7397_vm2 = vmmov %vm7390_vm6 }
 0x231   : > { %v6037_v43 = vpop.permute.xlu0 %1960  ;;  %v2970_v16 = vsel %vm7390_vm6, %v2938_v24, %v5908_v3  ;;  %vm7399_vm6 = vcmask 195584   ;;  %vm7401_vm4 = vmmov %vm7394_vm12 }
 0x232   : > { %2579 = vrot.lane.b32.xlu1 %v1818_v17, %s4572_s12  ;;  %v1912_v17 = vrot.slane %v6048_v20, 1  ;;  %v3003_v53 = vsel %vm7393_vm7, %v2970_v16, %v5974_v55 }
 0x233   : > { %2454 = vrot.lane.b32.xlu0 %v1787_v12, %s4570_s30  ;;  %v2873_v12 = vsel %vm7389_vm5, %v7388_v27, %v5796_v8  ;;  %vm7398_vm5 = vmmov %vm7393_vm7  ;;  %v3036_v33 = vsel %vm7399_vm6, %v3003_v53, %v5890_v51  ;;  %vm7402_vm7 = vcmask 228352   ;;  %v1647_v51 = vrot.slane %v6048_v20, 2 }
 0x234   : > { %v6060_v56 = vpop.permute.xlu1 %2314  ;;  %v2906_v25 = vsel %vm7391_vm1, %v2873_v12, %v5840_v32  ;;  %v1913_v24 = vsel %vm7396_vm9, %v1910_v37, %v1912_v17  ;;  %vm7400_vm1 = vmmov %vm7399_vm6  ;;  %vm7405_vm9 = vcmask 261120   ;;  %vm7407_vm6 = vcmask 293888  }
 0x235   : > { %v6062_v63 = vpop.permute.xlu0 %2440  ;;  %v2939_v8 = vsel %vm7394_vm12, %v2906_v25, %v5897_v29  ;;  %vm7403_vm12 = vmmov %vm7397_vm2  ;;  %v7411_v12 = vrot.slane %v5415_v57, 2 }
 0x236   : > { %2228 = vrot.lane.b32.xlu1 %v1749_v46, %s4569_s29  ;;  %v2907_v46 = vsel %vm7395_vm3, %v2874_v40, %v2083_v4  ;;  %v2971_v32 = vsel %vm7397_vm2, %v2939_v8, %v5922_v11  ;;  %v3069_v4 = vsel %vm7402_vm7, %v3036_v33, %v2659_v36  ;;  %vm7404_vm3 = vmmov %vm7402_vm7  ;;  %v1649_v40 = vrot.slane %v5563_v18, 2 }
 0x237   : > { %2102 = vrot.lane.b32.xlu0 %v1718_v7, %s4567_s23  ;;  %v3004_v13 = vsel %vm7398_vm5, %v2971_v32, %v5934_v31  ;;  %v2940_v55 = vsel %vm7401_vm4, %v2907_v46, %v5899_v54  ;;  %vm7406_vm2 = vmmov %vm7405_vm9  ;;  %v1914_v54 = vrot.slane %v5563_v18, 1 }
 0x238   : > { %v6089_v62 = vpop.permute.xlu1 %2088  ;;  %v3037_v29 = vsel %vm7400_vm1, %v3004_v13, %v6001_v38  ;;  %v2972_v37 = vsel %vm7403_vm12, %v2940_v55, %v2311_v61  ;;  %vm7408_vm4 = vmmov %vm7407_vm6  ;;  %v983_v13 = vadd.s32 200, %v4729_v39  ;;  %v7416_v55 = vld [vmem:[#allocation9_spill] sm:$0xff] }
 0x239   : > { %v6094_v3 = vpop.permute.xlu0 %1962  ;;  %v3070_v16 = vsel %vm7404_vm3, %v3037_v29, %v2661_v14  ;;  %vm7409_vm7 = vmmov %vm7404_vm3  ;;  %vm7412_vm3 = vcmask 1045504  }
 0x23a   : > { %2676 = vrot.lane.b32.xlu1 %v1913_v24, %s4573_s15  ;;  %v3103_v49 = vsel %vm7406_vm2, %v3070_v16, %v2789_v52  ;;  %vm7410_vm12 = vmmov %vm7406_vm2  ;;  %v1648_v25 = vsel %vm7412_vm3, %v7411_v12, %v1647_v51  ;;  %vm7414_vm2 = vcmask 1046528  }
 0x23b   : > { %2581 = vrot.lane.b32.xlu0 %v6048_v20, %s4572_s12 }
 0x23c   : > { %v2787_v11 = vpop.permute.xlu1 %2786 }
 0x23d   : > { %v3102_v31 = vsel %vm7405_vm9, %v3069_v4, %v2787_v11  ;;  %v2439_v7 = vpop.permute.xlu0 %2438  ;;  %vm7413_vm9 = vmmov %vm7408_vm4  ;;  %v1169_v11 = vand.u32 15, %v983_v13 }
 0x23e   : > { %v3005_v27 = vsel %vm7398_vm5, %v2972_v37, %v2439_v7  ;;  %2328 = vrot.lane.b32.xlu1 %v1913_v24, %s4571_s11  ;;  %4417 = vmatmul.mubr.msk.f32.gmra.mxu1 %vm7407_vm6, %v3102_v31  ;;  %vm7415_vm5 = vmmov %vm7412_vm3  ;;  %vm7418_vm6 = vcmask 31744   ;;  %vm7425_vm3 = vcmask 162816  }
 0x23f   : > { %v3038_v38 = vsel %vm7400_vm1, %v3005_v27, %v6003_v9  ;;  %4419 = vmatprep.mubr.msk.f32.mxu1 %vm7408_vm4, %v3103_v49  ;;  %2230 = vrot.lane.b32.xlu0 %v6048_v20, %s4569_s29  ;;  %v1915_v9 = vsel %vm7414_vm2, %v1912_v17, %v1914_v54  ;;  %v1650_v8 = vsel %vm7415_vm5, %v1647_v51, %v1649_v40  ;;  %vm7419_vm1 = vcmask 64512   ;;  %vm7421_vm4 = vmmov %vm7418_vm6 }
 0x240   : > { %v2791_v61 = vpop.permute.xlu1 %2790  ;;  %v3071_v36 = vsel %vm7409_vm7, %v3038_v38, %v2663_v0  ;;  %v1852_v17 = vsel %vm5958_vm8, %v1650_v8, 0.0  ;;  %vm7420_vm8 = vcmask 97280   ;;  %v2876_v16 = vsel %vm7421_vm4, %v5340_v48, %v6026_v28  ;;  %vm7423_vm7 = vmmov %vm7419_vm1 }
 0x241   : > { %v3104_v14 = vsel %vm7410_vm12, %v3071_v36, %v2791_v61  ;;  %v2087_v52 = vpop.permute.xlu0 %2086  ;;  %vm7424_vm12 = vcmask 1040384   ;;  %v1789_v28 = vsel %vm6056_vm14, %v1650_v8, 0.0  ;;  %vm6190_vm2 = vcmp.lt.s32.totalorder %v1169_v11, 15  ;;  %vm7429_vm5 = vmmov %vm7420_vm8  ;;  %v7432_v61 = vld [vmem:[#allocation18_spill] sm:$0xff] }
 0x242   : > { %2804 = vrot.lane.b32.xlu1 %v1648_v25, %s4574_s16  ;;  %4420 = vmatmul.mubr.msk.f32.gmra.mxu1 %vm7413_vm9, %v3104_v14  ;;  %v2909_v31 = vsel %vm7423_vm7, %v2876_v16, %v2087_v52  ;;  %vm7426_vm9 = vcmask 195584   ;;  %vm7434_vm4 = vcmask 293888   ;;  %v1720_v52 = vsel %vm6190_vm2, %v1650_v8, 0.0 }
 0x243   : > { %2678 = vrot.lane.b32.xlu0 %v1915_v9, %s4573_s15  ;;  %vm7435_vm7 = vcmask 1046528   ;;  %v1918_v16 = vrot.slane %v5730_v2, 1 }
 0x244   : > { %v2568_v0 = vpop.permute.xlu1 %2567 }
 0x245   : > { %v2443_v53 = vpop.permute.xlu0 %2442 }
 0x246   : > { %2330 = vrot.lane.b32.xlu1 %v1915_v9, %s4571_s11 }
 0x247   : > { %1976 = vrot.lane.b32.xlu0 %v1913_v24, %s4568_s24  ;;  %v7417_v24 = vsel %vm4962_vm13, %v7416_v55, 0.0  ;;  %vm7422_vm13 = vcmask 130048   ;;  %v6230_v55 = vld [vmem:[%s7075_s6] ss:$0 sm:$0xff] }
 0x248   : > { %v6142_v46 = vpop.permute.xlu1 %2216  ;;  %v2875_v4 = vsel %vm7418_vm6, %v7417_v24, %v5925_v5  ;;  %vm7430_vm6 = vcmask 228352  }
 0x249   : > { %v6144_v32 = vpop.permute.xlu0 %2090  ;;  %v2908_v41 = vsel %vm7419_vm1, %v2875_v4, %v5966_v15  ;;  %v1820_v15 = vsel %vm5284_vm0, %v5563_v18, 0.0  ;;  %vm7431_vm1 = vcmask 261120  }
 0x24a   : > { %2806 = vrot.lane.b32.xlu1 %v1852_v17, %s4574_s16  ;;  %v2941_v37 = vsel %vm7420_vm8, %v2908_v41, %v6010_v22  ;;  %v6179_v22 = vsel %vm7424_vm12, %v5539_v1, %v5716_v58  ;;  %v2942_v1 = vsel %vm7429_vm5, %v2909_v31, %v6012_v35  ;;  %vm7433_vm8 = vnez %v7432_v61  ;;  %vm7436_vm12 = vmmov %vm7425_vm3 }
 0x24b   : > { %2456 = vrot.lane.b32.xlu0 %v1648_v25, %s4570_s30  ;;  %v2973_v5 = vsel %vm7422_vm13, %v2941_v37, %v6033_v23  ;;  %v6186_v23 = vpop.f32.mrf.mxu1  ;;  %v1751_v36 = vsel %vm7433_vm8, %v5563_v18, 0.0  ;;  %v1916_v14 = vrot.slane %v6179_v22, 1  ;;  %v2974_v12 = vsel %vm7422_vm13, %v2942_v1, %v6060_v56  ;;  %vm7439_vm5 = vmmov %vm7431_vm1 }
 0x24c   : > { %v2665_v33 = vpop.permute.xlu1 %2664  ;;  %v3006_v48 = vsel %vm7425_vm3, %v2973_v5, %v6062_v63  ;;  %v3007_v17 = vsel %vm7436_vm12, %v2974_v12, %v2443_v53  ;;  %vm7437_vm3 = vmmov %vm7426_vm9  ;;  %vm7443_vm13 = vcmask 31744  }
 0x24d   : > { %v2570_v29 = vpop.permute.xlu0 %2569  ;;  %v3039_v51 = vsel %vm7426_vm9, %v3006_v48, %v2568_v0  ;;  %v6206_v35 = vpop.f32.mrf.mxu1  ;;  %v1917_v8 = vsel %vm7435_vm7, %v1914_v54, %v1916_v14  ;;  %vm7438_vm9 = vmmov %vm7430_vm6 }
 0x24e   : > { %2104 = vrot.lane.b32.xlu1 %v1648_v25, %s4567_s23  ;;  %v3072_v58 = vsel %vm7430_vm6, %v3039_v51, %v2665_v33  ;;  %v3040_v56 = vsel %vm7437_vm3, %v3007_v17, %v2570_v29  ;;  %v1651_v29 = vrot.slane %v6179_v22, 2  ;;  %vm7440_vm6 = vmmov %vm7434_vm4 }
 0x24f   : > { %1978 = vrot.lane.b32.xlu0 %v1915_v9, %s4568_s24  ;;  %v6216_v9 = vld [vmem:[%s7074_s5] ss:$0 sm:$0xff] }
 0x250   : > { %v6166_v10 = vpop.permute.xlu1 %2316 }
 0x251   : > { %v6171_v7 = vpop.permute.xlu0 %2218 }
 0x252   : > { %2583 = vrot.lane.b32.xlu1 %v1820_v15, %s4572_s12 }
 0x253   : > { %2458 = vrot.lane.b32.xlu0 %v1789_v28, %s4570_s30 }
 0x254   : > { %v2793_v63 = vpop.permute.xlu1 %2792 }
 0x255   : > { %v3105_v27 = vsel %vm7431_vm1, %v3072_v58, %v2793_v63  ;;  %v2667_v38 = vpop.permute.xlu0 %2666  ;;  %vm7441_vm1 = vcmask 1045504   ;;  %v1653_v58 = vrot.slane %v5730_v2, 2 }
 0x256   : > { %2232 = vrot.lane.b32.xlu1 %v1751_v36, %s4569_s29  ;;  %4422 = vmatprep.mubr.msk.f32.mxu1 %vm7434_vm4, %v3105_v27  ;;  %v3073_v24 = vsel %vm7438_vm9, %v3040_v56, %v2667_v38  ;;  %v1652_v28 = vsel %vm7441_vm1, %v1649_v40, %v1651_v29  ;;  %vm7442_vm4 = vmmov %vm7435_vm7  ;;  %vm7448_vm9 = vcmask 64512  }
 0x257   : > { %2106 = vrot.lane.b32.xlu0 %v1720_v52, %s4567_s23  ;;  %v1919_v1 = vsel %vm7442_vm4, %v1916_v14, %v1918_v16  ;;  %vm7444_vm7 = vmmov %vm7443_vm13  ;;  %v985_v52 = vadd.s32 216, %v4729_v39 }
 0x258   : > { %v6211_v25 = vpop.permute.xlu1 %2318  ;;  %vm7445_vm12 = vmmov %vm7441_vm1  ;;  %vm7453_vm1 = vcmask 195584  }
 0x259   : > { %v6218_v0 = vpop.permute.xlu0 %1964  ;;  %v1654_v40 = vsel %vm7445_vm12, %v1651_v29, %v1653_v58  ;;  %vm7447_vm3 = vmmov %vm7444_vm7  ;;  %v1183_v56 = vand.u32 15, %v985_v52  ;;  %v1753_v29 = vsel %vm5565_vm10, %v5730_v2, 0.0 }
 0x25a   : > { %v4403_v13 = vpop.f32.mrf.mxu1  ;;  %2680 = vrot.lane.b32.xlu1 %v1917_v8, %s4573_s15  ;;  %v1854_v14 = vsel %vm6056_vm14, %v1654_v40, 0.0  ;;  %vm7449_vm14 = vcmask 97280   ;;  %vm7460_vm12 = vmmov %vm7447_vm3 }
 0x25b   : > { %v3462_v33 = vmul.f32 %v4403_v13, %v6216_v9  ;;  %2585 = vrot.lane.b32.xlu0 %v6179_v22, %s4572_s12  ;;  %vm6304_vm4 = vcmp.lt.s32.totalorder %v1183_v56, 15 }
 0x25c   : > { %v3295_v54 = vpop.f32.mrf.mxu1  ;;  %v2795_v4 = vpop.permute.xlu1 %2794 }
 0x25d   : > { %v3461_v53 = vmul.f32 %v6216_v9, %v3295_v54  ;;  %v3106_v41 = vsel %vm7439_vm5, %v3073_v24, %v2795_v4  ;;  %v2445_v11 = vpop.permute.xlu0 %2444  ;;  %v3501_v37 = vadd.f32 %v6230_v55, %v3462_v33  ;;  %vm7450_vm5 = vcmask 130048  }
 0x25e   : > { %2332 = vrot.lane.b32.xlu1 %v1917_v8, %s4571_s11  ;;  %4423 = vmatmul.mubr.msk.f32.gmra.mxu1 %vm7440_vm6, %v3106_v41  ;;  %vm7452_vm6 = vcmask 162816  }
 0x25f   : > { %v3500_v5 = vadd.f32 %v6230_v55, %v3461_v53  ;;  %2234 = vrot.lane.b32.xlu0 %v6179_v22, %s4569_s29  ;;  %v3533_v51 = vmax.f32 %v3501_v37, 0.0 }
 0x260   : > { %v6245_v31 = vpop.permute.xlu1 %2092 }
 0x261   : > { %v3532_v15 = vmax.f32 %v3500_v5, 0.0  ;;  %v6247_v48 = vpop.permute.xlu0 %1966  ;;  %v7459_v5 = vld [vmem:[#allocation19_spill] sm:$0xff] }
 0x262   : > { %2808 = vrot.lane.b32.xlu1 %v1652_v28, %s4574_s16 }
 0x263   : > { %4451 = vmatprep.mubr.msk.f32.mxu0 %vm7443_vm13, %v3532_v15  ;;  %2682 = vrot.lane.b32.xlu0 %v1919_v1, %s4573_s15  ;;  %vm7456_vm13 = vcmask 228352   ;;  %v2878_v15 = vsel %vm7460_vm12, %v7459_v5, %v6094_v3 }
 0x264   : > { %4452 = vmatmul.mubr.msk.f32.vlgmr.msra.gmra.mxu0 %vm7444_vm7, %v3533_v51  ;;  %v2572_v63 = vpop.permute.xlu1 %2571  ;;  %vm7457_vm7 = vcmask 261120   ;;  %v2911_v51 = vsel %vm7448_vm9, %v2878_v15, %v6144_v32 }
 0x265   : > { %v2447_v27 = vpop.permute.xlu0 %2446 }
 0x266   : > { %2334 = vrot.lane.b32.xlu1 %v1919_v1, %s4571_s11 }
 0x267   : > { %1980 = vrot.lane.b32.xlu0 %v1917_v8, %s4568_s24  ;;  %v7446_v8 = vsel %vm5043_vm15, %v5041_v6, 0.0  ;;  %v1822_v6 = vsel %vm7433_vm8, %v5730_v2, 0.0  ;;  %vm7451_vm15 = vcmask 1040384  }
 0x268   : > { %v6263_v38 = vpop.permute.xlu1 %2220  ;;  %v2877_v13 = vsel %vm7447_vm3, %v7446_v8, %v6037_v43  ;;  %v6296_v43 = vsel %vm7451_vm15, %v5701_v26, %v5842_v60  ;;  %vm7461_vm3 = vcmask 293888   ;;  %vm7462_vm15 = vcmask 1046528  }
 0x269   : > { %v6265_v36 = vpop.permute.xlu0 %2094  ;;  %v2910_v50 = vsel %vm7448_vm9, %v2877_v13, %v6089_v62  ;;  %v1920_v37 = vrot.slane %v6296_v43, 1  ;;  %vm7463_vm12 = vmmov %vm7461_vm3 }
 0x26a   : > { %2810 = vrot.lane.b32.xlu1 %v1854_v14, %s4574_s16  ;;  %v2943_v33 = vsel %vm7449_vm14, %v2910_v50, %v6142_v46  ;;  %v1791_v46 = vsel %vm6190_vm2, %v1654_v40, 0.0  ;;  %vm7465_vm9 = vmmov %vm7462_vm15 }
 0x26b   : > { %2460 = vrot.lane.b32.xlu0 %v1652_v28, %s4570_s30  ;;  %v2975_v30 = vsel %vm7450_vm5, %v2943_v33, %v6166_v10  ;;  %v1921_v52 = vsel %vm7462_vm15, %v1918_v16, %v1920_v37 }
 0x26c   : > { %v2669_v12 = vpop.permute.xlu1 %2668  ;;  %v3008_v62 = vsel %vm7452_vm6, %v2975_v30, %v2445_v11 }
 0x26d   : > { %v2574_v17 = vpop.permute.xlu0 %2573  ;;  %v3041_v10 = vsel %vm7453_vm1, %v3008_v62, %v2572_v63 }
 0x26e   : > { %2108 = vrot.lane.b32.xlu1 %v1652_v28, %s4567_s23  ;;  %v3074_v53 = vsel %vm7456_vm13, %v3041_v10, %v2669_v12  ;;  %v1722_v28 = vsel %vm6304_vm4, %v1654_v40, 0.0 }
 0x26f   : > { %1982 = vrot.lane.b32.xlu0 %v1919_v1, %s4568_s24  ;;  %v2944_v1 = vsel %vm7449_vm14, %v2911_v51, %v6171_v7  ;;  %vm7466_vm14 = vcmask 31744  }
 0x270   : > { %v6284_v24 = vpop.permute.xlu1 %2320  ;;  %v2976_v3 = vsel %vm7450_vm5, %v2944_v1, %v6211_v25  ;;  %vm7467_vm5 = vmmov %vm7466_vm14 }
 0x271   : > { %v6288_v54 = vpop.permute.xlu0 %2222  ;;  %v3009_v12 = vsel %vm7452_vm6, %v2976_v3, %v2447_v27  ;;  %v1655_v27 = vrot.slane %v6296_v43, 2  ;;  %vm7469_vm6 = vnez %v7324_v44 }
 0x272   : > { %2587 = vrot.lane.b32.xlu1 %v1822_v6, %s4572_s12  ;;  %v3042_v32 = vsel %vm7453_vm1, %v3009_v12, %v2574_v17  ;;  %v1922_v17 = vrot.slane %v5860_v21, 1  ;;  %vm7471_vm1 = vmmov %vm7467_vm5 }
 0x273   : > { %2462 = vrot.lane.b32.xlu0 %v1791_v46, %s4570_s30 }
 0x274   : > { %v2797_v41 = vpop.permute.xlu1 %2796 }
 0x275   : > { %v3107_v26 = vsel %vm7457_vm7, %v3074_v53, %v2797_v41  ;;  %v2671_v60 = vpop.permute.xlu0 %2670  ;;  %v6360_v53 = vld [vmem:[%s7071_s2] ss:$0 sm:$0xff] }
 0x276   : > { %2236 = vrot.lane.b32.xlu1 %v1753_v29, %s4569_s29  ;;  %4425 = vmatprep.mubr.msk.f32.mxu1 %vm7461_vm3, %v3107_v26  ;;  %v3075_v7 = vsel %vm7456_vm13, %v3042_v32, %v2671_v60  ;;  %vm7464_vm3 = vcmask 1045504   ;;  %v752_v41 = vmul.f32 %v6360_v53, %v5755_v19  ;;  %v1923_v60 = vsel %vm7465_vm9, %v1920_v37, %v1922_v17  ;;  %v6375_v19 = vld [vmem:[%s7072_s3] ss:$0 sm:$0xff] }
 0x277   : > { %2110 = vrot.lane.b32.xlu0 %v1722_v28, %s4567_s23  ;;  %v1656_v10 = vsel %vm7464_vm3, %v1653_v58, %v1655_v27  ;;  %v1657_v29 = vrot.slane %v5860_v21, 2  ;;  %vm7468_vm15 = vmmov %vm7464_vm3  ;;  %v753_v12 = vmul.f32 %v6360_v53, %v6206_v35  ;;  %vm7473_vm13 = vcmask 97280  }
 0x278   : > { %v6326_v63 = vpop.permute.xlu1 %2322  ;;  %v791_v15 = vadd.f32 %v6375_v19, %v752_v41  ;;  %vm7477_vm3 = vcmask 162816   ;;  %vm7478_vm9 = vcmask 195584  }
 0x279   : > { %v6330_v14 = vpop.permute.xlu0 %1968  ;;  %v1658_v37 = vsel %vm7468_vm15, %v1655_v27, %v1657_v29  ;;  %v7475_v27 = vld [vmem:[#allocation15_spill] sm:$0xff]  ;;  %vm7482_vm15 = vcmask 261120  }
 0x27a   : > { %v4406_v40 = vpop.f32.mrf.mxu1  ;;  %2684 = vrot.lane.b32.xlu1 %v1921_v52, %s4573_s15  ;;  %v1856_v1 = vsel %vm6190_vm2, %v1658_v37, 0.0  ;;  %v823_v3 = vmax.f32 %v791_v15, 0.0  ;;  %vm7472_vm2 = vcmask 64512  }
 0x27b   : > { %v3464_v8 = vmul.f32 %v4406_v40, %v6216_v9  ;;  %2589 = vrot.lane.b32.xlu0 %v6296_v43, %s4572_s12  ;;  %v987_v40 = vadd.s32 232, %v4729_v39 }
 0x27c   : > { %v3305_v13 = vpop.f32.mrf.mxu1  ;;  %v2799_v25 = vpop.permute.xlu1 %2798 }
 0x27d   : > { %v3463_v50 = vmul.f32 %v6216_v9, %v3305_v13  ;;  %v3108_v16 = vsel %vm7457_vm7, %v3075_v7, %v2799_v25  ;;  %v2449_v56 = vpop.permute.xlu0 %2448  ;;  %v3503_v33 = vadd.f32 %v6230_v55, %v3464_v8  ;;  %v7470_v7 = vsel %vm7469_vm6, %v5115_v59, 0.0 }
 0x27e   : > { %2336 = vrot.lane.b32.xlu1 %v1921_v52, %s4571_s11  ;;  %4426 = vmatmul.mubr.msk.f32.gmra.mxu1 %vm7463_vm12, %v3108_v16  ;;  %v2879_v49 = vsel %vm7471_vm1, %v7470_v7, %v6218_v0  ;;  %v792_v13 = vadd.f32 %v6375_v19, %v753_v12  ;;  %v1197_v25 = vand.u32 15, %v987_v40  ;;  %vm7474_vm7 = vcmask 130048  }
 0x27f   : > { %v3502_v30 = vadd.f32 %v6230_v55, %v3463_v50  ;;  %2238 = vrot.lane.b32.xlu0 %v6296_v43, %s4569_s29  ;;  %v3535_v26 = vmax.f32 %v3503_v33, 0.0  ;;  %v2912_v35 = vsel %vm7472_vm2, %v2879_v49, %v6245_v31  ;;  %v1824_v0 = vsel %vm5565_vm10, %v5860_v21, 0.0 }
 0x280   : > { %v6350_v6 = vpop.permute.xlu1 %2096  ;;  %v2945_v50 = vsel %vm7473_vm13, %v2912_v35, %v6263_v38  ;;  %vm7476_vm12 = vcmask 1040384   ;;  %v1793_v38 = vsel %vm6304_vm4, %v1658_v37, 0.0  ;;  %vm7486_vm2 = vcmask 293888  }
 0x281   : > { %v3534_v62 = vmax.f32 %v3502_v30, 0.0  ;;  %v6352_v46 = vpop.permute.xlu0 %1970  ;;  %v2977_v59 = vsel %vm7474_vm7, %v2945_v50, %v6284_v24  ;;  %v824_v30 = vmax.f32 %v792_v13, 0.0  ;;  %vm7487_vm13 = vcmask 64512  }
 0x282   : > { %2812 = vrot.lane.b32.xlu1 %v1656_v10, %s4574_s16  ;;  %v3010_v33 = vsel %vm7477_vm3, %v2977_v59, %v2449_v56  ;;  %vm7488_vm7 = vcmask 97280   ;;  %vm7490_vm3 = vcmask 1046528  }
 0x283   : > { %4454 = vmatprep.mubr.msk.f32.mxu0 %vm7466_vm14, %v3534_v62  ;;  %2686 = vrot.lane.b32.xlu0 %v1923_v60, %s4573_s15  ;;  %vm6426_vm14 = vcmp.lt.s32.totalorder %v1197_v25, 15  ;;  %v6443_v40 = vrot.slane %v824_v30, 7 }
 0x284   : > { %4455 = vmatmul.mubr.msk.f32.gmra.mxu0 %vm7467_vm5, %v3535_v26  ;;  %v2576_v58 = vpop.permute.xlu1 %2575  ;;  %vm7481_vm5 = vcmask 228352   ;;  %v1724_v12 = vsel %vm6426_vm14, %v1658_v37, 0.0 }
 0x285   : > { %v2451_v5 = vpop.permute.xlu0 %2450  ;;  %v3043_v24 = vsel %vm7478_vm9, %v3010_v33, %v2576_v58  ;;  %v7485_v58 = vld [vmem:[#allocation21_spill] sm:$0xff]  ;;  %vm7491_vm9 = vcmask 162816  }
 0x286   : > { %2338 = vrot.lane.b32.xlu1 %v1923_v60, %s4571_s11 }
 0x287   : > { %1984 = vrot.lane.b32.xlu0 %v1921_v52, %s4568_s24  ;;  %v916_v52 = vrot.slane %v823_v3, 7  ;;  %v2880_v3 = vsel %vm7471_vm1, %v7485_v58, %v6247_v48  ;;  %vm7494_vm1 = vcmask 228352  }
 0x288   : > { %v6383_v28 = vpop.permute.xlu1 %2224 }
 0x289   : > { %v6385_v51 = vpop.permute.xlu0 %2098  ;;  %v6418_v31 = vsel %vm7476_vm12, %v7475_v27, %v916_v52  ;;  %vm7489_vm12 = vcmask 130048  }
 0x28a   : > { %2814 = vrot.lane.b32.xlu1 %v1856_v1, %s4574_s16  ;;  %v1924_v1 = vrot.slane %v6418_v31, 1  ;;  %v1659_v33 = vrot.slane %v6418_v31, 2 }
 0x28b   : > { %2464 = vrot.lane.b32.xlu0 %v1656_v10, %s4570_s30 }
 0x28c   : > { %v2673_v32 = vpop.permute.xlu1 %2672  ;;  %v1925_v37 = vsel %vm7490_vm3, %v1922_v17, %v1924_v1 }
 0x28d   : > { %v2578_v8 = vpop.permute.xlu0 %2577 }
 0x28e   : > { %2112 = vrot.lane.b32.xlu1 %v1656_v10, %s4567_s23  ;;  %v3076_v10 = vsel %vm7481_vm5, %v3043_v24, %v2673_v32  ;;  %v2913_v32 = vsel %vm7487_vm13, %v2880_v3, %v6265_v36  ;;  %vm7492_vm5 = vcmask 1040384   ;;  %vm7496_vm13 = vcmask 293888  }
 0x28f   : > { %1986 = vrot.lane.b32.xlu0 %v1923_v60, %s4568_s24  ;;  %v7483_v60 = vld [vmem:[#allocation22_spill] sm:$0xff]  ;;  %v2946_v7 = vsel %vm7488_vm7, %v2913_v32, %v6288_v54  ;;  %v6463_v36 = vsel %vm7492_vm5, %v916_v52, %v6443_v40  ;;  %vm7497_vm7 = vcmask 1045504  }
 0x290   : > { %v6407_v16 = vpop.permute.xlu1 %2324  ;;  %vm7484_vm6 = vnez %v7483_v60  ;;  %v2978_v48 = vsel %vm7489_vm12, %v2946_v7, %v6326_v63  ;;  %vm7498_vm12 = vmmov %vm7490_vm3  ;;  %v1661_v58 = vrot.slane %v6463_v36, 2  ;;  %vm7499_vm3 = vcmask 31744  }
 0x291   : > { %v6411_v44 = vpop.permute.xlu0 %2226  ;;  %v1755_v15 = vsel %vm7484_vm6, %v5860_v21, 0.0  ;;  %v3011_v35 = vsel %vm7491_vm9, %v2978_v48, %v2451_v5  ;;  %vm7500_vm9 = vmmov %vm7499_vm3 }
 0x292   : > { %2591 = vrot.lane.b32.xlu1 %v1824_v0, %s4572_s12  ;;  %vm7501_vm5 = vmmov %vm7497_vm7 }
 0x293   : > { %2466 = vrot.lane.b32.xlu0 %v1793_v38, %s4570_s30 }
 0x294   : > { %v2801_v41 = vpop.permute.xlu1 %2800 }
 0x295   : > { %v3109_v26 = vsel %vm7482_vm15, %v3076_v10, %v2801_v41  ;;  %v2675_v56 = vpop.permute.xlu0 %2674  ;;  %vm7493_vm15 = vcmask 195584   ;;  %v1660_v41 = vsel %vm7497_vm7, %v1657_v29, %v1659_v33  ;;  %vm7509_vm7 = vcmask 195584  }
 0x296   : > { %2240 = vrot.lane.b32.xlu1 %v1755_v15, %s4569_s29  ;;  %4428 = vmatprep.mubr.msk.f32.mxu1 %vm7486_vm2, %v3109_v26  ;;  %v3044_v54 = vsel %vm7493_vm15, %v3011_v35, %v2578_v8  ;;  %vm7495_vm2 = vcmask 261120   ;;  %v1926_v8 = vrot.slane %v6463_v36, 1  ;;  %v754_v26 = vmul.f32 %v6360_v53, %v6186_v23  ;;  %v7502_v35 = vld [vmem:[#allocation23_spill] sm:$0xff]  ;;  %vm7503_vm15 = vmmov %vm7499_vm3 }
 0x297   : > { %2114 = vrot.lane.b32.xlu0 %v1724_v12, %s4567_s23  ;;  %v3077_v63 = vsel %vm7494_vm1, %v3044_v54, %v2675_v56  ;;  %v1662_v23 = vsel %vm7501_vm5, %v1659_v33, %v1661_v58  ;;  %vm7505_vm1 = vcmask 97280  }
 0x298   : > { %v6450_v49 = vpop.permute.xlu1 %2326  ;;  %v1927_v15 = vsel %vm7498_vm12, %v1924_v1, %v1926_v8  ;;  %v793_v12 = vadd.f32 %v6375_v19, %v754_v26  ;;  %v1858_v32 = vsel %vm6304_vm4, %v1662_v23, 0.0  ;;  %v989_v19 = vadd.s32 248, %v4729_v39  ;;  %v7516_v26 = vld [vmem:[#allocation10_spill] sm:$0xff] }
 0x299   : > { %v6454_v13 = vpop.permute.xlu0 %1972  ;;  %vm7504_vm4 = vcmask 64512  }
 0x29a   : > { %v4409_v25 = vpop.f32.mrf.mxu1  ;;  %2688 = vrot.lane.b32.xlu1 %v1925_v37, %s4573_s15  ;;  %v825_v7 = vmax.f32 %v793_v12, 0.0 }
 0x29b   : > { %v3466_v50 = vmul.f32 %v4409_v25, %v6216_v9  ;;  %2593 = vrot.lane.b32.xlu0 %v6418_v31, %s4572_s12  ;;  %v1520_v25 = vsel %vm5968_vm11, %v7502_v35, 0.0  ;;  %vm7506_vm11 = vcmask 130048  }
 0x29c   : > { %v3315_v59 = vpop.f32.mrf.mxu1  ;;  %v2803_v17 = vpop.permute.xlu1 %2802  ;;  %v920_v54 = vrot.slane %v825_v7, 7 }
 0x29d   : > { %v3465_v5 = vmul.f32 %v6216_v9, %v3315_v59  ;;  %v3110_v0 = vsel %vm7495_vm2, %v3077_v63, %v2803_v17  ;;  %v2453_v27 = vpop.permute.xlu0 %2452  ;;  %v3505_v52 = vadd.f32 %v6230_v55, %v3466_v50  ;;  %v2881_v50 = vsel %vm7503_vm15, %v1520_v25, %v6330_v14 }
 0x29e   : > { %2340 = vrot.lane.b32.xlu1 %v1925_v37, %s4571_s11  ;;  %4429 = vmatmul.mubr.msk.f32.gmra.mxu1 %vm7496_vm13, %v3110_v0  ;;  %v2914_v4 = vsel %vm7504_vm4, %v2881_v50, %v6350_v6  ;;  %v1211_v63 = vand.u32 15, %v989_v19  ;;  %v1826_v14 = vsel %vm7484_vm6, %v6463_v36, 0.0  ;;  %vm7507_vm2 = vcmask 1040384  }
 0x29f   : > { %v3504_v38 = vadd.f32 %v6230_v55, %v3465_v5  ;;  %2242 = vrot.lane.b32.xlu0 %v6418_v31, %s4569_s29  ;;  %v3537_v56 = vmax.f32 %v3505_v52, 0.0  ;;  %v2947_v39 = vsel %vm7505_vm1, %v2914_v4, %v6383_v28  ;;  %v921_v6 = vsel %vm7507_vm2, %v6443_v40, %v920_v54 }
 0x2a0   : > { %v6480_v30 = vpop.permute.xlu1 %2100  ;;  %v2979_v47 = vsel %vm7506_vm11, %v2947_v39, %v6407_v16  ;;  %vm7508_vm13 = vcmask 162816   ;;  %v1795_v28 = vsel %vm6426_vm14, %v1662_v23, 0.0  ;;  %vm6540_vm12 = vcmp.lt.s32.totalorder %v1211_v63, 15 }
 0x2a1   : > { %v3536_v24 = vmax.f32 %v3504_v38, 0.0  ;;  %v6482_v10 = vpop.permute.xlu0 %1974  ;;  %v3012_v5 = vsel %vm7508_vm13, %v2979_v47, %v2453_v27  ;;  %v7514_v27 = vld [vmem:[#allocation5_spill] sm:$0xff]  ;;  %vm7517_vm4 = vcmask 293888   ;;  %vm7518_vm1 = vcmask 64512  }
 0x2a2   : > { %2816 = vrot.lane.b32.xlu1 %v1660_v41, %s4574_s16  ;;  %vm7515_vm5 = vnez %v7514_v27  ;;  %vm7519_vm11 = vcmask 97280   ;;  %vm7520_vm2 = vcmask 130048   ;;  %vm7521_vm13 = vcmask 1046528  }
 0x2a3   : > { %4457 = vmatprep.mubr.msk.f32.mxu0 %vm7499_vm3, %v3536_v24  ;;  %2690 = vrot.lane.b32.xlu0 %v1927_v15, %s4573_s15  ;;  %vm7512_vm3 = vcmask 228352   ;;  %v1757_v24 = vsel %vm7515_vm5, %v6463_v36, 0.0  ;;  %v1760_v63 = vrot.slane %v921_v6, 2 }
 0x2a4   : > { %4458 = vmatmul.mubr.msk.f32.gmra.mxu0 %vm7500_vm9, %v3537_v56  ;;  %v2580_v3 = vpop.permute.xlu1 %2579  ;;  %vm7513_vm9 = vcmask 261120   ;;  %v2882_v56 = vsel %vm7503_vm15, %v7516_v26, %v6352_v46  ;;  %vm7525_vm15 = vcmask 228352  }
 0x2a5   : > { %v2455_v29 = vpop.permute.xlu0 %2454  ;;  %v3045_v0 = vsel %vm7509_vm7, %v3012_v5, %v2580_v3  ;;  %v2915_v3 = vsel %vm7518_vm1, %v2882_v56, %v6385_v51  ;;  %vm7522_vm7 = vcmask 162816   ;;  %vm7527_vm1 = vcmask 293888  }
 0x2a6   : > { %2342 = vrot.lane.b32.xlu1 %v1927_v15, %s4571_s11  ;;  %v2948_v12 = vsel %vm7519_vm11, %v2915_v3, %v6411_v44  ;;  %vm7528_vm11 = vcmask 1045504  }
 0x2a7   : > { %1988 = vrot.lane.b32.xlu0 %v1925_v37, %s4568_s24  ;;  %v2980_v46 = vsel %vm7520_vm2, %v2948_v12, %v6450_v49  ;;  %vm7529_vm2 = vmmov %vm7521_vm13  ;;  %v7535_v12 = vmov 0.0  }
 0x2a8   : > { %v6503_v53 = vpop.permute.xlu1 %2228 }
 0x2a9   : > { %v6505_v1 = vpop.permute.xlu0 %2102 }
 0x2aa   : > { %2818 = vrot.lane.b32.xlu1 %v1858_v32, %s4574_s16 }
 0x2ab   : > { %2468 = vrot.lane.b32.xlu0 %v1660_v41, %s4570_s30 }
 0x2ac   : > { %v2677_v48 = vpop.permute.xlu1 %2676 }
 0x2ad   : > { %v2582_v37 = vpop.permute.xlu0 %2581  ;;  %v3078_v33 = vsel %vm7512_vm3, %v3045_v0, %v2677_v48  ;;  %vm7523_vm3 = vcmask 1040384  }
 0x2ae   : > { %2116 = vrot.lane.b32.xlu1 %v1660_v41, %s4567_s23  ;;  %v2280_v41 = vrot.slane %v921_v6, 1  ;;  %v6573_v51 = vsel %vm7523_vm3, %v920_v54, 0.0  ;;  %vm7532_vm3 = vmmov %vm7528_vm11 }
 0x2af   : > { %1990 = vrot.lane.b32.xlu0 %v1927_v15, %s4568_s24  ;;  %v1726_v15 = vsel %vm6540_vm12, %v1662_v23, 0.0  ;;  %v3013_v23 = vsel %vm7522_vm7, %v2980_v46, %v2455_v29  ;;  %v2282_v39 = vrot.slane %v6573_v51, 1  ;;  %v1762_v0 = vrot.slane %v6573_v51, 2 }
 0x2b0   : > { %v6523_v59 = vpop.permute.xlu1 %2328  ;;  %v2281_v19 = vsel %vm7521_vm13, %v1926_v8, %v2280_v41  ;;  %vm7530_vm13 = vcmask 31744   ;;  %v1828_v46 = vsel %vm7515_vm5, %v6573_v51, 0.0 }
 0x2b1   : > { %v6527_v17 = vpop.permute.xlu0 %2230  ;;  %vm7531_vm7 = vmmov %vm7530_vm13  ;;  %v1763_v36 = vsel %vm7532_vm3, %v1760_v63, %v1762_v0  ;;  %vm7546_vm3 = vcmask 293888  }
 0x2b2   : > { %2595 = vrot.lane.b32.xlu1 %v1826_v14, %s4572_s12 }
 0x2b3   : > { %2470 = vrot.lane.b32.xlu0 %v1795_v28, %s4570_s30  ;;  %v1761_v28 = vsel %vm7528_vm11, %v1661_v58, %v1760_v63  ;;  %vm7542_vm11 = vcmask 195584  }
 0x2b4   : > { %v2805_v52 = vpop.permute.xlu1 %2804 }
 0x2b5   : > { %v3111_v40 = vsel %vm7513_vm9, %v3078_v33, %v2805_v52  ;;  %v2679_v38 = vpop.permute.xlu0 %2678  ;;  %vm7524_vm9 = vcmask 195584   ;;  %v2283_v52 = vsel %vm7529_vm2, %v2280_v41, %v2282_v39  ;;  %v1860_v41 = vsel %vm6426_vm14, %v1763_v36, 0.0 }
 0x2b6   : > { %2244 = vrot.lane.b32.xlu1 %v1757_v24, %s4569_s29  ;;  %4431 = vmatprep.mubr.msk.f32.mxu1 %vm7517_vm4, %v3111_v40  ;;  %v3046_v44 = vsel %vm7524_vm9, %v3013_v23, %v2582_v37  ;;  %vm7526_vm4 = vcmask 261120   ;;  %v1797_v24 = vsel %vm6540_vm12, %v1763_v36, 0.0  ;;  %vm7534_vm9 = vmmov %vm7531_vm7  ;;  %vm7536_vm14 = vcmask 64512  }
 0x2b7   : > { %2118 = vrot.lane.b32.xlu0 %v1726_v15, %s4567_s23  ;;  %v3079_v49 = vsel %vm7525_vm15, %v3046_v44, %v2679_v38  ;;  %v7533_v15 = vsel %vm5284_vm0, %v7342_v42, 0.0  ;;  %vm7537_vm15 = vcmask 97280   ;;  %vm7538_vm0 = vcmask 130048   ;;  %v7543_v44 = vld [vmem:[#allocation2_spill] sm:$0xff] }
 0x2b8   : > { %v6561_v32 = vpop.permute.xlu1 %2330  ;;  %v2883_v3 = vsel %vm7534_vm9, %v7533_v15, %v6454_v13  ;;  %vm7547_vm9 = vcmask 1045504  }
 0x2b9   : > { %v6565_v7 = vpop.permute.xlu0 %1976  ;;  %v2916_v62 = vsel %vm7536_vm14, %v2883_v3, %v6480_v30 }
 0x2ba   : > { %v4412_v48 = vpop.f32.mrf.mxu1  ;;  %2692 = vrot.lane.b32.xlu1 %v2281_v19, %s4573_s15 }
 0x2bb   : > { %v3468_v35 = vmul.f32 %v4412_v48, %v6216_v9  ;;  %2597 = vrot.lane.b32.xlu0 %v921_v6, %s4572_s12  ;;  %v7540_v48 = vld [vmem:[#allocation3_spill] sm:$0xff] }
 0x2bc   : > { %v3325_v25 = vpop.f32.mrf.mxu1  ;;  %v2807_v50 = vpop.permute.xlu1 %2806 }
 0x2bd   : > { %v3467_v8 = vmul.f32 %v6216_v9, %v3325_v25  ;;  %v3112_v29 = vsel %vm7526_vm4, %v3079_v49, %v2807_v50  ;;  %v2457_v4 = vpop.permute.xlu0 %2456  ;;  %v3507_v54 = vadd.f32 %v6230_v55, %v3468_v35  ;;  %vm7539_vm4 = vcmask 162816  }
 0x2be   : > { %2344 = vrot.lane.b32.xlu1 %v2281_v19, %s4571_s11  ;;  %4432 = vmatmul.mubr.msk.f32.gmra.mxu1 %vm7527_vm1, %v3112_v29  ;;  %v2949_v19 = vsel %vm7537_vm15, %v2916_v62, %v6503_v53  ;;  %vm7541_vm1 = vmmov %vm7529_vm2  ;;  %v1862_v53 = vsel %vm6540_vm12, %v7543_v44, 0.0  ;;  %vm7544_vm2 = vcmask 228352   ;;  %v2884_v50 = vsel %vm7531_vm7, %v5942_v45, %v6482_v10 }
 0x2bf   : > { %v3506_v37 = vadd.f32 %v6230_v55, %v3467_v8  ;;  %2246 = vrot.lane.b32.xlu0 %v921_v6, %s4569_s29  ;;  %v3539_v33 = vmax.f32 %v3507_v54, 0.0  ;;  %v2981_v42 = vsel %vm7538_vm0, %v2949_v19, %v6523_v59  ;;  %v2635_v51 = vsel %vm7541_vm1, %v2282_v39, %v7540_v48  ;;  %vm7548_vm12 = vmmov %vm7537_vm15 }
 0x2c0   : > { %v6587_v47 = vpop.permute.xlu1 %2104  ;;  %v3014_v23 = vsel %vm7539_vm4, %v2981_v42, %v2457_v4  ;;  %v1829_v8 = vsel %vm7547_vm9, %v1762_v0, %v7543_v44  ;;  %v2917_v16 = vsel %vm7536_vm14, %v2884_v50, %v6505_v1  ;;  %vm7549_vm15 = vmmov %vm7538_vm0 }
 0x2c1   : > { %v3538_v14 = vmax.f32 %v3506_v37, 0.0  ;;  %v6589_v5 = vpop.permute.xlu0 %1978  ;;  %v2950_v29 = vsel %vm7548_vm12, %v2917_v16, %v6527_v17  ;;  %vm7550_vm0 = vmmov %vm7539_vm4 }
 0x2c2   : > { %2820 = vrot.lane.b32.xlu1 %v1761_v28, %s4574_s16  ;;  %v2982_v63 = vsel %vm7549_vm15, %v2950_v29, %v6561_v32  ;;  %vm7551_vm4 = vmmov %vm7542_vm11 }
 0x2c3   : > { %4460 = vmatprep.mubr.msk.f32.mxu0 %vm7530_vm13, %v3538_v14  ;;  %2694 = vrot.lane.b32.xlu0 %v2283_v52, %s4573_s15  ;;  %vm7545_vm13 = vcmask 261120   ;;  %vm7552_vm1 = vmmov %vm7544_vm2 }
 0x2c4   : > { %4461 = vmatmul.mubr.msk.f32.gmra.mxu0 %vm7531_vm7, %v3539_v33  ;;  %v2584_v6 = vpop.permute.xlu1 %2583  ;;  %vm7558_vm9 = vmmov %vm7536_vm14 }
 0x2c5   : > { %v2459_v40 = vpop.permute.xlu0 %2458  ;;  %v3047_v30 = vsel %vm7542_vm11, %v3014_v23, %v2584_v6  ;;  %vm7553_vm11 = vmmov %vm7545_vm13 }
 0x2c6   : > { %2472 = vrot.lane.b32.xlu1 %v1761_v28, %s4570_s30  ;;  %v3015_v10 = vsel %vm7550_vm0, %v2982_v63, %v2459_v40  ;;  %vm7559_vm14 = vmmov %vm7548_vm12 }
 0x2c7   : > { %2346 = vrot.lane.b32.xlu0 %v2283_v52, %s4571_s11  ;;  %vm7560_vm12 = vmmov %vm7549_vm15 }
 0x2c8   : > { %v6603_v58 = vpop.permute.xlu1 %2232  ;;  %vm7561_vm15 = vmmov %vm7550_vm0 }
 0x2c9   : > { %v6605_v38 = vpop.permute.xlu0 %2106  ;;  %vm7562_vm0 = vmmov %vm7551_vm4 }
 0x2ca   : > { %2474 = vrot.lane.b32.xlu1 %v1797_v24, %s4570_s30 }
 0x2cb   : > { %2822 = vrot.lane.b32.xlu0 %v1860_v41, %s4574_s16 }
 0x2cc   : > { %v2681_v26 = vpop.permute.xlu1 %2680 }
 0x2cd   : > { %v2586_v56 = vpop.permute.xlu0 %2585  ;;  %v3080_v35 = vsel %vm7544_vm2, %v3047_v30, %v2681_v26  ;;  %vm7554_vm2 = vmmov %vm7546_vm3 }
 0x2ce   : > { %2601 = vrot.lane.b32.xlu1 %v7535_v12, %s4572_s12  ;;  %v3048_v54 = vsel %vm7551_vm4, %v3015_v10, %v2586_v56  ;;  %vm7563_vm4 = vmmov %vm7552_vm1 }
 0x2cf   : > { %2599 = vrot.lane.b32.xlu0 %v1828_v46, %s4572_s12  ;;  %v7556_v46 = vsel %vm7433_vm8, %v5415_v57, 0.0  ;;  %vm7564_vm8 = vmmov %vm7553_vm11 }
 0x2d0   : > { %v2333_v34 = vpop.permute.xlu1 %2332 }
 0x2d1   : > { %v2235_v13 = vpop.permute.xlu0 %2234 }
 0x2d2   : > { %2698 = vrot.lane.b32.xlu1 %v7540_v48, %s4573_s15 }
 0x2d3   : > { %2696 = vrot.lane.b32.xlu0 %v2635_v51, %s4573_s15  ;;  %s6794_s15 = scalar_lea.vmem %s7079_s10, %s4233_s19 }
 0x2d4   : > { %v2809_v59 = vpop.permute.xlu1 %2808 }
 0x2d5   : > { %v3113_v49 = vsel %vm7545_vm13, %v3080_v35, %v2809_v59  ;;  %v2683_v25 = vpop.permute.xlu0 %2682  ;;  %vm7555_vm13 = vmmov %vm7531_vm7 }
 0x2d6   : > { %2826 = vrot.lane.b32.xlu1 %v1862_v53, %s4574_s16  ;;  %4434 = vmatprep.mubr.msk.f32.mxu1 %vm7546_vm3, %v3113_v49  ;;  %v3081_v1 = vsel %vm7552_vm1, %v3048_v54, %v2683_v25  ;;  %vm7557_vm3 = vmmov %vm7531_vm7 }
 0x2d7   : > { %2824 = vrot.lane.b32.xlu0 %v1829_v8, %s4574_s16  ;;  %v2885_v62 = vsel %vm7557_vm3, %v7556_v46, %v6565_v7  ;;  %vm7565_vm1 = vmmov %vm7557_vm3 }
 0x2d8   : > { %v2335_v4 = vpop.permute.xlu1 %2334  ;;  %v2918_v19 = vsel %vm7558_vm9, %v2885_v62, %v6587_v47  ;;  %v2886_v47 = vsel %vm7565_vm1, %v6048_v20, %v6589_v5  ;;  %vm7570_vm3 = vmmov %vm7561_vm15  ;;  %v7579_v62 = vsel %vm5565_vm10, %v5563_v18, 0.0 }
 0x2d9   : > { %v6657_v45 = vpop.permute.xlu0 %1980  ;;  %v2951_v42 = vsel %vm7559_vm14, %v2918_v19, %v6603_v58 }
 0x2da   : > { %v4415_v39 = vpop.f32.mrf.mxu1  ;;  %v2983_v48 = vsel %vm7560_vm12, %v2951_v42, %v2333_v34 }
 0x2db   : > { %v3470_v37 = vmul.f32 %v4415_v39, %v6216_v9 }
 0x2dc   : > { %v3335_v14 = vpop.f32.mrf.mxu1  ;;  %v2811_v28 = vpop.permute.xlu1 %2810 }
 0x2dd   : > { %v3469_v0 = vmul.f32 %v6216_v9, %v3335_v14  ;;  %v3114_v17 = vsel %vm7553_vm11, %v3081_v1, %v2811_v28  ;;  %v2461_v33 = vpop.permute.xlu0 %2460  ;;  %v3509_v32 = vadd.f32 %v6230_v55, %v3470_v37  ;;  %vm7566_vm11 = vmmov %vm7554_vm2 }
 0x2de   : > { %4435 = vmatmul.mubr.msk.f32.gmra.mxu1 %vm7554_vm2, %v3114_v17  ;;  %v3016_v30 = vsel %vm7561_vm15, %v2983_v48, %v2461_v33  ;;  %vm7567_vm2 = vmmov %vm7558_vm9 }
 0x2df   : > { %v3508_v52 = vadd.f32 %v6230_v55, %v3469_v0  ;;  %v3541_v24 = vmax.f32 %v3509_v32, 0.0  ;;  %v2919_v58 = vsel %vm7567_vm2, %v2886_v47, %v6605_v38  ;;  %vm7571_vm9 = vmmov %vm7562_vm0 }
 0x2e0   : > { %v6668_v6 = vpop.permute.xlu1 %2108  ;;  %vm7574_vm15 = vmmov %vm7566_vm11 }
 0x2e1   : > { %v3540_v40 = vmax.f32 %v3508_v52, 0.0  ;;  %v6670_v36 = vpop.permute.xlu0 %1982 }
 0x2e3   : > { %4463 = vmatprep.mubr.msk.f32.mxu0 %vm7555_vm13, %v3540_v40  ;;  %vm7568_vm13 = vmmov %vm7559_vm14 }
 0x2e4   : > { %4464 = vmatmul.mubr.msk.f32.gmra.mxu0 %vm7531_vm7, %v3541_v24  ;;  %v2588_v41 = vpop.permute.xlu1 %2587  ;;  %v2952_v34 = vsel %vm7568_vm13, %v2919_v58, %v2235_v13  ;;  %vm7569_vm7 = vmmov %vm7560_vm12 }
 0x2e5   : > { %v2463_v26 = vpop.permute.xlu0 %2462  ;;  %v3049_v44 = vsel %vm7562_vm0, %v3016_v30, %v2588_v41  ;;  %v2984_v59 = vsel %vm7569_vm7, %v2952_v34, %v2335_v4  ;;  %vm7572_vm14 = vmmov %vm7563_vm4 }
 0x2e6   : > { %v3017_v25 = vsel %vm7570_vm3, %v2984_v59, %v2463_v26  ;;  %vm7573_vm12 = vmmov %vm7564_vm8 }
 0x2e7   : > { %vm7575_vm0 = vmmov %vm7565_vm1 }
 0x2e8   : > { %v2237_v56 = vpop.permute.xlu1 %2236  ;;  %vm7578_vm1 = vmmov %vm7575_vm0 }
 0x2e9   : > { %v6674_v15 = vpop.permute.xlu0 %2110  ;;  %vm7581_vm10 = vmmov %vm7573_vm12 }
 0x2ec   : > { %v2685_v3 = vpop.permute.xlu1 %2684 }
 0x2ed   : > { %v2590_v12 = vpop.permute.xlu0 %2589  ;;  %v3082_v61 = vsel %vm7563_vm4, %v3049_v44, %v2685_v3  ;;  %vm7576_vm4 = vmmov %vm7575_vm0 }
 0x2ee   : > { %v3050_v50 = vsel %vm7571_vm9, %v3017_v25, %v2590_v12 }
 0x2f0   : > { %v2337_v23 = vpop.permute.xlu1 %2336 }
 0x2f1   : > { %v6687_v51 = vpop.permute.xlu0 %2238 }
 0x2f4   : > { %v2813_v57 = vpop.permute.xlu1 %2812 }
 0x2f5   : > { %v3115_v7 = vsel %vm7564_vm8, %v3082_v61, %v2813_v57  ;;  %v2687_v53 = vpop.permute.xlu0 %2686  ;;  %vm7577_vm8 = vmmov %vm7575_vm0 }
 0x2f6   : > { %4437 = vmatprep.mubr.msk.f32.mxu1 %vm7566_vm11, %v3115_v7  ;;  %v3083_v8 = vsel %vm7572_vm14, %v3050_v50, %v2687_v53  ;;  %vm7580_vm11 = vmmov %vm7575_vm0 }
 0x2f7   : > { %v2887_v19 = vsel %vm7580_vm11, %v7579_v62, %v6657_v45  ;;  %vm7587_vm11 = vmmov %vm7571_vm9 }
 0x2f8   : > { %v2339_v35 = vpop.permute.xlu1 %2338  ;;  %v2920_v42 = vsel %vm7567_vm2, %v2887_v19, %v6668_v6 }
 0x2f9   : > { %v6701_v49 = vpop.permute.xlu0 %1984  ;;  %v2953_v48 = vsel %vm7568_vm13, %v2920_v42, %v2237_v56 }
 0x2fa   : > { %v2985_v44 = vsel %vm7569_vm7, %v2953_v48, %v2337_v23 }
 0x2fc   : > { %v2815_v16 = vpop.permute.xlu1 %2814 }
 0x2fd   : > { %v3116_v20 = vsel %vm7573_vm12, %v3083_v8, %v2815_v16  ;;  %v2465_v5 = vpop.permute.xlu0 %2464  ;;  %vm7582_vm12 = vmmov %vm7575_vm0 }
 0x2fe   : > { %v4418_v29 = vpop.f32.mrf.mxu1  ;;  %4438 = vmatmul.mubr.msk.f32.gmra.mxu1 %vm7574_vm15, %v3116_v20  ;;  %v3018_v57 = vsel %vm7570_vm3, %v2985_v44, %v2465_v5  ;;  %v2888_v6 = vsel %vm7582_vm12, %v6179_v22, %v6670_v36  ;;  %v7594_v44 = vsel %vm7484_vm6, %v5730_v2, 0.0 }
 0x2ff   : > { %v3472_v38 = vmul.f32 %v4418_v29, %v6216_v9 }
 0x300   : > { %v3345_v13 = vpop.f32.mrf.mxu1  ;;  %v6709_v63 = vpop.permute.xlu1 %2112 }
 0x301   : > { %v3471_v4 = vmul.f32 %v6216_v9, %v3345_v13  ;;  %v6712_v10 = vpop.permute.xlu0 %1986  ;;  %v3511_v39 = vadd.f32 %v6230_v55, %v3472_v38  ;;  %v6774_v38 = vld [vmem:[%s7077_s8] ss:$0 sm:$0xff] }
 0x302   : > { %v4421_v54 = vpop.f32.mrf.mxu1 }
 0x303   : > { %v3510_v37 = vadd.f32 %v6230_v55, %v3471_v4  ;;  %v3474_v1 = vmul.f32 %v4421_v54, %v6216_v9  ;;  %v3543_v32 = vmax.f32 %v3511_v39, 0.0  ;;  %v6780_v39 = vld [vmem:[%s7078_s9] ss:$0 sm:$0xff] }
 0x304   : > { %v2592_v14 = vpop.permute.xlu1 %2591  ;;  %v3355_v28 = vpop.f32.mrf.mxu1 }
 0x305   : > { %v3542_v0 = vmax.f32 %v3510_v37, 0.0  ;;  %v3473_v17 = vmul.f32 %v6216_v9, %v3355_v28  ;;  %v2467_v33 = vpop.permute.xlu0 %2466  ;;  %v3513_v52 = vadd.f32 %v6230_v55, %v3474_v1  ;;  %v3051_v7 = vsel %vm7571_vm9, %v3018_v57, %v2592_v14 }
 0x307   : > { %v3512_v40 = vadd.f32 %v6230_v55, %v3473_v17  ;;  %4466 = vmatprep.mubr.msk.f32.mxu0 %vm7575_vm0, %v3542_v0  ;;  %v3545_v3 = vmax.f32 %v3513_v52, 0.0  ;;  %vm7583_vm0 = vmmov %vm7567_vm2  ;;  %v4524_v52 = vld [vmem:[%s4652_s22 + $0x8] sm:$0xff] }
 0x308   : > { %4467 = vmatmul.mubr.msk.f32.gmra.mxu0 %vm7576_vm4, %v3543_v32  ;;  %v6722_v24 = vpop.permute.xlu1 %2240  ;;  %v2921_v56 = vsel %vm7583_vm0, %v2888_v6, %v6674_v15  ;;  %vm7584_vm4 = vmmov %vm7568_vm13 }
 0x309   : > { %v3544_v41 = vmax.f32 %v3512_v40, 0.0  ;;  %v6724_v26 = vpop.permute.xlu0 %2114  ;;  %v2954_v23 = vsel %vm7584_vm4, %v2921_v56, %v6687_v51  ;;  %vm7588_vm2 = vmmov %vm7572_vm14 }
 0x30a   : > { %vm7589_vm13 = vmmov %vm7581_vm10 }
 0x30b   : > { %4469 = vmatprep.mubr.msk.f32.mxu0 %vm7577_vm8, %v3544_v41  ;;  %vm7585_vm8 = vmmov %vm7569_vm7 }
 0x30c   : > { %v2689_v12 = vpop.permute.xlu1 %2688  ;;  %4470 = vmatmul.mubr.msk.f32.gmra.mxu0 %vm7578_vm1, %v3545_v3  ;;  %v2986_v58 = vsel %vm7585_vm8, %v2954_v23, %v2339_v35  ;;  %vm7586_vm1 = vmmov %vm7570_vm3 }
 0x30d   : > { %v2594_v46 = vpop.permute.xlu0 %2593  ;;  %v3084_v11 = vsel %vm7572_vm14, %v3051_v7, %v2689_v12  ;;  %v3019_v59 = vsel %vm7586_vm1, %v2986_v58, %v2467_v33  ;;  %vm7590_vm7 = vmmov %vm7574_vm15 }
 0x30e   : > { %v3052_v25 = vsel %vm7587_vm11, %v3019_v59, %v2594_v46  ;;  %vm7591_vm3 = vmmov %vm7582_vm12  ;;  %v4525_v46 = vld [vmem:[%s4652_s22] sm:$0xff] }
 0x30f   : > { %vm7592_vm9 = vmmov %vm7591_vm3 }
 0x310   : > { %v6737_v30 = vpop.permute.xlu1 %2340  ;;  %vm7593_vm14 = vmmov %vm7585_vm8 }
 0x311   : > { %v6740_v61 = vpop.permute.xlu0 %2242  ;;  %vm7596_vm12 = vmmov %vm7583_vm0 }
 0x312   : > { %vm7598_vm0 = vmmov %vm7584_vm4 }
 0x313   : > { %vm7599_vm4 = vmmov %vm7585_vm8 }
 0x314   : > { %v2817_v18 = vpop.permute.xlu1 %2816  ;;  %vm7602_vm6 = vmmov %vm7588_vm2 }
 0x315   : > { %v3117_v45 = vsel %vm7581_vm10, %v3084_v11, %v2817_v18  ;;  %v2691_v53 = vpop.permute.xlu0 %2690  ;;  %vm7595_vm10 = vmmov %vm7591_vm3 }
 0x316   : > { %4440 = vmatprep.mubr.msk.f32.mxu1 %vm7574_vm15, %v3117_v45  ;;  %v3085_v22 = vsel %vm7588_vm2, %v3052_v25, %v2691_v53  ;;  %v2889_v57 = vsel %vm7595_vm10, %v7594_v44, %v6701_v49  ;;  %vm7597_vm15 = vmmov %vm7585_vm8 }
 0x317   : > { %v2922_v7 = vsel %vm7596_vm12, %v2889_v57, %v6709_v63  ;;  %vm7600_vm8 = vmmov %vm7586_vm1 }
 0x318   : > { %v6754_v47 = vpop.permute.xlu1 %2342  ;;  %v2955_v11 = vsel %vm7598_vm0, %v2922_v7, %v6722_v24  ;;  %vm7601_vm1 = vmmov %vm7587_vm11  ;;  %v4527_v7 = vld [vmem:[%s4652_s22 + $0x10] sm:$0xff] }
 0x319   : > { %v6757_v34 = vpop.permute.xlu0 %1988  ;;  %v2987_v45 = vsel %vm7599_vm4, %v2955_v11, %v6737_v30  ;;  %vm7603_vm11 = vmmov %vm7589_vm13 }
 0x31a   : > { %vm7604_vm2 = vmmov %vm7590_vm7 }
 0x31b   : > { %vm7610_vm10 = vmmov %vm7601_vm1 }
 0x31c   : > { %v2819_v36 = vpop.permute.xlu1 %2818 }
 0x31d   : > { %v3118_v50 = vsel %vm7589_vm13, %v3085_v22, %v2819_v36  ;;  %v2469_v8 = vpop.permute.xlu0 %2468  ;;  %vm7605_vm13 = vmmov %vm7591_vm3 }
 0x31e   : > { %v4424_v15 = vpop.f32.mrf.mxu1  ;;  %4441 = vmatmul.mubr.msk.f32.gmra.mxu1 %vm7590_vm7, %v3118_v50  ;;  %v3020_v6 = vsel %vm7600_vm8, %v2987_v45, %v2469_v8  ;;  %v2890_v24 = vsel %vm7605_vm13, %v6296_v43, %v6712_v10  ;;  %vm7606_vm7 = vmmov %vm7596_vm12 }
 0x31f   : > { %v3476_v51 = vmul.f32 %v4424_v15, %v6216_v9  ;;  %v2923_v30 = vsel %vm7606_vm7, %v2890_v24, %v6724_v26  ;;  %vm7611_vm12 = vmmov %vm7602_vm6 }
 0x320   : > { %v6765_v16 = vpop.permute.xlu1 %2116  ;;  %v3365_v35 = vpop.f32.mrf.mxu1 }
 0x321   : > { %v3475_v20 = vmul.f32 %v6216_v9, %v3365_v35  ;;  %v6768_v5 = vpop.permute.xlu0 %1990  ;;  %v3515_v29 = vadd.f32 %v6230_v55, %v3476_v51 }
 0x323   : > { %v3514_v13 = vadd.f32 %v6230_v55, %v3475_v20  ;;  %v3547_v28 = vmax.f32 %v3515_v29, 0.0  ;;  %v7614_v29 = vsel %vm7515_vm5, %v5860_v21, 0.0 }
 0x324   : > { %v4453_v4 = vpop.f32.mrf.mxu0  ;;  %v2596_v54 = vpop.permute.xlu1 %2595 }
 0x325   : > { %v3546_v37 = vmax.f32 %v3514_v13, 0.0  ;;  %v3897_v1 = vmul.f32 %v4453_v4, %v6774_v38  ;;  %v2471_v14 = vpop.permute.xlu0 %2470  ;;  %v3053_v60 = vsel %vm7601_vm1, %v3020_v6, %v2596_v54  ;;  %v6877_v6 = vld [vmem:[%s7074_s5] ss:$0 sm:$0xff] }
 0x326   : > { %v3730_v0 = vpop.f32.mrf.mxu0 }
 0x327   : > { %v3936_v17 = vadd.f32 %v6780_v39, %v3897_v1  ;;  %v3896_v33 = vmul.f32 %v6774_v38, %v3730_v0  ;;  %4472 = vmatprep.mubr.msk.f32.mxu0 %vm7591_vm3, %v3546_v37  ;;  %vm7607_vm3 = vmmov %vm7598_vm0 }
 0x328   : > { %v2245_v32 = vpop.permute.xlu1 %2244  ;;  %4473 = vmatmul.mubr.msk.f32.gmra.mxu0 %vm7592_vm9, %v3547_v28  ;;  %v2956_v58 = vsel %vm7607_vm3, %v2923_v30, %v6740_v61  ;;  %vm7608_vm9 = vmmov %vm7599_vm4 }
 0x329   : > { %v3968_v40 = vadd.f32 %v4524_v52, %v3936_v17  ;;  %v3935_v41 = vadd.f32 %v6780_v39, %v3896_v33  ;;  %v2119_v3 = vpop.permute.xlu0 %2118  ;;  %v2988_v25 = vsel %vm7608_vm9, %v2956_v58, %v6754_v47  ;;  %vm7613_vm0 = vmmov %vm7604_vm2 }
 0x32a   : > { %vm7615_vm4 = vmmov %vm7605_vm13 }
 0x32b   : > { %v4000_v12 = vmax.f32 %v3968_v40, 0.0  ;;  %v3967_v62 = vadd.f32 %v4525_v46, %v3935_v41  ;;  %v2891_v13 = vsel %vm7615_vm4, %v7614_v29, %v6757_v34  ;;  %vm7617_vm1 = vmmov %vm7615_vm4  ;;  %vm7631_vm4 = vcmask 261120  }
 0x32c   : > { %v2693_v19 = vpop.permute.xlu1 %2692  ;;  %v2892_v37 = vsel %vm7617_vm1, %v6418_v31, %v6768_v5  ;;  %vm7620_vm5 = vmmov %vm7608_vm9 }
 0x32d   : > { %4032 = vst.msk [vmem:[%s6794_s15 + $0x8] sm:$0xff] %vm7593_vm14, %v4000_v12  ;;  %v3999_v42 = vmax.f32 %v3967_v62, 0.0  ;;  %v2598_v48 = vpop.permute.xlu0 %2597  ;;  %v3086_v2 = vsel %vm7602_vm6, %v3053_v60, %v2693_v19  ;;  %vm7609_vm14 = vmmov %vm7600_vm8  ;;  %v4526_v12 = vld [vmem:[%s4652_s22 + $0x18] sm:$0xff] }
 0x32e   : > { %v3021_v22 = vsel %vm7609_vm14, %v2988_v25, %v2471_v14  ;;  %vm7616_vm8 = vmmov %vm7606_vm7 }
 0x32f   : > { %4031 = vst.msk [vmem:[%s6794_s15] sm:$0xff] %vm7597_vm15, %v3999_v42  ;;  %v3054_v36 = vsel %vm7610_vm10, %v3021_v22, %v2598_v48  ;;  %vm7612_vm15 = vmmov %vm7603_vm11  ;;  %v2924_v54 = vsel %vm7616_vm8, %v2891_v13, %v6765_v16 }
 0x330   : > { %v2345_v18 = vpop.permute.xlu1 %2344  ;;  %vm7618_vm6 = vmmov %vm7607_vm3 }
 0x331   : > { %v2247_v53 = vpop.permute.xlu0 %2246  ;;  %v2957_v14 = vsel %vm7618_vm6, %v2924_v54, %v2245_v32  ;;  %vm7622_vm13 = vmmov %vm7609_vm14 }
 0x332   : > { %vm7625_vm9 = vmmov %vm7622_vm13 }
 0x333   : > { %vm7626_vm14 = vmmov %vm7610_vm10 }
 0x334   : > { %v2821_v49 = vpop.permute.xlu1 %2820  ;;  %vm7627_vm10 = vmmov %vm7617_vm1 }
 0x335   : > { %v3119_v56 = vsel %vm7603_vm11, %v3086_v2, %v2821_v49  ;;  %v2695_v63 = vpop.permute.xlu0 %2694  ;;  %vm7619_vm11 = vmmov %vm7606_vm7 }
 0x336   : > { %4443 = vmatprep.mubr.msk.f32.mxu1 %vm7604_vm2, %v3119_v56  ;;  %v3087_v8 = vsel %vm7611_vm12, %v3054_v36, %v2695_v63  ;;  %v2925_v28 = vsel %vm7619_vm11, %v2892_v37, %v2119_v3  ;;  %vm7621_vm2 = vmmov %vm7607_vm3  ;;  %v6884_v56 = vld [vmem:[%s7075_s6] ss:$0 sm:$0xff] }
 0x337   : > { %v2958_v0 = vsel %vm7621_vm2, %v2925_v28, %v2247_v53  ;;  %vm7623_vm7 = vmmov %vm7620_vm5 }
 0x338   : > { %v2473_v23 = vpop.permute.xlu1 %2472  ;;  %vm7624_vm3 = vmmov %vm7617_vm1  ;;  %vm7633_vm1 = vcmask 293888  }
 0x339   : > { %v2347_v59 = vpop.permute.xlu0 %2346  ;;  %vm7628_vm12 = vmmov %vm7626_vm14 }
 0x33a   : > { %v2990_v31 = vsel %vm7623_vm7, %v2958_v0, %v2347_v59  ;;  %vm7632_vm8 = vmmov %vm7631_vm4  ;;  %v4533_v0 = vld [vmem:[%s4652_s22 + $0x30] sm:$0xff] }
 0x33b   : > { %vm7634_vm6 = vmmov %vm7633_vm1 }
 0x33c   : > { %v2475_v50 = vpop.permute.xlu1 %2474  ;;  %vm7635_vm11 = vmmov %vm7620_vm5 }
 0x33d   : > { %v2823_v15 = vpop.permute.xlu0 %2822  ;;  %v3023_v52 = vsel %vm7625_vm9, %v2990_v31, %v2475_v50  ;;  %vm7636_vm2 = vmmov %vm7624_vm3  ;;  %v4530_v50 = vld [vmem:[%s4652_s22 + $0x28] sm:$0xff] }
 0x33e   : > { %v3120_v43 = vsel %vm7612_vm15, %v3087_v8, %v2823_v15  ;;  %v4427_v10 = vpop.f32.mrf.mxu1  ;;  %vm7629_vm15 = vcmask 228352   ;;  %vm7638_vm7 = vmmov %vm7620_vm5 }
 0x33f   : > { %v3478_v26 = vmul.f32 %v4427_v10, %v6216_v9  ;;  %4444 = vmatmul.mubr.msk.f32.gmra.mxu1 %vm7613_vm0, %v3120_v43  ;;  %vm7630_vm0 = vmmov %vm7629_vm15  ;;  %v4531_v10 = vld [vmem:[%s4652_s22 + $0x20] sm:$0xff] }
 0x340   : > { %v2602_v61 = vpop.permute.xlu1 %2601  ;;  %v3375_v51 = vpop.f32.mrf.mxu1  ;;  %vm7640_vm9 = vmmov %vm7636_vm2 }
 0x341   : > { %v3477_v35 = vmul.f32 %v6216_v9, %v3375_v51  ;;  %v2600_v47 = vpop.permute.xlu0 %2599  ;;  %v3517_v20 = vadd.f32 %v6230_v55, %v3478_v26  ;;  %v3056_v3 = vsel %vm7628_vm12, %v3023_v52, %v2602_v61 }
 0x343   : > { %v3516_v4 = vadd.f32 %v6230_v55, %v3477_v35  ;;  %v2989_v55 = vsel %vm7620_vm5, %v2957_v14, %v2345_v18  ;;  %v3549_v16 = vmax.f32 %v3517_v20, 0.0 }
 0x344   : > { %v4456_v9 = vpop.f32.mrf.mxu0  ;;  %v2699_v1 = vpop.permute.xlu1 %2698  ;;  %v3022_v33 = vsel %vm7622_vm13, %v2989_v55, %v2473_v23  ;;  %vm7637_vm13 = vmmov %vm7636_vm2 }
 0x345   : > { %v3548_v27 = vmax.f32 %v3516_v4, 0.0  ;;  %v3899_v21 = vmul.f32 %v4456_v9, %v6774_v38  ;;  %v2697_v34 = vpop.permute.xlu0 %2696  ;;  %v3055_v40 = vsel %vm7626_vm14, %v3022_v33, %v2600_v47  ;;  %v3089_v48 = vsel %vm7630_vm0, %v3056_v3, %v2699_v1  ;;  %vm7641_vm14 = vmmov %vm7636_vm2 }
 0x346   : > { %v3740_v17 = vpop.f32.mrf.mxu0  ;;  %v3088_v62 = vsel %vm7629_vm15, %v3055_v40, %v2697_v34  ;;  %vm7644_vm15 = vmmov %vm7636_vm2 }
 0x347   : > { %v3938_v5 = vadd.f32 %v6780_v39, %v3899_v21  ;;  %v3898_v32 = vmul.f32 %v6774_v38, %v3740_v17  ;;  %4475 = vmatprep.mubr.msk.f32.mxu0 %vm7624_vm3, %v3548_v27  ;;  %vm7639_vm3 = vmmov %vm7620_vm5  ;;  %v4532_v27 = vld [vmem:[%s4652_s22 + $0x38] sm:$0xff] }
 0x348   : > { %v2827_v41 = vpop.permute.xlu1 %2826  ;;  %4476 = vmatmul.mubr.msk.f32.gmra.mxu0 %vm7627_vm10, %v3549_v16  ;;  %vm7642_vm10 = vmmov %vm7639_vm3 }
 0x349   : > { %v3970_v46 = vadd.f32 %v4526_v12, %v3938_v5  ;;  %v3937_v19 = vadd.f32 %v6780_v39, %v3898_v32  ;;  %v2825_v42 = vpop.permute.xlu0 %2824  ;;  %v3122_v18 = vsel %vm7632_vm8, %v3089_v48, %v2827_v41  ;;  %vm7643_vm12 = vmmov %vm7639_vm3  ;;  %v4534_v48 = vld [vmem:[%s4652_s22 + $0x48] sm:$0xff] }
 0x34a   : > { %v3121_v44 = vsel %vm7631_vm4, %v3088_v62, %v2825_v42  ;;  %vm7645_vm0 = vmmov %vm7636_vm2 }
 0x34b   : > { %v4002_v57 = vmax.f32 %v3970_v46, 0.0  ;;  %v3969_v11 = vadd.f32 %v4527_v7, %v3937_v19  ;;  %4446 = vmatprep.mubr.msk.f32.mxu1 %vm7633_vm1, %v3121_v44  ;;  %vm7646_vm4 = vmmov %vm7639_vm3 }
 0x34c   : > { %4447 = vmatmul.mubr.msk.f32.gmra.mxu1 %vm7634_vm6, %v3122_v18  ;;  %vm7647_vm8 = vmmov %vm7639_vm3 }
 0x34d   : > { %4034 = vst.msk [vmem:[%s6794_s15 + $0x18] sm:$0xff] %vm7635_vm11, %v4002_v57  ;;  %v4001_v45 = vmax.f32 %v3969_v11, 0.0  ;;  %v4535_v11 = vld [vmem:[%s4652_s22 + $0x40] sm:$0xff]  ;;  %vm7648_vm1 = vmmov %vm7645_vm0 }
 0x34e   : > { %vm7649_vm6 = vmmov %vm7645_vm0 }
 0x34f   : > { %4033 = vst.msk [vmem:[%s6794_s15 + $0x10] sm:$0xff] %vm7620_vm5, %v4001_v45  ;;  %vm7650_vm11 = vmmov %vm7639_vm3 }
 0x350   : > { %vm7651_vm5 = vmmov %vm7639_vm3 }
 0x35e   : > { %v4430_v53 = vpop.f32.mrf.mxu1 }
 0x35f   : > { %v3480_v60 = vmul.f32 %v6877_v6, %v4430_v53 }
 0x360   : > { %v3385_v2 = vpop.f32.mrf.mxu1 }
 0x361   : > { %v3479_v49 = vmul.f32 %v6877_v6, %v3385_v2  ;;  %v3519_v63 = vadd.f32 %v6884_v56, %v3480_v60 }
 0x363   : > { %v3518_v24 = vadd.f32 %v6884_v56, %v3479_v49  ;;  %v3551_v59 = vmax.f32 %v3519_v63, 0.0 }
 0x364   : > { %v4459_v30 = vpop.f32.mrf.mxu0 }
 0x365   : > { %v3550_v23 = vmax.f32 %v3518_v24, 0.0  ;;  %v3901_v58 = vmul.f32 %v4459_v30, %v6774_v38 }
 0x366   : > { %v3750_v25 = vpop.f32.mrf.mxu0 }
 0x367   : > { %v3940_v22 = vadd.f32 %v6780_v39, %v3901_v58  ;;  %v3900_v36 = vmul.f32 %v6774_v38, %v3750_v25  ;;  %4478 = vmatprep.mubr.msk.f32.mxu0 %vm7636_vm2, %v3550_v23  ;;  %vm7652_vm2 = vmmov %vm7639_vm3 }
 0x368   : > { %4479 = vmatmul.mubr.msk.f32.gmra.mxu0 %vm7637_vm13, %v3551_v59  ;;  %vm7653_vm13 = vmmov %vm7652_vm2 }
 0x369   : > { %v3972_v8 = vadd.f32 %v4530_v50, %v3940_v22  ;;  %v3939_v15 = vadd.f32 %v6780_v39, %v3900_v36 }
 0x36b   : > { %v4004_v43 = vmax.f32 %v3972_v8, 0.0  ;;  %v3971_v26 = vadd.f32 %v4531_v10, %v3939_v15  ;;  %v4536_v8 = vld [vmem:[%s4652_s22 + $0x58] sm:$0xff] }
 0x36d   : > { %4036 = vst.msk [vmem:[%s6794_s15 + $0x28] sm:$0xff] %vm7638_vm7, %v4004_v43  ;;  %v4003_v61 = vmax.f32 %v3971_v26, 0.0  ;;  %vm7654_vm7 = vmmov %vm7645_vm0 }
 0x36f   : > { %4035 = vst.msk [vmem:[%s6794_s15 + $0x20] sm:$0xff] %vm7639_vm3, %v4003_v61  ;;  %vm7655_vm3 = vmmov %vm7645_vm0 }
 0x37e   : > { %v4433_v51 = vpop.f32.mrf.mxu1 }
 0x37f   : > { %v3482_v35 = vmul.f32 %v6877_v6, %v4433_v51  ;;  %v4537_v51 = vld [vmem:[%s4652_s22 + $0x50] sm:$0xff] }
 0x380   : > { %v3395_v47 = vpop.f32.mrf.mxu1 }
 0x381   : > { %v3481_v20 = vmul.f32 %v6877_v6, %v3395_v47  ;;  %v3521_v29 = vadd.f32 %v6884_v56, %v3482_v35 }
 0x383   : > { %v3520_v13 = vadd.f32 %v6884_v56, %v3481_v20  ;;  %v3553_v9 = vmax.f32 %v3521_v29, 0.0 }
 0x384   : > { %v4462_v4 = vpop.f32.mrf.mxu0 }
 0x385   : > { %v3552_v54 = vmax.f32 %v3520_v13, 0.0  ;;  %v3903_v37 = vmul.f32 %v4462_v4, %v6774_v38  ;;  %v4538_v13 = vld [vmem:[%s4652_s22 + $0x68] sm:$0xff] }
 0x386   : > { %v3760_v1 = vpop.f32.mrf.mxu0 }
 0x387   : > { %v3942_v14 = vadd.f32 %v6780_v39, %v3903_v37  ;;  %v3902_v28 = vmul.f32 %v6774_v38, %v3760_v1  ;;  %4481 = vmatprep.mubr.msk.f32.mxu0 %vm7640_vm9, %v3552_v54  ;;  %vm7656_vm9 = vmmov %vm7652_vm2 }
 0x388   : > { %4482 = vmatmul.mubr.msk.f32.gmra.mxu0 %vm7641_vm14, %v3553_v9  ;;  %v4539_v9 = vld [vmem:[%s4652_s22 + $0x60] sm:$0xff]  ;;  %vm7657_vm14 = vmmov %vm7652_vm2 }
 0x389   : > { %v3974_v21 = vadd.f32 %v4532_v27, %v3942_v14  ;;  %v3941_v34 = vadd.f32 %v6780_v39, %v3902_v28 }
 0x38b   : > { %v4006_v55 = vmax.f32 %v3974_v21, 0.0  ;;  %v3973_v16 = vadd.f32 %v4533_v0, %v3941_v34 }
 0x38d   : > { %4038 = vst.msk [vmem:[%s6794_s15 + $0x38] sm:$0xff] %vm7642_vm10, %v4006_v55  ;;  %v4005_v17 = vmax.f32 %v3973_v16, 0.0  ;;  %vm7658_vm10 = vmmov %vm7645_vm0 }
 0x38f   : > { %4037 = vst.msk [vmem:[%s6794_s15 + $0x30] sm:$0xff] %vm7643_vm12, %v4005_v17  ;;  %vm7659_vm12 = vmmov %vm7645_vm0 }
 0x39e   : > { %v4436_v33 = vpop.f32.mrf.mxu1 }
 0x39f   : > { %v3484_v31 = vmul.f32 %v6877_v6, %v4436_v33 }
 0x3a0   : > { %v3405_v5 = vpop.f32.mrf.mxu1 }
 0x3a1   : > { %v3483_v32 = vmul.f32 %v6877_v6, %v3405_v5  ;;  %v3523_v52 = vadd.f32 %v6884_v56, %v3484_v31 }
 0x3a3   : > { %v3522_v40 = vadd.f32 %v6884_v56, %v3483_v32  ;;  %v3555_v46 = vmax.f32 %v3523_v52, 0.0 }
 0x3a4   : > { %v4465_v41 = vpop.f32.mrf.mxu0 }
 0x3a5   : > { %v3554_v3 = vmax.f32 %v3522_v40, 0.0  ;;  %v3905_v12 = vmul.f32 %v4465_v41, %v6774_v38  ;;  %v4540_v40 = vld [vmem:[%s4652_s22 + $0x78] sm:$0xff] }
 0x3a6   : > { %v3770_v62 = vpop.f32.mrf.mxu0 }
 0x3a7   : > { %v3944_v19 = vadd.f32 %v6780_v39, %v3905_v12  ;;  %v3904_v42 = vmul.f32 %v6774_v38, %v3770_v62  ;;  %4484 = vmatprep.mubr.msk.f32.mxu0 %vm7644_vm15, %v3554_v3  ;;  %vm7660_vm15 = vmmov %vm7652_vm2 }
 0x3a8   : > { %4485 = vmatmul.mubr.msk.f32.gmra.mxu0 %vm7645_vm0, %v3555_v46  ;;  %v4541_v46 = vld [vmem:[%s4652_s22 + $0x70] sm:$0xff]  ;;  %vm7661_vm0 = vmmov %vm7652_vm2 }
 0x3a9   : > { %v3976_v44 = vadd.f32 %v4534_v48, %v3944_v19  ;;  %v3943_v57 = vadd.f32 %v6780_v39, %v3904_v42 }
 0x3ab   : > { %v4008_v7 = vmax.f32 %v3976_v44, 0.0  ;;  %v3975_v18 = vadd.f32 %v4535_v11, %v3943_v57 }
 0x3ad   : > { %4040 = vst.msk [vmem:[%s6794_s15 + $0x48] sm:$0xff] %vm7646_vm4, %v4008_v7  ;;  %v4007_v45 = vmax.f32 %v3975_v18, 0.0  ;;  %vm7662_vm4 = vmmov %vm7648_vm1 }
 0x3af   : > { %4039 = vst.msk [vmem:[%s6794_s15 + $0x40] sm:$0xff] %vm7647_vm8, %v4007_v45  ;;  %vm7663_vm8 = vmmov %vm7648_vm1 }
 0x3be   : > { %v4439_v53 = vpop.f32.mrf.mxu1 }
 0x3bf   : > { %v3486_v60 = vmul.f32 %v6877_v6, %v4439_v53 }
 0x3c0   : > { %v3415_v2 = vpop.f32.mrf.mxu1 }
 0x3c1   : > { %v3485_v49 = vmul.f32 %v6877_v6, %v3415_v2  ;;  %v3525_v63 = vadd.f32 %v6884_v56, %v3486_v60 }
 0x3c3   : > { %v3524_v24 = vadd.f32 %v6884_v56, %v3485_v49  ;;  %v3557_v23 = vmax.f32 %v3525_v63, 0.0 }
 0x3c5   : > { %v3556_v30 = vmax.f32 %v3524_v24, 0.0 }
 0x3c7   : > { %4487 = vmatprep.mubr.msk.f32.mxu0 %vm7648_vm1, %v3556_v30  ;;  %v4542_v30 = vld [vmem:[%s4652_s22 + $0x88] sm:$0xff]  ;;  %vm7664_vm1 = vmmov %vm7661_vm0 }
 0x3c8   : > { %v4468_v58 = vpop.f32.mrf.mxu0  ;;  %4488 = vmatmul.mubr.msk.f32.gmra.mxu0 %vm7649_vm6, %v3557_v23  ;;  %vm7665_vm6 = vmmov %vm7661_vm0 }
 0x3c9   : > { %v3907_v59 = vmul.f32 %v4468_v58, %v6774_v38 }
 0x3ca   : > { %v3780_v25 = vpop.f32.mrf.mxu0 }
 0x3cb   : > { %v3946_v22 = vadd.f32 %v6780_v39, %v3907_v59  ;;  %v3906_v36 = vmul.f32 %v6774_v38, %v3780_v25 }
 0x3cc   : > { %v4471_v50 = vpop.f32.mrf.mxu0 }
 0x3cd   : > { %v3978_v15 = vadd.f32 %v4536_v8, %v3946_v22  ;;  %v3945_v43 = vadd.f32 %v6780_v39, %v3906_v36  ;;  %v3909_v10 = vmul.f32 %v4471_v50, %v6774_v38  ;;  %v4543_v36 = vld [vmem:[%s4652_s22 + $0x80] sm:$0xff] }
 0x3ce   : > { %v3790_v26 = vpop.f32.mrf.mxu0 }
 0x3cf   : > { %v4010_v61 = vmax.f32 %v3978_v15, 0.0  ;;  %v3977_v35 = vadd.f32 %v4537_v51, %v3945_v43  ;;  %v3948_v47 = vadd.f32 %v6780_v39, %v3909_v10  ;;  %v3908_v20 = vmul.f32 %v6774_v38, %v3790_v26 }
 0x3d1   : > { %4042 = vst.msk [vmem:[%s6794_s15 + $0x58] sm:$0xff] %vm7650_vm11, %v4010_v61  ;;  %v4009_v29 = vmax.f32 %v3977_v35, 0.0  ;;  %v3980_v4 = vadd.f32 %v4538_v13, %v3948_v47  ;;  %v3947_v54 = vadd.f32 %v6780_v39, %v3908_v20  ;;  %vm7666_vm11 = vmmov %vm7661_vm0 }
 0x3d3   : > { %4041 = vst.msk [vmem:[%s6794_s15 + $0x50] sm:$0xff] %vm7651_vm5, %v4009_v29  ;;  %v4012_v37 = vmax.f32 %v3980_v4, 0.0  ;;  %v3979_v1 = vadd.f32 %v4539_v9, %v3947_v54  ;;  %v4545_v54 = vld [vmem:[%s4652_s22 + $0x90] sm:$0xff]  ;;  %vm7667_vm5 = vmmov %vm7661_vm0 }
 0x3d5   : > { %4044 = vst.msk [vmem:[%s6794_s15 + $0x68] sm:$0xff] %vm7652_vm2, %v4012_v37  ;;  %v4011_v14 = vmax.f32 %v3979_v1, 0.0  ;;  %vm7668_vm2 = vmmov %vm7661_vm0 }
 0x3d7   : > { %4043 = vst.msk [vmem:[%s6794_s15 + $0x60] sm:$0xff] %vm7653_vm13, %v4011_v14  ;;  %vm7669_vm13 = vmmov %vm7661_vm0 }
 0x3de   : > { %v4442_v28 = vpop.f32.mrf.mxu1 }
 0x3df   : > { %v3488_v27 = vmul.f32 %v6877_v6, %v4442_v28 }
 0x3e0   : > { %v3425_v21 = vpop.f32.mrf.mxu1 }
 0x3e1   : > { %v3487_v34 = vmul.f32 %v6877_v6, %v3425_v21  ;;  %v3527_v55 = vadd.f32 %v6884_v56, %v3488_v27 }
 0x3e3   : > { %v3526_v0 = vadd.f32 %v6884_v56, %v3487_v34  ;;  %v3559_v17 = vmax.f32 %v3527_v55, 0.0  ;;  %v4546_v34 = vld [vmem:[%s4652_s22 + $0xa8] sm:$0xff] }
 0x3e5   : > { %v3558_v16 = vmax.f32 %v3526_v0, 0.0 }
 0x3e7   : > { %4490 = vmatprep.mubr.msk.f32.mxu0 %vm7654_vm7, %v3558_v16  ;;  %vm7670_vm7 = vmmov %vm7661_vm0 }
 0x3e8   : > { %v4474_v33 = vpop.f32.mrf.mxu0  ;;  %4491 = vmatmul.mubr.msk.f32.gmra.mxu0 %vm7655_vm3, %v3559_v17  ;;  %v4547_v17 = vld [vmem:[%s4652_s22 + $0xa0] sm:$0xff]  ;;  %vm7671_vm3 = vmmov %vm7661_vm0 }
 0x3e9   : > { %v3911_v31 = vmul.f32 %v4474_v33, %v6774_v38 }
 0x3ea   : > { %v3800_v5 = vpop.f32.mrf.mxu0 }
 0x3eb   : > { %v3950_v32 = vadd.f32 %v6780_v39, %v3911_v31  ;;  %v3910_v52 = vmul.f32 %v6774_v38, %v3800_v5 }
 0x3ed   : > { %v3982_v41 = vadd.f32 %v4540_v40, %v3950_v32  ;;  %v3949_v3 = vadd.f32 %v6780_v39, %v3910_v52 }
 0x3ef   : > { %v4014_v12 = vmax.f32 %v3982_v41, 0.0  ;;  %v3981_v62 = vadd.f32 %v4541_v46, %v3949_v3  ;;  %v4548_v3 = vld [vmem:[%s4652_s22 + $0xb8] sm:$0xff] }
 0x3f1   : > { %4046 = vst.msk [vmem:[%s6794_s15 + $0x78] sm:$0xff] %vm7656_vm9, %v4014_v12  ;;  %v4013_v19 = vmax.f32 %v3981_v62, 0.0  ;;  %vm7672_vm9 = vmmov %vm7661_vm0 }
 0x3f3   : > { %4045 = vst.msk [vmem:[%s6794_s15 + $0x70] sm:$0xff] %vm7657_vm14, %v4013_v19  ;;  %v4549_v19 = vld [vmem:[%s4652_s22 + $0xb0] sm:$0xff]  ;;  %vm7673_vm14 = vmmov %vm7661_vm0 }
 0x3ff   : > { %v4445_v42 = vpop.f32.mrf.mxu1 }
 0x400   : > { %v3490_v48 = vmul.f32 %v6877_v6, %v4445_v42 }
 0x401   : > { %v3435_v44 = vpop.f32.mrf.mxu1 }
 0x402   : > { %v3489_v57 = vmul.f32 %v6877_v6, %v3435_v44  ;;  %v3529_v7 = vadd.f32 %v6884_v56, %v3490_v48 }
 0x404   : > { %v3528_v11 = vadd.f32 %v6884_v56, %v3489_v57  ;;  %v3561_v45 = vmax.f32 %v3529_v7, 0.0 }
 0x406   : > { %v3560_v18 = vmax.f32 %v3528_v11, 0.0 }
 0x408   : > { %v4477_v53 = vpop.f32.mrf.mxu0  ;;  %4493 = vmatprep.mubr.msk.f32.mxu0 %vm7658_vm10, %v3560_v18  ;;  %vm7674_vm10 = vmmov %vm7661_vm0 }
 0x409   : > { %v3913_v60 = vmul.f32 %v4477_v53, %v6774_v38  ;;  %4494 = vmatmul.mubr.msk.f32.gmra.mxu0 %vm7659_vm12, %v3561_v45  ;;  %v4550_v45 = vld [vmem:[%s4652_s22 + $0xc8] sm:$0xff]  ;;  %vm7675_vm12 = vmmov %vm7661_vm0 }
 0x40a   : > { %v3810_v2 = vpop.f32.mrf.mxu0 }
 0x40b   : > { %v3952_v49 = vadd.f32 %v6780_v39, %v3913_v60  ;;  %v3912_v63 = vmul.f32 %v6774_v38, %v3810_v2 }
 0x40c   : > { %v4448_v24 = vpop.f32.mrf.mxu1 }
 0x40d   : > { %v3984_v23 = vadd.f32 %v4542_v30, %v3952_v49  ;;  %v3951_v58 = vadd.f32 %v6780_v39, %v3912_v63  ;;  %v3492_v59 = vmul.f32 %v6877_v6, %v4448_v24  ;;  %v4551_v49 = vld [vmem:[%s4652_s22 + $0xc0] sm:$0xff] }
 0x40e   : > { %v3445_v25 = vpop.f32.mrf.mxu1 }
 0x40f   : > { %v4016_v22 = vmax.f32 %v3984_v23, 0.0  ;;  %v3983_v50 = vadd.f32 %v4543_v36, %v3951_v58  ;;  %v3491_v8 = vmul.f32 %v6877_v6, %v3445_v25  ;;  %v3531_v15 = vadd.f32 %v6884_v56, %v3492_v59 }
 0x411   : > { %4048 = vst.msk [vmem:[%s6794_s15 + $0x88] sm:$0xff] %vm7660_vm15, %v4016_v22  ;;  %v4015_v43 = vmax.f32 %v3983_v50, 0.0  ;;  %v3530_v10 = vadd.f32 %v6884_v56, %v3491_v8  ;;  %v3563_v61 = vmax.f32 %v3531_v15, 0.0  ;;  %v4544_v56 = vld [vmem:[%s4652_s22 + $0x98] sm:$0xff]  ;;  %v4553_v15 = vld [vmem:[%s4652_s22 + $0xd0] sm:$0xff]  ;;  %vm7676_vm15 = vmmov %vm7661_vm0 }
 0x412   : > { %v4552_v22 = vld [vmem:[%s4652_s22 + $0xd8] sm:$0xff] }
 0x413   : > { %4047 = vst.msk [vmem:[%s6794_s15 + $0x80] sm:$0xff] %vm7661_vm0, %v4015_v43  ;;  %v3562_v26 = vmax.f32 %v3530_v10, 0.0 }
 0x415   : > { %4496 = vmatprep.mubr.msk.f32.mxu0 %vm7662_vm4, %v3562_v26 }
 0x416   : > { %4497 = vmatmul.mubr.msk.f32.gmra.mxu0 %vm7663_vm8, %v3563_v61 }
 0x428   : > { %v4480_v51 = vpop.f32.mrf.mxu0 }
 0x429   : > { %v3915_v6 = vmul.f32 %v4480_v51, %v6774_v38 }
 0x42a   : > { %v3820_v35 = vpop.f32.mrf.mxu0 }
 0x42b   : > { %v3954_v47 = vadd.f32 %v6780_v39, %v3915_v6  ;;  %v3914_v20 = vmul.f32 %v6774_v38, %v3820_v35 }
 0x42d   : > { %v3986_v29 = vadd.f32 %v4544_v56, %v3954_v47  ;;  %v3953_v13 = vadd.f32 %v6780_v39, %v3914_v20  ;;  %v4554_v47 = vld [vmem:[%s4652_s22 + $0xe8] sm:$0xff] }
 0x42f   : > { %v4018_v4 = vmax.f32 %v3986_v29, 0.0  ;;  %v3985_v37 = vadd.f32 %v4545_v54, %v3953_v13  ;;  %v4555_v13 = vld [vmem:[%s4652_s22 + $0xe0] sm:$0xff] }
 0x431   : > { %4050 = vst.msk [vmem:[%s6794_s15 + $0x98] sm:$0xff] %vm7664_vm1, %v4018_v4  ;;  %v4017_v9 = vmax.f32 %v3985_v37, 0.0 }
 0x433   : > { %4049 = vst.msk [vmem:[%s6794_s15 + $0x90] sm:$0xff] %vm7665_vm6, %v4017_v9 }
 0x448   : > { %v4483_v1 = vpop.f32.mrf.mxu0 }
 0x449   : > { %v3917_v14 = vmul.f32 %v4483_v1, %v6774_v38 }
 0x44a   : > { %v3830_v28 = vpop.f32.mrf.mxu0 }
 0x44b   : > { %v3956_v27 = vadd.f32 %v6780_v39, %v3917_v14  ;;  %v3916_v21 = vmul.f32 %v6774_v38, %v3830_v28 }
 0x44d   : > { %v3988_v55 = vadd.f32 %v4546_v34, %v3956_v27  ;;  %v3955_v0 = vadd.f32 %v6780_v39, %v3916_v21  ;;  %v4556_v27 = vld [vmem:[%s4652_s22 + $0xf8] sm:$0xff] }
 0x44f   : > { %v4020_v16 = vmax.f32 %v3988_v55, 0.0  ;;  %v3987_v33 = vadd.f32 %v4547_v17, %v3955_v0  ;;  %v4557_v0 = vld [vmem:[%s4652_s22 + $0xf0] sm:$0xff] }
 0x451   : > { %4052 = vst.msk [vmem:[%s6794_s15 + $0xa8] sm:$0xff] %vm7666_vm11, %v4020_v16  ;;  %v4019_v31 = vmax.f32 %v3987_v33, 0.0 }
 0x453   : > { %4051 = vst.msk [vmem:[%s6794_s15 + $0xa0] sm:$0xff] %vm7667_vm5, %v4019_v31 }
 0x468   : > { %v4486_v5 = vpop.f32.mrf.mxu0 }
 0x469   : > { %v3919_v32 = vmul.f32 %v4486_v5, %v6774_v38 }
 0x46a   : > { %v3840_v52 = vpop.f32.mrf.mxu0 }
 0x46b   : > { %v3958_v40 = vadd.f32 %v6780_v39, %v3919_v32  ;;  %v3918_v41 = vmul.f32 %v6774_v38, %v3840_v52 }
 0x46d   : > { %v3990_v12 = vadd.f32 %v4548_v3, %v3958_v40  ;;  %v3957_v46 = vadd.f32 %v6780_v39, %v3918_v41 }
 0x46f   : > { %v4022_v62 = vmax.f32 %v3990_v12, 0.0  ;;  %v3989_v42 = vadd.f32 %v4549_v19, %v3957_v46 }
 0x471   : > { %4054 = vst.msk [vmem:[%s6794_s15 + $0xb8] sm:$0xff] %vm7668_vm2, %v4022_v62  ;;  %v4021_v48 = vmax.f32 %v3989_v42, 0.0 }
 0x473   : > { %4053 = vst.msk [vmem:[%s6794_s15 + $0xb0] sm:$0xff] %vm7669_vm13, %v4021_v48 }
 0x488   : > { %v4489_v44 = vpop.f32.mrf.mxu0 }
 0x489   : > { %v3921_v57 = vmul.f32 %v4489_v44, %v6774_v38 }
 0x48a   : > { %v3850_v7 = vpop.f32.mrf.mxu0 }
 0x48b   : > { %v3960_v11 = vadd.f32 %v6780_v39, %v3921_v57  ;;  %v3920_v18 = vmul.f32 %v6774_v38, %v3850_v7 }
 0x48d   : > { %v3992_v53 = vadd.f32 %v4550_v45, %v3960_v11  ;;  %v3959_v60 = vadd.f32 %v6780_v39, %v3920_v18 }
 0x48f   : > { %v4024_v2 = vmax.f32 %v3992_v53, 0.0  ;;  %v3991_v63 = vadd.f32 %v4551_v49, %v3959_v60 }
 0x491   : > { %4056 = vst.msk [vmem:[%s6794_s15 + $0xc8] sm:$0xff] %vm7670_vm7, %v4024_v2  ;;  %v4023_v24 = vmax.f32 %v3991_v63, 0.0 }
 0x493   : > { %4055 = vst.msk [vmem:[%s6794_s15 + $0xc0] sm:$0xff] %vm7671_vm3, %v4023_v24 }
 0x4a8   : > { %v4492_v30 = vpop.f32.mrf.mxu0 }
 0x4a9   : > { %v3923_v23 = vmul.f32 %v4492_v30, %v6774_v38 }
 0x4aa   : > { %v3860_v58 = vpop.f32.mrf.mxu0 }
 0x4ab   : > { %v3962_v59 = vadd.f32 %v6780_v39, %v3923_v23  ;;  %v3922_v25 = vmul.f32 %v6774_v38, %v3860_v58 }
 0x4ad   : > { %v3994_v36 = vadd.f32 %v4552_v22, %v3962_v59  ;;  %v3961_v50 = vadd.f32 %v6780_v39, %v3922_v25 }
 0x4af   : > { %v4026_v8 = vmax.f32 %v3994_v36, 0.0  ;;  %v3993_v43 = vadd.f32 %v4553_v15, %v3961_v50 }
 0x4b1   : > { %4058 = vst.msk [vmem:[%s6794_s15 + $0xd8] sm:$0xff] %vm7672_vm9, %v4026_v8  ;;  %v4025_v10 = vmax.f32 %v3993_v43, 0.0 }
 0x4b3   : > { %4057 = vst.msk [vmem:[%s6794_s15 + $0xd0] sm:$0xff] %vm7673_vm14, %v4025_v10 }
 0x4c9   : > { %v4495_v26 = vpop.f32.mrf.mxu0 }
 0x4ca   : > { %v3925_v61 = vmul.f32 %v4495_v26, %v6774_v38 }
 0x4cb   : > { %v3870_v51 = vpop.f32.mrf.mxu0 }
 0x4cc   : > { %v3964_v6 = vadd.f32 %v6780_v39, %v3925_v61  ;;  %v3924_v35 = vmul.f32 %v6774_v38, %v3870_v51 }
 0x4ce   : > { %v3996_v20 = vadd.f32 %v4554_v47, %v3964_v6  ;;  %v3963_v56 = vadd.f32 %v6780_v39, %v3924_v35 }
 0x4d0   : > { %v4028_v29 = vmax.f32 %v3996_v20, 0.0  ;;  %v3995_v4 = vadd.f32 %v4555_v13, %v3963_v56 }
 0x4d2   : > { %4060 = vst.msk [vmem:[%s6794_s15 + $0xe8] sm:$0xff] %vm7674_vm10, %v4028_v29  ;;  %v4027_v54 = vmax.f32 %v3995_v4, 0.0 }
 0x4d4   : > { %4059 = vst.msk [vmem:[%s6794_s15 + $0xe0] sm:$0xff] %vm7675_vm12, %v4027_v54 }
 0x4d6   : > { %v4498_v37 = vpop.f32.mrf.mxu0 }
 0x4d7   : > { %v3927_v9 = vmul.f32 %v4498_v37, %v6774_v38 }
 0x4d8   : > { %v3880_v1 = vpop.f32.mrf.mxu0 }
 0x4d9   : > { %v3966_v14 = vadd.f32 %v6780_v39, %v3927_v9  ;;  %v3926_v28 = vmul.f32 %v6774_v38, %v3880_v1 }
 0x4db   : > { %v3998_v21 = vadd.f32 %v4556_v27, %v3966_v14  ;;  %v3965_v34 = vadd.f32 %v6780_v39, %v3926_v28 }
 0x4dd   : > { %v4030_v55 = vmax.f32 %v3998_v21, 0.0  ;;  %v3997_v16 = vadd.f32 %v4557_v0, %v3965_v34 }
 0x4df   : > { %4062 = vst.msk [vmem:[%s6794_s15 + $0xf8] sm:$0xff] %vm7676_vm15, %v4030_v55  ;;  %v4029_v17 = vmax.f32 %v3997_v16, 0.0 }
 0x4e1   : > { %4061 = vst.msk [vmem:[%s6794_s15 + $0xf0] sm:$0xff] %vm7661_vm0, %v4029_v17 }
 0x4e2 PF: > { %s20_s13 = sadd.s32 1, %s4564_s13  }
 0x4e3   : > { %p17_p4 = scmp.ge.s32.totalorder %s20_s13, 4  }
 0x4e5   :  { %19 = sbr.rel (!%p17_p4) target bundleno = 1 (0x1), region = 90 }

</bundles_post_ra>
